<compile_context>
chip_gen: v7x
topology: tpu7x:2x2x1
jax: 0.10.0
libtpu: 0.0.40
codegen_flags: <defaults>
</compile_context>

<pallas_src>
import functools

import jax
import jax.numpy as jnp
import numpy as np
from jax.experimental import pallas as pl
from jax.experimental.pallas import tpu as pltpu


# ---------------------------------------------------------------------------
# Pallas kernel: fused (matmul + per-channel shift + activation)
# ---------------------------------------------------------------------------
def _fused_matmul_kernel(x_ref, w_ref, shift_ref, o_ref, *, activation):
    y = jnp.dot(x_ref[...], w_ref[...], preferred_element_type=jnp.float32)
    y = y + shift_ref[...]                       # BN shift (scale folded into w)
    if activation == "relu":
        y = jnp.maximum(y, 0.0)
    elif activation == "sigmoid":
        y = jax.nn.sigmoid(y)
    o_ref[...] = y.astype(o_ref.dtype)


def _choose_tile_m(M):
    """Largest tile that divides M, capped at 1024, preferring >=2 grid steps."""
    cap = 1024
    if M <= cap:
        if M >= 256 and (M // 2) % 8 == 0:
            return M // 2                        # 2 steps -> both v7x TCs busy
        return M
    for t in (1024, 512, 256, 128):
        if M % t == 0:
            return t
    return M if M % 8 != 0 else 8


def fused_matmul(x, w, shift, activation, out_dtype):
    """x: (M, K) bf16, w: (K, C_pad) bf16, shift: (1, C_pad) f32 -> (M, C_pad)."""
    M, K = x.shape
    K2, c_pad = w.shape
    assert K == K2 and c_pad % 128 == 0
    tile_m = _choose_tile_m(M)
    assert M % tile_m == 0

    return pl.pallas_call(
        functools.partial(_fused_matmul_kernel, activation=activation),
        out_shape=jax.ShapeDtypeStruct((M, c_pad), out_dtype),
        grid_spec=pltpu.PrefetchScalarGridSpec(
            num_scalar_prefetch=0,
            grid=(M // tile_m,),
            in_specs=[
                pl.BlockSpec((tile_m, K), lambda i: (i, 0)),   # patch tile
                pl.BlockSpec((K, c_pad), lambda i: (0, 0)),    # scaled weights
                pl.BlockSpec((1, c_pad), lambda i: (0, 0)),    # BN shift
            ],
            out_specs=pl.BlockSpec((tile_m, c_pad), lambda i: (i, 0)),
        ),
        compiler_params=pltpu.CompilerParams(
            dimension_semantics=("parallel",)),
    )(x, w, shift)


# ---------------------------------------------------------------------------
# ConvTranspose2d glue (zero-insertion + padding + im2col), plain JAX
# ---------------------------------------------------------------------------
def conv_transpose_patches(x_nhwc, k, stride, padding):
    """ConvTranspose2d(stride, padding, kernel k) as: dilate input by `stride`,
    pad by (k-1-padding), then extract k x k patches for a stride-1 correlation."""
    N, H, W, Cin = x_nhwc.shape
    if stride == 1:
        xd, Hd, Wd = x_nhwc, H, W
    else:
        Hd = (H - 1) * stride + 1
        Wd = (W - 1) * stride + 1
        xd = jnp.zeros((N, Hd, Wd, Cin), x_nhwc.dtype)
        xd = xd.at[:, ::stride, ::stride, :].set(x_nhwc)
    pad = k - 1 - padding
    xp = jnp.pad(xd, ((0, 0), (pad, pad), (pad, pad), (0, 0)))
    Hout = Hd + 2 * pad - k + 1
    Wout = Wd + 2 * pad - k + 1
    cols = [xp[:, kh:kh + Hout, kw:kw + Wout, :]
            for kh in range(k) for kw in range(k)]
    patches = jnp.concatenate(cols, axis=-1)               # (N,Hout,Wout,k*k*Cin)
    return patches.reshape(N * Hout * Wout, k * k * Cin), (N, Hout, Wout)


def conv_transpose_weight_matrix(w_t):
    """PyTorch ConvTranspose2d weight (Cin, Cout, k, k) -> (k*k*Cin, Cout) matrix
    for the equivalent stride-1 correlation (spatially flipped, channels swapped)."""
    Cin, Cout, k, _ = w_t.shape
    w_flip = w_t[:, :, ::-1, ::-1]                 # flip spatial dims
    w_conv = jnp.transpose(w_flip, (2, 3, 0, 1))   # (kh, kw, Cin, Cout)
    return w_conv.reshape(k * k * Cin, Cout)


# ---------------------------------------------------------------------------
# Generator (image_dim == 64 branch)
# ---------------------------------------------------------------------------
def make_layer_defs(nz, ngf, nc):
    return [
        dict(cin=nz,      cout=ngf * 8, k=4, s=1, p=0, bn=True,  act="relu"),
        dict(cin=ngf * 8, cout=ngf * 4, k=4, s=2, p=1, bn=True,  act="relu"),
        dict(cin=ngf * 4, cout=ngf * 2, k=4, s=2, p=1, bn=True,  act="relu"),
        dict(cin=ngf * 2, cout=ngf,     k=4, s=2, p=1, bn=True,  act="relu"),
        dict(cin=ngf,     cout=nc,      k=4, s=2, p=1, bn=False, act="sigmoid"),
    ]


def init_generator_params(key, layer_defs):
    """Array-only parameter pytree (safe to pass through jax.jit)."""
    params = []
    for i, ld in enumerate(layer_defs):
        kw_, kg, kb, km, kv = jax.random.split(jax.random.fold_in(key, i), 5)
        w = 0.02 * jax.random.normal(
            kw_, (ld["cin"], ld["cout"], ld["k"], ld["k"]), jnp.float32)
        if ld["bn"]:
            gamma = 1.0 + 0.1 * jax.random.normal(kg, (ld["cout"],), jnp.float32)
            beta = 0.1 * jax.random.normal(kb, (ld["cout"],), jnp.float32)
            mean = 0.1 * jax.random.normal(km, (ld["cout"],), jnp.float32)
            var = jnp.abs(1.0 + 0.1 * jax.random.normal(kv, (ld["cout"],), jnp.float32))
        else:
            gamma = jnp.ones((ld["cout"],), jnp.float32)
            beta = jnp.zeros((ld["cout"],), jnp.float32)
            mean = jnp.zeros((ld["cout"],), jnp.float32)
            var = jnp.ones((ld["cout"],), jnp.float32)
        params.append(dict(w=w, gamma=gamma, beta=beta, mean=mean, var=var))
    return params


def prepare_weights(params, layer_defs, eps=1e-5):
    """Fold BN scale into the weight matrix, pad Cout to a multiple of 128 for
    lane-dense stores, and cast weights to bf16 (f32 shift kept for the epilogue)."""
    prepared = []
    for ld, p in zip(layer_defs, params):
        wmat = conv_transpose_weight_matrix(p["w"])                 # (K, Cout) f32
        if ld["bn"]:
            scale = p["gamma"] / jnp.sqrt(p["var"] + eps)
            shift = p["beta"] - p["mean"] * scale
            wmat = wmat * scale[None, :]
        else:
            shift = jnp.zeros((ld["cout"],), jnp.float32)
        cout = ld["cout"]
        c_pad = ((cout + 127) // 128) * 128
        wmat = jnp.pad(wmat, ((0, 0), (0, c_pad - cout))).astype(jnp.bfloat16)
        shift = jnp.pad(shift, (0, c_pad - cout)).reshape(1, c_pad).astype(jnp.float32)
        prepared.append((wmat, shift))
    return prepared


def generator_forward(z_nchw, prepared, *, layer_defs, use_pallas=True):
    # NCHW -> NHWC; activations flow in bf16 (f32 MXU accumulation in the kernel).
    x = jnp.transpose(z_nchw, (0, 2, 3, 1)).astype(jnp.bfloat16)
    for ld, (wmat, shift) in zip(layer_defs, prepared):
        patches, (N, Hout, Wout) = conv_transpose_patches(x, ld["k"], ld["s"], ld["p"])
        cout = ld["cout"]
        out_dtype = jnp.float32 if ld["act"] == "sigmoid" else jnp.bfloat16
        if use_pallas:
            y = fused_matmul(patches, wmat, shift, ld["act"], out_dtype)
        else:  # pure-JAX reference path (same dtypes) for validation
            y = jnp.dot(patches, wmat, preferred_element_type=jnp.float32) + shift
            if ld["act"] == "relu":
                y = jnp.maximum(y, 0.0)
            else:
                y = jax.nn.sigmoid(y)
            y = y.astype(out_dtype)
        x = y[:, :cout].reshape(N, Hout, Wout, cout)
    return jnp.transpose(x.astype(jnp.float32), (0, 3, 1, 2))  # NHWC -> NCHW


if __name__ == "__main__":
    # Small DCGAN configuration: nz=16, ngf=8, nc=3, image_dim=64, batch=2.
    nz, ngf, nc, batch = 16, 8, 3, 2
    key = jax.random.PRNGKey(0)
    k_params, k_input = jax.random.split(key)

    layer_defs = make_layer_defs(nz, ngf, nc)            # static python config
    params = init_generator_params(k_params, layer_defs)  # arrays only
    prepared = prepare_weights(params, layer_defs)         # arrays only
    z = jax.random.normal(k_input, (batch, nz, 1, 1), jnp.float32)  # NCHW latent

    fwd_pallas = jax.jit(functools.partial(
        generator_forward, layer_defs=layer_defs, use_pallas=True))
    fwd_ref = jax.jit(functools.partial(
        generator_forward, layer_defs=layer_defs, use_pallas=False))

    out = fwd_pallas(z, prepared)
    jax.block_until_ready(out)
    assert out.shape == (batch, nc, 64, 64), out.shape

    ref = fwd_ref(z, prepared)
    jax.block_until_ready(ref)
    # bf16 matmul operands on both paths; tolerance allows for accumulation-order
    # and transcendental-implementation differences.
    np.testing.assert_allclose(np.asarray(out), np.asarray(ref), rtol=1e-2, atol=1e-2)

    print("KERNEL_OK")
</pallas_src>

<mosaic_0001>
module attributes {stable_mosaic.version = 11 : i64} {
  func.func @_fused_matmul_kernel(%arg0: i32, %arg1: memref<32x256xbf16, #tpu.memory_space<vmem>>, %arg2: memref<256x128xbf16, #tpu.memory_space<vmem>>, %arg3: memref<1x128xf32, #tpu.memory_space<vmem>>, %arg4: memref<32x128xbf16, #tpu.memory_space<vmem>>) attributes {dimension_semantics = [#tpu.dimension_semantics<parallel>], iteration_bounds = array<i64: 1>, scalar_prefetch = 0 : i64, scratch_operands = 0 : i64, tpu.core_type = #tpu.core_type<tc>, window_params = [{transform_indices = @transform_0, window_bounds = array<i64: 32, 256>}, {pipeline_mode = #tpu.pipeline_mode<synchronous>, transform_indices = @transform_1, window_bounds = array<i64: 256, 128>}, {pipeline_mode = #tpu.pipeline_mode<synchronous>, transform_indices = @transform_2, window_bounds = array<i64: 1, 128>}, {transform_indices = @transform_3, window_bounds = array<i64: 32, 128>}]} {
    %c0 = arith.constant 0 : index
    %c0_0 = arith.constant 0 : index
    %0 = vector.load %arg1[%c0, %c0_0] : memref<32x256xbf16, #tpu.memory_space<vmem>>, vector<32x256xbf16>
    %c0_1 = arith.constant 0 : index
    %c0_2 = arith.constant 0 : index
    %1 = vector.load %arg2[%c0_1, %c0_2] : memref<256x128xbf16, #tpu.memory_space<vmem>>, vector<256x128xbf16>
    %cst = arith.constant dense<0.000000e+00> : vector<32x128xf32>
    %2 = tpu.matmul %0, %1, %cst {dimension_numbers = #tpu.dot_dimension_numbers<[1], [0], [0], [1], [0, 0, 1, 1], [], []>} : vector<32x256xbf16>, vector<256x128xbf16>, vector<32x128xf32> -> vector<32x128xf32>
    %c0_3 = arith.constant 0 : index
    %c0_4 = arith.constant 0 : index
    %3 = vector.load %arg3[%c0_3, %c0_4] : memref<1x128xf32, #tpu.memory_space<vmem>>, vector<1x128xf32>
    %4 = vector.broadcast %3 : vector<1x128xf32> to vector<32x128xf32>
    %5 = arith.addf %2, %4 : vector<32x128xf32>
    %cst_5 = arith.constant 0.000000e+00 : f32
    %6 = vector.broadcast %cst_5 : f32 to vector<32x128xf32>
    %7 = arith.maximumf %5, %6 : vector<32x128xf32>
    %8 = arith.truncf %7 : vector<32x128xf32> to vector<32x128xbf16>
    %c0_6 = arith.constant 0 : index
    %c0_7 = arith.constant 0 : index
    %9 = vector.load %arg4[%c0_6, %c0_7] : memref<32x128xbf16, #tpu.memory_space<vmem>>, vector<32x128xbf16>
    tpu.vector_store %arg4[%c0_6, %c0_7], %8 {strides = array<i32>} : memref<32x128xbf16, #tpu.memory_space<vmem>>, vector<32x128xbf16>,
    return
  }
  func.func @transform_0(%arg0: i32) -> (i32, i32) {
    %c0_i32 = arith.constant 0 : i32
    %c0_i32_0 = arith.constant 0 : i32
    return %arg0, %c0_i32 : i32, i32
  }
  func.func @transform_1(%arg0: i32) -> (i32, i32) {
    %c0_i32 = arith.constant 0 : i32
    %c0_i32_0 = arith.constant 0 : i32
    %c0_i32_1 = arith.constant 0 : i32
    return %c0_i32, %c0_i32_0 : i32, i32
  }
  func.func @transform_2(%arg0: i32) -> (i32, i32) {
    %c0_i32 = arith.constant 0 : i32
    %c0_i32_0 = arith.constant 0 : i32
    %c0_i32_1 = arith.constant 0 : i32
    return %c0_i32, %c0_i32_0 : i32, i32
  }
  func.func @transform_3(%arg0: i32) -> (i32, i32) {
    %c0_i32 = arith.constant 0 : i32
    %c0_i32_0 = arith.constant 0 : i32
    return %arg0, %c0_i32 : i32, i32
  }
}

module attributes {stable_mosaic.version = 11 : i64} {
  func.func @_fused_matmul_kernel(%arg0: i32, %arg1: memref<128x1024xbf16, #tpu.memory_space<vmem>>, %arg2: memref<1024x128xbf16, #tpu.memory_space<vmem>>, %arg3: memref<1x128xf32, #tpu.memory_space<vmem>>, %arg4: memref<128x128xbf16, #tpu.memory_space<vmem>>) attributes {dimension_semantics = [#tpu.dimension_semantics<parallel>], iteration_bounds = array<i64: 1>, scalar_prefetch = 0 : i64, scratch_operands = 0 : i64, tpu.core_type = #tpu.core_type<tc>, window_params = [{transform_indices = @transform_0, window_bounds = array<i64: 128, 1024>}, {pipeline_mode = #tpu.pipeline_mode<synchronous>, transform_indices = @transform_1, window_bounds = array<i64: 1024, 128>}, {pipeline_mode = #tpu.pipeline_mode<synchronous>, transform_indices = @transform_2, window_bounds = array<i64: 1, 128>}, {transform_indices = @transform_3, window_bounds = array<i64: 128, 128>}]} {
    %c0 = arith.constant 0 : index
    %c0_0 = arith.constant 0 : index
    %0 = vector.load %arg1[%c0, %c0_0] : memref<128x1024xbf16, #tpu.memory_space<vmem>>, vector<128x1024xbf16>
    %c0_1 = arith.constant 0 : index
    %c0_2 = arith.constant 0 : index
    %1 = vector.load %arg2[%c0_1, %c0_2] : memref<1024x128xbf16, #tpu.memory_space<vmem>>, vector<1024x128xbf16>
    %cst = arith.constant dense<0.000000e+00> : vector<128x128xf32>
    %2 = tpu.matmul %0, %1, %cst {dimension_numbers = #tpu.dot_dimension_numbers<[1], [0], [0], [1], [0, 0, 1, 1], [], []>} : vector<128x1024xbf16>, vector<1024x128xbf16>, vector<128x128xf32> -> vector<128x128xf32>
    %c0_3 = arith.constant 0 : index
    %c0_4 = arith.constant 0 : index
    %3 = vector.load %arg3[%c0_3, %c0_4] : memref<1x128xf32, #tpu.memory_space<vmem>>, vector<1x128xf32>
    %4 = vector.broadcast %3 : vector<1x128xf32> to vector<128x128xf32>
    %5 = arith.addf %2, %4 : vector<128x128xf32>
    %cst_5 = arith.constant 0.000000e+00 : f32
    %6 = vector.broadcast %cst_5 : f32 to vector<128x128xf32>
    %7 = arith.maximumf %5, %6 : vector<128x128xf32>
    %8 = arith.truncf %7 : vector<128x128xf32> to vector<128x128xbf16>
    %c0_6 = arith.constant 0 : index
    %c0_7 = arith.constant 0 : index
    %9 = vector.load %arg4[%c0_6, %c0_7] : memref<128x128xbf16, #tpu.memory_space<vmem>>, vector<128x128xbf16>
    tpu.vector_store %arg4[%c0_6, %c0_7], %8 {strides = array<i32>} : memref<128x128xbf16, #tpu.memory_space<vmem>>, vector<128x128xbf16>,
    return
  }
  func.func @transform_0(%arg0: i32) -> (i32, i32) {
    %c0_i32 = arith.constant 0 : i32
    %c0_i32_0 = arith.constant 0 : i32
    return %arg0, %c0_i32 : i32, i32
  }
  func.func @transform_1(%arg0: i32) -> (i32, i32) {
    %c0_i32 = arith.constant 0 : i32
    %c0_i32_0 = arith.constant 0 : i32
    %c0_i32_1 = arith.constant 0 : i32
    return %c0_i32, %c0_i32_0 : i32, i32
  }
  func.func @transform_2(%arg0: i32) -> (i32, i32) {
    %c0_i32 = arith.constant 0 : i32
    %c0_i32_0 = arith.constant 0 : i32
    %c0_i32_1 = arith.constant 0 : i32
    return %c0_i32, %c0_i32_0 : i32, i32
  }
  func.func @transform_3(%arg0: i32) -> (i32, i32) {
    %c0_i32 = arith.constant 0 : i32
    %c0_i32_0 = arith.constant 0 : i32
    return %arg0, %c0_i32 : i32, i32
  }
}

module attributes {stable_mosaic.version = 11 : i64} {
  func.func @_fused_matmul_kernel(%arg0: i32, %arg1: memref<256x512xbf16, #tpu.memory_space<vmem>>, %arg2: memref<512x128xbf16, #tpu.memory_space<vmem>>, %arg3: memref<1x128xf32, #tpu.memory_space<vmem>>, %arg4: memref<256x128xbf16, #tpu.memory_space<vmem>>) attributes {dimension_semantics = [#tpu.dimension_semantics<parallel>], iteration_bounds = array<i64: 2>, scalar_prefetch = 0 : i64, scratch_operands = 0 : i64, tpu.core_type = #tpu.core_type<tc>, window_params = [{transform_indices = @transform_0, window_bounds = array<i64: 256, 512>}, {pipeline_mode = #tpu.pipeline_mode<synchronous>, transform_indices = @transform_1, window_bounds = array<i64: 512, 128>}, {pipeline_mode = #tpu.pipeline_mode<synchronous>, transform_indices = @transform_2, window_bounds = array<i64: 1, 128>}, {transform_indices = @transform_3, window_bounds = array<i64: 256, 128>}]} {
    %c0 = arith.constant 0 : index
    %c0_0 = arith.constant 0 : index
    %0 = vector.load %arg1[%c0, %c0_0] : memref<256x512xbf16, #tpu.memory_space<vmem>>, vector<256x512xbf16>
    %c0_1 = arith.constant 0 : index
    %c0_2 = arith.constant 0 : index
    %1 = vector.load %arg2[%c0_1, %c0_2] : memref<512x128xbf16, #tpu.memory_space<vmem>>, vector<512x128xbf16>
    %cst = arith.constant dense<0.000000e+00> : vector<256x128xf32>
    %2 = tpu.matmul %0, %1, %cst {dimension_numbers = #tpu.dot_dimension_numbers<[1], [0], [0], [1], [0, 0, 1, 1], [], []>} : vector<256x512xbf16>, vector<512x128xbf16>, vector<256x128xf32> -> vector<256x128xf32>
    %c0_3 = arith.constant 0 : index
    %c0_4 = arith.constant 0 : index
    %3 = vector.load %arg3[%c0_3, %c0_4] : memref<1x128xf32, #tpu.memory_space<vmem>>, vector<1x128xf32>
    %4 = vector.broadcast %3 : vector<1x128xf32> to vector<256x128xf32>
    %5 = arith.addf %2, %4 : vector<256x128xf32>
    %cst_5 = arith.constant 0.000000e+00 : f32
    %6 = vector.broadcast %cst_5 : f32 to vector<256x128xf32>
    %7 = arith.maximumf %5, %6 : vector<256x128xf32>
    %8 = arith.truncf %7 : vector<256x128xf32> to vector<256x128xbf16>
    %c0_6 = arith.constant 0 : index
    %c0_7 = arith.constant 0 : index
    %9 = vector.load %arg4[%c0_6, %c0_7] : memref<256x128xbf16, #tpu.memory_space<vmem>>, vector<256x128xbf16>
    tpu.vector_store %arg4[%c0_6, %c0_7], %8 {strides = array<i32>} : memref<256x128xbf16, #tpu.memory_space<vmem>>, vector<256x128xbf16>,
    return
  }
  func.func @transform_0(%arg0: i32) -> (i32, i32) {
    %c0_i32 = arith.constant 0 : i32
    %c0_i32_0 = arith.constant 0 : i32
    return %arg0, %c0_i32 : i32, i32
  }
  func.func @transform_1(%arg0: i32) -> (i32, i32) {
    %c0_i32 = arith.constant 0 : i32
    %c0_i32_0 = arith.constant 0 : i32
    %c0_i32_1 = arith.constant 0 : i32
    return %c0_i32, %c0_i32_0 : i32, i32
  }
  func.func @transform_2(%arg0: i32) -> (i32, i32) {
    %c0_i32 = arith.constant 0 : i32
    %c0_i32_0 = arith.constant 0 : i32
    %c0_i32_1 = arith.constant 0 : i32
    return %c0_i32, %c0_i32_0 : i32, i32
  }
  func.func @transform_3(%arg0: i32) -> (i32, i32) {
    %c0_i32 = arith.constant 0 : i32
    %c0_i32_0 = arith.constant 0 : i32
    return %arg0, %c0_i32 : i32, i32
  }
}

module attributes {stable_mosaic.version = 11 : i64} {
  func.func @_fused_matmul_kernel(%arg0: i32, %arg1: memref<1024x256xbf16, #tpu.memory_space<vmem>>, %arg2: memref<256x128xbf16, #tpu.memory_space<vmem>>, %arg3: memref<1x128xf32, #tpu.memory_space<vmem>>, %arg4: memref<1024x128xbf16, #tpu.memory_space<vmem>>) attributes {dimension_semantics = [#tpu.dimension_semantics<parallel>], iteration_bounds = array<i64: 2>, scalar_prefetch = 0 : i64, scratch_operands = 0 : i64, tpu.core_type = #tpu.core_type<tc>, window_params = [{transform_indices = @transform_0, window_bounds = array<i64: 1024, 256>}, {pipeline_mode = #tpu.pipeline_mode<synchronous>, transform_indices = @transform_1, window_bounds = array<i64: 256, 128>}, {pipeline_mode = #tpu.pipeline_mode<synchronous>, transform_indices = @transform_2, window_bounds = array<i64: 1, 128>}, {transform_indices = @transform_3, window_bounds = array<i64: 1024, 128>}]} {
    %c0 = arith.constant 0 : index
    %c0_0 = arith.constant 0 : index
    %0 = vector.load %arg1[%c0, %c0_0] : memref<1024x256xbf16, #tpu.memory_space<vmem>>, vector<1024x256xbf16>
    %c0_1 = arith.constant 0 : index
    %c0_2 = arith.constant 0 : index
    %1 = vector.load %arg2[%c0_1, %c0_2] : memref<256x128xbf16, #tpu.memory_space<vmem>>, vector<256x128xbf16>
    %cst = arith.constant dense<0.000000e+00> : vector<1024x128xf32>
    %2 = tpu.matmul %0, %1, %cst {dimension_numbers = #tpu.dot_dimension_numbers<[1], [0], [0], [1], [0, 0, 1, 1], [], []>} : vector<1024x256xbf16>, vector<256x128xbf16>, vector<1024x128xf32> -> vector<1024x128xf32>
    %c0_3 = arith.constant 0 : index
    %c0_4 = arith.constant 0 : index
    %3 = vector.load %arg3[%c0_3, %c0_4] : memref<1x128xf32, #tpu.memory_space<vmem>>, vector<1x128xf32>
    %4 = vector.broadcast %3 : vector<1x128xf32> to vector<1024x128xf32>
    %5 = arith.addf %2, %4 : vector<1024x128xf32>
    %cst_5 = arith.constant 0.000000e+00 : f32
    %6 = vector.broadcast %cst_5 : f32 to vector<1024x128xf32>
    %7 = arith.maximumf %5, %6 : vector<1024x128xf32>
    %8 = arith.truncf %7 : vector<1024x128xf32> to vector<1024x128xbf16>
    %c0_6 = arith.constant 0 : index
    %c0_7 = arith.constant 0 : index
    %9 = vector.load %arg4[%c0_6, %c0_7] : memref<1024x128xbf16, #tpu.memory_space<vmem>>, vector<1024x128xbf16>
    tpu.vector_store %arg4[%c0_6, %c0_7], %8 {strides = array<i32>} : memref<1024x128xbf16, #tpu.memory_space<vmem>>, vector<1024x128xbf16>,
    return
  }
  func.func @transform_0(%arg0: i32) -> (i32, i32) {
    %c0_i32 = arith.constant 0 : i32
    %c0_i32_0 = arith.constant 0 : i32
    return %arg0, %c0_i32 : i32, i32
  }
  func.func @transform_1(%arg0: i32) -> (i32, i32) {
    %c0_i32 = arith.constant 0 : i32
    %c0_i32_0 = arith.constant 0 : i32
    %c0_i32_1 = arith.constant 0 : i32
    return %c0_i32, %c0_i32_0 : i32, i32
  }
  func.func @transform_2(%arg0: i32) -> (i32, i32) {
    %c0_i32 = arith.constant 0 : i32
    %c0_i32_0 = arith.constant 0 : i32
    %c0_i32_1 = arith.constant 0 : i32
    return %c0_i32, %c0_i32_0 : i32, i32
  }
  func.func @transform_3(%arg0: i32) -> (i32, i32) {
    %c0_i32 = arith.constant 0 : i32
    %c0_i32_0 = arith.constant 0 : i32
    return %arg0, %c0_i32 : i32, i32
  }
}

module attributes {stable_mosaic.version = 11 : i64} {
  func.func @_fused_matmul_kernel(%arg0: i32, %arg1: memref<1024x128xbf16, #tpu.memory_space<vmem>>, %arg2: memref<128x128xbf16, #tpu.memory_space<vmem>>, %arg3: memref<1x128xf32, #tpu.memory_space<vmem>>, %arg4: memref<1024x128xf32, #tpu.memory_space<vmem>>) attributes {dimension_semantics = [#tpu.dimension_semantics<parallel>], iteration_bounds = array<i64: 8>, scalar_prefetch = 0 : i64, scratch_operands = 0 : i64, tpu.core_type = #tpu.core_type<tc>, window_params = [{transform_indices = @transform_0, window_bounds = array<i64: 1024, 128>}, {pipeline_mode = #tpu.pipeline_mode<synchronous>, transform_indices = @transform_1, window_bounds = array<i64: 128, 128>}, {pipeline_mode = #tpu.pipeline_mode<synchronous>, transform_indices = @transform_2, window_bounds = array<i64: 1, 128>}, {transform_indices = @transform_3, window_bounds = array<i64: 1024, 128>}]} {
    %c0 = arith.constant 0 : index
    %c0_0 = arith.constant 0 : index
    %0 = vector.load %arg1[%c0, %c0_0] : memref<1024x128xbf16, #tpu.memory_space<vmem>>, vector<1024x128xbf16>
    %c0_1 = arith.constant 0 : index
    %c0_2 = arith.constant 0 : index
    %1 = vector.load %arg2[%c0_1, %c0_2] : memref<128x128xbf16, #tpu.memory_space<vmem>>, vector<128x128xbf16>
    %cst = arith.constant dense<0.000000e+00> : vector<1024x128xf32>
    %2 = tpu.matmul %0, %1, %cst {dimension_numbers = #tpu.dot_dimension_numbers<[1], [0], [0], [1], [0, 0, 1, 1], [], []>} : vector<1024x128xbf16>, vector<128x128xbf16>, vector<1024x128xf32> -> vector<1024x128xf32>
    %c0_3 = arith.constant 0 : index
    %c0_4 = arith.constant 0 : index
    %3 = vector.load %arg3[%c0_3, %c0_4] : memref<1x128xf32, #tpu.memory_space<vmem>>, vector<1x128xf32>
    %4 = vector.broadcast %3 : vector<1x128xf32> to vector<1024x128xf32>
    %5 = arith.addf %2, %4 : vector<1024x128xf32>
    %6 = arith.negf %5 : vector<1024x128xf32>
    %7 = math.exp %6 : vector<1024x128xf32>
    %cst_5 = arith.constant 1.000000e+00 : f32
    %8 = vector.broadcast %cst_5 : f32 to vector<1024x128xf32>
    %9 = arith.addf %8, %7 : vector<1024x128xf32>
    %10 = arith.divf %8, %9 : vector<1024x128xf32>
    %c0_6 = arith.constant 0 : index
    %c0_7 = arith.constant 0 : index
    %11 = vector.load %arg4[%c0_6, %c0_7] : memref<1024x128xf32, #tpu.memory_space<vmem>>, vector<1024x128xf32>
    tpu.vector_store %arg4[%c0_6, %c0_7], %10 {strides = array<i32>} : memref<1024x128xf32, #tpu.memory_space<vmem>>, vector<1024x128xf32>,
    return
  }
  func.func @transform_0(%arg0: i32) -> (i32, i32) {
    %c0_i32 = arith.constant 0 : i32
    %c0_i32_0 = arith.constant 0 : i32
    return %arg0, %c0_i32 : i32, i32
  }
  func.func @transform_1(%arg0: i32) -> (i32, i32) {
    %c0_i32 = arith.constant 0 : i32
    %c0_i32_0 = arith.constant 0 : i32
    %c0_i32_1 = arith.constant 0 : i32
    return %c0_i32, %c0_i32_0 : i32, i32
  }
  func.func @transform_2(%arg0: i32) -> (i32, i32) {
    %c0_i32 = arith.constant 0 : i32
    %c0_i32_0 = arith.constant 0 : i32
    %c0_i32_1 = arith.constant 0 : i32
    return %c0_i32, %c0_i32_0 : i32, i32
  }
  func.func @transform_3(%arg0: i32) -> (i32, i32) {
    %c0_i32 = arith.constant 0 : i32
    %c0_i32_0 = arith.constant 0 : i32
    return %arg0, %c0_i32 : i32, i32
  }
}

</mosaic_0001>

<bundles_post_ra>
// kernel: generator_forward.5
= control target key start
LH: loop header
LB: loop body
LE: loop exit
PB: predicated region body
PF: predicated region fallthrough
CT: control target
= control target key end

     0   :  { %8 = vsyncpa [#allocation3], 0  ;;  %s503_s0 = inlined_call_operand.vmem [shape: bf16[32,256], index: 0, kind: input, shape index: {}]   ;;  %s504_s1 = inlined_call_operand.hbm [shape: bf16[256,128], index: 1, kind: input, shape index: {}]   ;;  %s505_s2 = inlined_call_operand.hbm [shape: f32[1,128], index: 2, kind: input, shape index: {}]   ;;  %s506_s3 = inlined_call_operand.vmem [shape: bf16[32,128], index: 3, kind: output, shape index: {}]  }
   0x1   :  { %9 = vsyncpa [#allocation5], 0  ;;  %s437_s12 = smov [#allocation2]   ;;  %s389_s16 = scalar_lea.hbm %s504_s1, 2048 }
   0x2   :  { %s17_s13 = sshll.u32 %s437_s12, 4  ;;  %p390_p0 = scmp.ne.s32.totalorder %s504_s1, %s389_s16  ;;  %s18_s13 = int_to_ptr.vmem [resolvable:$true] %s17_s13 }
   0x3   :  { %p393_p1 = scmp.lt.u32.totalorder %s389_s16, %s504_s1 }
   0x5   :  { %p395_p2 = pnand %p393_p1, %p390_p0 }
   0x7   :  { %398 = shalt.err (!%p395_p2)
}
   0x8   :  { %s399_s21 = scalar_lea.vmem %s18_s13, 2048  ;;  %p404_p4 = scmp.lt.s32.totalorder %s18_s13, %s18_s13 }
   0x9   :  { %p400_p3 = scmp.ne.s32.totalorder %s18_s13, %s399_s21  ;;  %p405_p5 = scmp.lt.s32.totalorder %s399_s21, %s399_s21 }
   0xb   :  { %p406_p6 = por %p405_p5, %p404_p4 }
   0xd   :  { %p407_p7 = pnand %p406_p6, %p400_p3 }
   0xf   :  { %410 = shalt.err (!%p407_p7)
}
  0x10   :  { %s438_s22 = smov 64   ;;  %s439_s23 = smov 4  }
  0x11   :  { %23 = dma.hbm_to_vmem [thread:$0]  %s504_s1, 2048, %s18_s13, [#allocation3], %s438_s22, %s438_s22, %s439_s23  }
  0x12   :  { %s440_s26 = smov [#allocation4]   ;;  %s411_s30 = scalar_lea.hbm %s505_s2, 16 }
  0x13   :  { %s30_s27 = sshll.u32 %s440_s26, 4  ;;  %p412_p8 = scmp.ne.s32.totalorder %s505_s2, %s411_s30  ;;  %s31_s27 = int_to_ptr.vmem [resolvable:$true] %s30_s27 }
  0x14   :  { %p415_p9 = scmp.lt.u32.totalorder %s411_s30, %s505_s2 }
  0x16   :  { %p417_p10 = pnand %p415_p9, %p412_p8 }
  0x18   :  { %420 = shalt.err (!%p417_p10)
}
  0x19   :  { %s421_s8 = scalar_lea.vmem %s31_s27, 16  ;;  %s425_s1 = scalar_lea.vmem %s31_s27, 32 }
  0x1a   :  { %p422_p11 = scmp.ne.s32.totalorder %s31_s27, %s421_s8  ;;  %p426_p12 = scmp.lt.s32.totalorder %s31_s27, %s31_s27 }
  0x1b   :  { %p427_p13 = scmp.lt.s32.totalorder %s425_s1, %s421_s8 }
  0x1d   :  { %p428_p0 = por %p427_p13, %p426_p12 }
  0x1f   :  { %p429_p1 = pnand %p428_p0, %p422_p11 }
  0x21   :  { %432 = shalt.err (!%p429_p1)
}
  0x22   :  { %33 = dma.hbm_to_vmem [thread:$0]  %s505_s2, 16, %s31_s27, [#allocation5]  }
  0x23   :  { %433 = dma.done.wait [#allocation3], 2048  }
  0x24   :  { %434 = vsyncadd [#allocation3], 4294965248 }
  0x25   :  { %435 = dma.done.wait [#allocation5], 16  }
  0x26   :  { %436 = vsyncadd [#allocation5], 4294967280  ;;  %v367_v0 = vld [vmem:[#allocation2 + $0x40] sm:$0xff]   ;;  %v369_v2 = vld [vmem:[#allocation2 + $0x48] sm:$0xff]  }
  0x27   :  { %v368_v1 = vld [vmem:[#allocation2] sm:$0xff]   ;;  %319 = vmatprep.subr.bf16.mxu0 %v367_v0  ;;  %347 = vmatprep.subr.bf16.mxu1 %v367_v0  ;;  %v370_v3 = vld [vmem:[#allocation2 + $0x8] sm:$0xff]   ;;  %v371_v4 = vld [vmem:[#allocation2 + $0x50] sm:$0xff]  }
  0x28   :  { %320 = vmatpush3.bf16.msra.mxu0 %v368_v1  ;;  %355 = vmatpush3.bf16.msra.mxu1 %v368_v1  ;;  %v372_v5 = vld [vmem:[#allocation2 + $0x10] sm:$0xff]   ;;  %v373_v6 = vld [vmem:[#allocation2 + $0x58] sm:$0xff]   ;;  %v375_v8 = vld [vmem:[#allocation2 + $0x60] sm:$0xff]  }
  0x29   :  { %321 = vmatprep.subr.bf16.mxu0 %v369_v2  ;;  %348 = vmatprep.subr.bf16.mxu1 %v369_v2  ;;  %v374_v7 = vld [vmem:[#allocation2 + $0x18] sm:$0xff]   ;;  %v376_v9 = vld [vmem:[#allocation2 + $0x20] sm:$0xff]   ;;  %v377_v10 = vld [vmem:[#allocation2 + $0x68] sm:$0xff]  }
  0x2a   :  { %v385_v11 = vld [vmem:[%s503_s0 + $0x4] ss:$8 sps:$4 sm:$0xff]   ;;  %v388_v12 = vld [vmem:[%s503_s0 + $0x14] ss:$8 sps:$4 sm:$0xff]   ;;  %v383_v18 = vld [vmem:[%s503_s0] ss:$8 sps:$4 sm:$0xff]  }
  0x2b   :  { %v378_v13 = vld [vmem:[#allocation2 + $0x28] sm:$0xff]   ;;  %v379_v14 = vld [vmem:[#allocation2 + $0x70] sm:$0xff]   ;;  %232 = vmatprep.mubr.bf16.mxu0 %v385_v11  ;;  %240 = vmatprep.mubr.bf16.mxu1 %v388_v12  ;;  %v381_v16 = vld [vmem:[#allocation2 + $0x78] sm:$0xff]  }
  0x2c   :  { %322 = vmatpush3.bf16.msra.mxu0 %v370_v3  ;;  %356 = vmatpush3.bf16.msra.mxu1 %v370_v3  ;;  %v380_v15 = vld [vmem:[#allocation2 + $0x30] sm:$0xff]   ;;  %v382_v17 = vld [vmem:[#allocation2 + $0x38] sm:$0xff]   ;;  %v279_v22 = vld [vmem:[#allocation4] ss:$0 sm:$0xff] }
  0x2d   :  { %323 = vmatprep.subr.bf16.mxu0 %v371_v4  ;;  %349 = vmatprep.subr.bf16.mxu1 %v371_v4  ;;  %v386_v19 = vld [vmem:[%s503_s0 + $0x10] ss:$8 sps:$4 sm:$0xff]  }
  0x30   :  { %324 = vmatpush3.bf16.msra.mxu0 %v372_v5  ;;  %357 = vmatpush3.bf16.msra.mxu1 %v372_v5 }
  0x31   :  { %325 = vmatprep.subr.bf16.mxu0 %v373_v6  ;;  %350 = vmatprep.subr.bf16.mxu1 %v373_v6 }
  0x34   :  { %326 = vmatpush3.bf16.msra.mxu0 %v374_v7  ;;  %358 = vmatpush3.bf16.msra.mxu1 %v374_v7 }
  0x35   :  { %327 = vmatprep.subr.bf16.mxu0 %v375_v8  ;;  %351 = vmatprep.subr.bf16.mxu1 %v375_v8 }
  0x38   :  { %328 = vmatpush3.bf16.msra.mxu0 %v376_v9  ;;  %359 = vmatpush3.bf16.msra.mxu1 %v376_v9 }
  0x39   :  { %329 = vmatprep.subr.bf16.mxu0 %v377_v10  ;;  %352 = vmatprep.subr.bf16.mxu1 %v377_v10 }
  0x3c   :  { %330 = vmatpush3.bf16.msra.mxu0 %v378_v13  ;;  %360 = vmatpush3.bf16.msra.mxu1 %v378_v13 }
  0x3d   :  { %331 = vmatprep.subr.bf16.mxu0 %v379_v14  ;;  %353 = vmatprep.subr.bf16.mxu1 %v379_v14 }
  0x40   :  { %332 = vmatpush3.bf16.msra.mxu0 %v380_v15  ;;  %361 = vmatpush3.bf16.msra.mxu1 %v380_v15 }
  0x41   :  { %333 = vmatprep.subr.bf16.mxu0 %v381_v16  ;;  %354 = vmatprep.subr.bf16.mxu1 %v381_v16 }
  0x44   :  { %334 = vmatpush3.bf16.msra.mxu0 %v382_v17  ;;  %362 = vmatpush3.bf16.msra.mxu1 %v382_v17 }
  0x47   :  { %233 = vmatmul.mubr.bf16.vlgmr.msra.gmra.mrb[0].mxu0 %v383_v18  ;;  %241 = vmatmul.mubr.bf16.vlgmr.msra.gmra.mrb[0].mxu1 %v386_v19 }
 0x11a   :  { %v335_v20 = vpop.f32.mrb[0].mxu0  ;;  %v341_v21 = vpop.f32.mrb[0].mxu1 }
 0x11b   :  { %v336_v23 = vpop.f32.mrb[1].mxu0  ;;  %v342_v24 = vpop.f32.mrb[1].mxu1 }
 0x11c   :  { %v337_v25 = vadd.f32 %v336_v23, %v335_v20  ;;  %v343_v26 = vadd.f32 %v342_v24, %v341_v21  ;;  %v338_v27 = vpop.f32.mrb[2].mxu0  ;;  %v344_v28 = vpop.f32.mrb[2].mxu1 }
 0x11d   :  { %v339_v29 = vpop.f32.mrb[3].mxu0  ;;  %v345_v30 = vpop.f32.mrb[3].mxu1 }
 0x11e   :  { %v235_v31 = vadd.f32 %v337_v25, %v279_v22  ;;  %v243_v32 = vadd.f32 %v343_v26, %v279_v22  ;;  %v340_v33 = vadd.f32 %v339_v29, %v338_v27  ;;  %v346_v34 = vadd.f32 %v345_v30, %v344_v28 }
 0x120   :  { %v238_v35 = vadd.f32 %v340_v33, %v279_v22  ;;  %v246_v36 = vadd.f32 %v346_v34, %v279_v22  ;;  %v249_v37 = vmax.f32 %v235_v31, 0.0  ;;  %v251_v38 = vmax.f32 %v243_v32, 0.0 }
 0x122   :  { %v250_v39 = vmax.f32 %v238_v35, 0.0  ;;  %v252_v40 = vmax.f32 %v246_v36, 0.0 }
 0x124   :  { %v311_v41 = vpack.c.bf16 %v250_v39, %v249_v37  ;;  %v316_v42 = vpack.c.bf16 %v252_v40, %v251_v38 }
 0x126   :  { %312 = vst [vmem:[%s506_s3] sm:$0xff] %v311_v41   ;;  %318 = vst [vmem:[%s506_s3 + $0x8] sm:$0xff] %v316_v42  }
 0x127   :  { %277 = vsyncpa [#allocation3], 1 }
 0x128   :  { %278 = vsyncpa [#allocation5], 1 }

// kernel: generator_forward.6
= control target key start
LH: loop header
LB: loop body
LE: loop exit
PB: predicated region body
PF: predicated region fallthrough
CT: control target
= control target key end

     0   :  { %8 = vsyncpa [#allocation3], 0  ;;  %s2344_s0 = inlined_call_operand.vmem [shape: bf16[128,1024], index: 0, kind: input, shape index: {}]   ;;  %s2345_s1 = inlined_call_operand.hbm [shape: bf16[1024,128], index: 1, kind: input, shape index: {}]   ;;  %s2346_s2 = inlined_call_operand.hbm [shape: f32[1,128], index: 2, kind: input, shape index: {}]   ;;  %s2347_s3 = inlined_call_operand.vmem [shape: bf16[128,128], index: 3, kind: output, shape index: {}]  }
   0x1   :  { %9 = vsyncpa [#allocation5], 0  ;;  %s2014_s12 = smov [#allocation2]   ;;  %s1966_s16 = scalar_lea.hbm %s2345_s1, 8192 }
   0x2   :  { %s17_s13 = sshll.u32 %s2014_s12, 4  ;;  %p1967_p0 = scmp.ne.s32.totalorder %s2345_s1, %s1966_s16  ;;  %s18_s13 = int_to_ptr.vmem [resolvable:$true] %s17_s13 }
   0x3   :  { %p1970_p1 = scmp.lt.u32.totalorder %s1966_s16, %s2345_s1 }
   0x5   :  { %p1972_p2 = pnand %p1970_p1, %p1967_p0 }
   0x7   :  { %1975 = shalt.err (!%p1972_p2)
}
   0x8   :  { %s1976_s21 = scalar_lea.vmem %s18_s13, 8192  ;;  %p1981_p4 = scmp.lt.s32.totalorder %s18_s13, %s18_s13 }
   0x9   :  { %p1977_p3 = scmp.ne.s32.totalorder %s18_s13, %s1976_s21  ;;  %p1982_p5 = scmp.lt.s32.totalorder %s1976_s21, %s1976_s21 }
   0xb   :  { %p1983_p6 = por %p1982_p5, %p1981_p4 }
   0xd   :  { %p1984_p7 = pnand %p1983_p6, %p1977_p3 }
   0xf   :  { %1987 = shalt.err (!%p1984_p7)
}
  0x10   :  { %s2015_s22 = smov 64   ;;  %s2016_s23 = smov 4  }
  0x11   :  { %23 = dma.hbm_to_vmem [thread:$0]  %s2345_s1, 8192, %s18_s13, [#allocation3], %s2015_s22, %s2015_s22, %s2016_s23  }
  0x12   :  { %s2017_s26 = smov [#allocation4]   ;;  %s1988_s30 = scalar_lea.hbm %s2346_s2, 16 }
  0x13   :  { %s30_s27 = sshll.u32 %s2017_s26, 4  ;;  %p1989_p8 = scmp.ne.s32.totalorder %s2346_s2, %s1988_s30  ;;  %s31_s27 = int_to_ptr.vmem [resolvable:$true] %s30_s27 }
  0x14   :  { %p1992_p9 = scmp.lt.u32.totalorder %s1988_s30, %s2346_s2 }
  0x16   :  { %p1994_p10 = pnand %p1992_p9, %p1989_p8 }
  0x18   :  { %1997 = shalt.err (!%p1994_p10)
}
  0x19   :  { %s1998_s8 = scalar_lea.vmem %s31_s27, 16  ;;  %s2002_s1 = scalar_lea.vmem %s31_s27, 32 }
  0x1a   :  { %p1999_p11 = scmp.ne.s32.totalorder %s31_s27, %s1998_s8  ;;  %p2003_p12 = scmp.lt.s32.totalorder %s31_s27, %s31_s27 }
  0x1b   :  { %p2004_p13 = scmp.lt.s32.totalorder %s2002_s1, %s1998_s8 }
  0x1d   :  { %p2005_p0 = por %p2004_p13, %p2003_p12 }
  0x1f   :  { %p2006_p1 = pnand %p2005_p0, %p1999_p11 }
  0x21   :  { %2009 = shalt.err (!%p2006_p1)
}
  0x22   :  { %33 = dma.hbm_to_vmem [thread:$0]  %s2346_s2, 16, %s31_s27, [#allocation5]  }
  0x23   :  { %2010 = dma.done.wait [#allocation3], 8192  }
  0x24   :  { %2011 = vsyncadd [#allocation3], 4294959104 }
  0x25   :  { %2012 = dma.done.wait [#allocation5], 16  }
  0x26   :  { %2013 = vsyncadd [#allocation5], 4294967280  ;;  %v1902_v0 = vld [vmem:[#allocation2 + $0x40] sm:$0xff]   ;;  %v1906_v4 = vld [vmem:[#allocation2 + $0x48] sm:$0xff]  }
  0x27   :  { %v1903_v1 = vld [vmem:[#allocation2 + $0xc0] sm:$0xff]   ;;  %1642 = vmatprep.subr.bf16.mxu0 %v1902_v0  ;;  %v1907_v5 = vld [vmem:[#allocation2 + $0xc8] sm:$0xff]   ;;  %v1910_v8 = vld [vmem:[#allocation2 + $0x50] sm:$0xff]  }
  0x28   :  { %v1904_v2 = vld [vmem:[#allocation2] sm:$0xff]   ;;  %1706 = vmatprep.subr.bf16.mxu1 %v1903_v1  ;;  %v1908_v6 = vld [vmem:[#allocation2 + $0x8] sm:$0xff]   ;;  %v1911_v9 = vld [vmem:[#allocation2 + $0xd0] sm:$0xff]  }
  0x29   :  { %v1905_v3 = vld [vmem:[#allocation2 + $0x80] sm:$0xff]   ;;  %1643 = vmatpush3.bf16.msra.mxu0 %v1904_v2  ;;  %v1909_v7 = vld [vmem:[#allocation2 + $0x88] sm:$0xff]   ;;  %v1912_v10 = vld [vmem:[#allocation2 + $0x10] sm:$0xff]  }
  0x2a   :  { %1707 = vmatpush3.bf16.msra.mxu1 %v1905_v3  ;;  %1644 = vmatprep.subr.bf16.mxu0 %v1906_v4  ;;  %v1913_v11 = vld [vmem:[#allocation2 + $0x90] sm:$0xff]   ;;  %v1914_v12 = vld [vmem:[#allocation2 + $0x58] sm:$0xff]   ;;  %v1918_v16 = vld [vmem:[#allocation2 + $0x60] sm:$0xff]  }
  0x2b   :  { %1708 = vmatprep.subr.bf16.mxu1 %v1907_v5  ;;  %v1915_v13 = vld [vmem:[#allocation2 + $0xd8] sm:$0xff]   ;;  %v1919_v17 = vld [vmem:[#allocation2 + $0xe0] sm:$0xff]   ;;  %v1922_v20 = vld [vmem:[#allocation2 + $0x68] sm:$0xff]  }
  0x2c   :  { %v1916_v14 = vld [vmem:[#allocation2 + $0x18] sm:$0xff]   ;;  %v1920_v18 = vld [vmem:[#allocation2 + $0x20] sm:$0xff]   ;;  %v1923_v21 = vld [vmem:[#allocation2 + $0xe8] sm:$0xff]  }
  0x2d   :  { %1645 = vmatpush3.bf16.msra.mxu0 %v1908_v6  ;;  %v1917_v15 = vld [vmem:[#allocation2 + $0x98] sm:$0xff]   ;;  %v1921_v19 = vld [vmem:[#allocation2 + $0xa0] sm:$0xff]   ;;  %v1924_v22 = vld [vmem:[#allocation2 + $0x28] sm:$0xff]  }
  0x2e   :  { %1709 = vmatpush3.bf16.msra.mxu1 %v1909_v7  ;;  %1646 = vmatprep.subr.bf16.mxu0 %v1910_v8  ;;  %v1925_v23 = vld [vmem:[#allocation2 + $0xa8] sm:$0xff]   ;;  %v1926_v24 = vld [vmem:[#allocation2 + $0x70] sm:$0xff]   ;;  %v1930_v28 = vld [vmem:[#allocation2 + $0x78] sm:$0xff]  }
  0x2f   :  { %1710 = vmatprep.subr.bf16.mxu1 %v1911_v9  ;;  %v1927_v25 = vld [vmem:[#allocation2 + $0xf0] sm:$0xff]   ;;  %v1931_v29 = vld [vmem:[#allocation2 + $0xf8] sm:$0xff]   ;;  %v41_v32 = vld [vmem:[%s2344_s0] sm:$0xff] }
  0x30   :  { %v1928_v26 = vld [vmem:[#allocation2 + $0x30] sm:$0xff]   ;;  %v1932_v30 = vld [vmem:[#allocation2 + $0x38] sm:$0xff]   ;;  %v45_v33 = vld [vmem:[%s2344_s0 + $0x20] sm:$0xff] }
  0x31   :  { %1647 = vmatpush3.bf16.msra.mxu0 %v1912_v10  ;;  %v1929_v27 = vld [vmem:[#allocation2 + $0xb0] sm:$0xff]   ;;  %v1933_v31 = vld [vmem:[#allocation2 + $0xb8] sm:$0xff]   ;;  %v42_v34 = vld [vmem:[%s2344_s0 + $0x8] sm:$0xff]  ;;  %v1435_v35 = vcombine.low %v41_v32, %v45_v33  ;;  %v1436_v36 = vcombine.high %v41_v32, %v45_v33 }
  0x32   :  { %1711 = vmatpush3.bf16.msra.mxu1 %v1913_v11  ;;  %1648 = vmatprep.subr.bf16.mxu0 %v1914_v12  ;;  %v46_v37 = vld [vmem:[%s2344_s0 + $0x28] sm:$0xff]  ;;  %v1934_v40 = vld [vmem:[#allocation2 + $0x140] sm:$0xff]   ;;  %v1942_v62 = vld [vmem:[#allocation2 + $0x150] sm:$0xff]  }
  0x33   :  { %1712 = vmatprep.subr.bf16.mxu1 %v1915_v13  ;;  %v1437_v38 = vcombine.low %v42_v34, %v46_v37  ;;  %v1438_v39 = vcombine.high %v42_v34, %v46_v37  ;;  %976 = vmatprep.mubr.bf16.mxu0 %v1436_v36  ;;  %v1935_v41 = vld [vmem:[#allocation2 + $0x100] sm:$0xff]   ;;  %v50_v47 = vld [vmem:[%s2344_s0 + $0x48] sm:$0xff]  ;;  %v1943_v63 = vld [vmem:[#allocation2 + $0x110] sm:$0xff]  }
  0x34   :  { %v1936_v42 = vld [vmem:[#allocation2 + $0x1c0] sm:$0xff]   ;;  %v54_v48 = vld [vmem:[%s2344_s0 + $0x68] sm:$0xff]  ;;  %v1944_v0 = vld [vmem:[#allocation2 + $0x1d0] sm:$0xff]  }
  0x35   :  { %1649 = vmatpush3.bf16.msra.mxu0 %v1916_v14  ;;  %1073 = vmatprep.mubr.bf16.mxu1 %v1438_v39  ;;  %v1937_v43 = vld [vmem:[#allocation2 + $0x180] sm:$0xff]   ;;  %v1446_v49 = vcombine.high %v50_v47, %v54_v48  ;;  %v1938_v50 = vld [vmem:[#allocation2 + $0x148] sm:$0xff]   ;;  %v1445_v53 = vcombine.low %v50_v47, %v54_v48  ;;  %v1945_v1 = vld [vmem:[#allocation2 + $0x190] sm:$0xff]  }
  0x36   :  { %1713 = vmatpush3.bf16.msra.mxu1 %v1917_v15  ;;  %1650 = vmatprep.subr.bf16.mxu0 %v1918_v16  ;;  %v49_v44 = vld [vmem:[%s2344_s0 + $0x40] sm:$0xff]  ;;  %v1939_v52 = vld [vmem:[#allocation2 + $0x108] sm:$0xff]   ;;  %v1946_v10 = vld [vmem:[#allocation2 + $0x158] sm:$0xff]  }
  0x37   :  { %1714 = vmatprep.subr.bf16.mxu1 %v1919_v17  ;;  %v53_v45 = vld [vmem:[%s2344_s0 + $0x60] sm:$0xff]  ;;  %v1940_v54 = vld [vmem:[#allocation2 + $0x1c8] sm:$0xff]   ;;  %v1947_v11 = vld [vmem:[#allocation2 + $0x118] sm:$0xff]  }
  0x38   :  { %v1444_v46 = vcombine.high %v49_v44, %v53_v45  ;;  %v1443_v51 = vcombine.low %v49_v44, %v53_v45  ;;  %v1941_v55 = vld [vmem:[#allocation2 + $0x188] sm:$0xff]   ;;  %v57_v56 = vld [vmem:[%s2344_s0 + $0x80] sm:$0xff]  ;;  %v1948_v12 = vld [vmem:[#allocation2 + $0x1d8] sm:$0xff]  }
  0x39   :  { %1651 = vmatpush3.bf16.msra.mxu0 %v1920_v18  ;;  %v61_v57 = vld [vmem:[%s2344_s0 + $0xa0] sm:$0xff]  ;;  %v58_v58 = vld [vmem:[%s2344_s0 + $0x88] sm:$0xff]  ;;  %v1949_v13 = vld [vmem:[#allocation2 + $0x198] sm:$0xff]  }
  0x3a   :  { %1715 = vmatpush3.bf16.msra.mxu1 %v1921_v19  ;;  %1652 = vmatprep.subr.bf16.mxu0 %v1922_v20  ;;  %v62_v59 = vld [vmem:[%s2344_s0 + $0xa8] sm:$0xff]  ;;  %v1452_v60 = vcombine.high %v57_v56, %v61_v57  ;;  %v1451_v2 = vcombine.low %v57_v56, %v61_v57  ;;  %v65_v3 = vld [vmem:[%s2344_s0 + $0xc0] sm:$0xff]  ;;  %v1959_v39 = vld [vmem:[#allocation2 + $0x130] sm:$0xff]  }
  0x3b   :  { %1716 = vmatprep.subr.bf16.mxu1 %v1923_v21  ;;  %v1454_v61 = vcombine.high %v58_v58, %v62_v59  ;;  %v69_v4 = vld [vmem:[%s2344_s0 + $0xe0] sm:$0xff]  ;;  %v66_v5 = vld [vmem:[%s2344_s0 + $0xc8] sm:$0xff]  ;;  %v1453_v6 = vcombine.low %v58_v58, %v62_v59  ;;  %v1963_v48 = vld [vmem:[#allocation2 + $0x138] sm:$0xff]  }
  0x3c   :  { %v1460_v7 = vcombine.high %v65_v3, %v69_v4  ;;  %v70_v8 = vld [vmem:[%s2344_s0 + $0xe8] sm:$0xff]  ;;  %v73_v14 = vld [vmem:[%s2344_s0 + $0x100] sm:$0xff]  ;;  %v1459_v19 = vcombine.low %v65_v3, %v69_v4 }
  0x3d   :  { %1653 = vmatpush3.bf16.msra.mxu0 %v1924_v22  ;;  %v1462_v9 = vcombine.high %v66_v5, %v70_v8  ;;  %v77_v15 = vld [vmem:[%s2344_s0 + $0x120] sm:$0xff]  ;;  %v74_v16 = vld [vmem:[%s2344_s0 + $0x108] sm:$0xff]  ;;  %v1461_v21 = vcombine.low %v66_v5, %v70_v8  ;;  %v52_v8 = vld [vmem:[%s2344_s0 + $0x58] sm:$0xff] }
  0x3e   :  { %1717 = vmatpush3.bf16.msra.mxu1 %v1925_v23  ;;  %1654 = vmatprep.subr.bf16.mxu0 %v1926_v24  ;;  %v78_v17 = vld [vmem:[%s2344_s0 + $0x128] sm:$0xff]  ;;  %v1950_v18 = vld [vmem:[#allocation2 + $0x160] sm:$0xff]   ;;  %v1468_v22 = vcombine.high %v73_v14, %v77_v15  ;;  %v1467_v34 = vcombine.low %v73_v14, %v77_v15  ;;  %v59_v14 = vld [vmem:[%s2344_s0 + $0x90] sm:$0xff] }
  0x3f   :  { %1718 = vmatprep.subr.bf16.mxu1 %v1927_v25  ;;  %v1951_v20 = vld [vmem:[#allocation2 + $0x120] sm:$0xff]   ;;  %v1470_v24 = vcombine.high %v74_v16, %v78_v17  ;;  %v1956_v32 = vld [vmem:[#allocation2 + $0x1e8] sm:$0xff]   ;;  %v63_v15 = vld [vmem:[%s2344_s0 + $0xb0] sm:$0xff] }
  0x40   :  { %v1952_v23 = vld [vmem:[#allocation2 + $0x1e0] sm:$0xff]   ;;  %v1957_v33 = vld [vmem:[#allocation2 + $0x1a8] sm:$0xff]  }
  0x41   :  { %1655 = vmatpush3.bf16.msra.mxu0 %v1928_v26  ;;  %v1953_v25 = vld [vmem:[#allocation2 + $0x1a0] sm:$0xff]   ;;  %v90_v44 = vld [vmem:[%s2344_s0 + $0x188] sm:$0xff] }
  0x42   :  { %1719 = vmatpush3.bf16.msra.mxu1 %v1929_v27  ;;  %1656 = vmatprep.subr.bf16.mxu0 %v1930_v28  ;;  %v81_v26 = vld [vmem:[%s2344_s0 + $0x140] sm:$0xff]  ;;  %v1954_v28 = vld [vmem:[#allocation2 + $0x168] sm:$0xff]  }
  0x43   :  { %1720 = vmatprep.subr.bf16.mxu1 %v1931_v29  ;;  %v85_v27 = vld [vmem:[%s2344_s0 + $0x160] sm:$0xff]  ;;  %v82_v29 = vld [vmem:[%s2344_s0 + $0x148] sm:$0xff] }
  0x44   :  { %v1476_v36 = vcombine.high %v81_v26, %v85_v27  ;;  %v94_v45 = vld [vmem:[%s2344_s0 + $0x1a8] sm:$0xff]  ;;  %v1475_v47 = vcombine.low %v81_v26, %v85_v27  ;;  %v1455_v26 = vcombine.low %v59_v14, %v63_v15 }
  0x45   :  { %1657 = vmatpush3.bf16.msra.mxu0 %v1932_v30  ;;  %v86_v30 = vld [vmem:[%s2344_s0 + $0x168] sm:$0xff]  ;;  %v1485_v59 = vcombine.low %v90_v44, %v94_v45 }
  0x46   :  { %1721 = vmatpush3.bf16.msra.mxu1 %v1933_v31  ;;  %1770 = vmatprep.subr.bf16.mxu0 %v1934_v40  ;;  %v1955_v31 = vld [vmem:[#allocation2 + $0x128] sm:$0xff]   ;;  %v1478_v37 = vcombine.high %v82_v29, %v86_v30  ;;  %v1960_v40 = vld [vmem:[#allocation2 + $0x1f0] sm:$0xff]  }
  0x47   :  { %1834 = vmatprep.subr.bf16.mxu1 %v1936_v42  ;;  %v93_v42 = vld [vmem:[%s2344_s0 + $0x1a0] sm:$0xff]  ;;  %v98_v56 = vld [vmem:[%s2344_s0 + $0x1c8] sm:$0xff] }
  0x48   :  { %977 = vmatmul.mubr.bf16.vlgmr.msra.gmra.mrb[0].mxu0 %v1435_v35  ;;  %v1469_v35 = vcombine.low %v74_v16, %v78_v17  ;;  %v102_v57 = vld [vmem:[%s2344_s0 + $0x1e8] sm:$0xff]  ;;  %v60_v16 = vld [vmem:[%s2344_s0 + $0x98] sm:$0xff] }
  0x49   :  { %1074 = vmatmul.mubr.bf16.vlgmr.msra.gmra.mrb[0].mxu1 %v1437_v38  ;;  %1771 = vmatpush3.bf16.msra.mxu0 %v1935_v41  ;;  %v1958_v38 = vld [vmem:[#allocation2 + $0x170] sm:$0xff]   ;;  %v89_v41 = vld [vmem:[%s2344_s0 + $0x180] sm:$0xff]  ;;  %v1493_v3 = vcombine.low %v98_v56, %v102_v57  ;;  %v64_v17 = vld [vmem:[%s2344_s0 + $0xb8] sm:$0xff] }
  0x4a   :  { %1835 = vmatpush3.bf16.msra.mxu1 %v1937_v43  ;;  %984 = vmatprep.mubr.bf16.mxu0 %v1444_v46  ;;  %v1961_v43 = vld [vmem:[#allocation2 + $0x1b0] sm:$0xff]   ;;  %v1962_v46 = vld [vmem:[#allocation2 + $0x178] sm:$0xff]   ;;  %v1483_v58 = vcombine.low %v89_v41, %v93_v42  ;;  %v1457_v27 = vcombine.low %v60_v16, %v64_v17 }
  0x4b   :  { %1081 = vmatprep.mubr.bf16.mxu1 %v1446_v49  ;;  %1772 = vmatprep.subr.bf16.mxu0 %v1938_v50  ;;  %v1477_v49 = vcombine.low %v82_v29, %v86_v30  ;;  %v1484_v50 = vcombine.high %v89_v41, %v93_v42  ;;  %v75_v30 = vld [vmem:[%s2344_s0 + $0x110] sm:$0xff]  ;;  %v88_v41 = vld [vmem:[%s2344_s0 + $0x178] sm:$0xff] }
  0x4c   :  { %1836 = vmatprep.subr.bf16.mxu1 %v1940_v54  ;;  %v97_v54 = vld [vmem:[%s2344_s0 + $0x1c0] sm:$0xff] }
  0x4d   :  { %1773 = vmatpush3.bf16.msra.mxu0 %v1939_v52  ;;  %v1486_v52 = vcombine.high %v90_v44, %v94_v45 }
  0x4e   :  { %1837 = vmatpush3.bf16.msra.mxu1 %v1941_v55  ;;  %1774 = vmatprep.subr.bf16.mxu0 %v1942_v62  ;;  %v101_v55 = vld [vmem:[%s2344_s0 + $0x1e0] sm:$0xff]  ;;  %v43_v62 = vld [vmem:[%s2344_s0 + $0x10] sm:$0xff] }
  0x4f   :  { %1838 = vmatprep.subr.bf16.mxu1 %v1944_v0  ;;  %v44_v0 = vld [vmem:[%s2344_s0 + $0x18] sm:$0xff] }
  0x50   :  { %985 = vmatmul.mubr.bf16.gmra.mrb[4].mxu0 %v1443_v51  ;;  %v1964_v51 = vld [vmem:[#allocation2 + $0x1f8] sm:$0xff]  }
  0x51   :  { %1082 = vmatmul.mubr.bf16.gmra.mrb[4].mxu1 %v1445_v53  ;;  %992 = vmatprep.mubr.bf16.mxu0 %v1452_v60  ;;  %v1965_v53 = vld [vmem:[#allocation2 + $0x1b8] sm:$0xff]   ;;  %v1492_v60 = vcombine.high %v97_v54, %v101_v55 }
  0x52   :  { %1089 = vmatprep.mubr.bf16.mxu1 %v1454_v61  ;;  %1775 = vmatpush3.bf16.msra.mxu0 %v1943_v63  ;;  %v1494_v61 = vcombine.high %v98_v56, %v102_v57  ;;  %v47_v63 = vld [vmem:[%s2344_s0 + $0x30] sm:$0xff]  ;;  %v100_v56 = vld [vmem:[%s2344_s0 + $0x1d8] sm:$0xff] }
  0x53   :  { %1839 = vmatpush3.bf16.msra.mxu1 %v1945_v1  ;;  %1776 = vmatprep.subr.bf16.mxu0 %v1946_v10  ;;  %v48_v1 = vld [vmem:[%s2344_s0 + $0x38] sm:$0xff]  ;;  %v1440_v4 = vcombine.high %v43_v62, %v47_v63  ;;  %v1439_v10 = vcombine.low %v43_v62, %v47_v63 }
  0x54   :  { %1840 = vmatprep.subr.bf16.mxu1 %v1948_v12  ;;  %v1442_v5 = vcombine.high %v44_v0, %v48_v1  ;;  %v104_v57 = vld [vmem:[%s2344_s0 + $0x1f8] sm:$0xff] }
  0x55   :  { %v1497_v63 = vcombine.low %v100_v56, %v104_v57 }
  0x56   :  { %1777 = vmatpush3.bf16.msra.mxu0 %v1947_v11  ;;  %v1441_v11 = vcombine.low %v44_v0, %v48_v1 }
  0x57   :  { %1841 = vmatpush3.bf16.msra.mxu1 %v1949_v13  ;;  %1778 = vmatprep.subr.bf16.mxu0 %v1950_v18 }
  0x58   :  { %993 = vmatmul.mubr.bf16.gmra.mrb[8].mxu0 %v1451_v2  ;;  %1842 = vmatprep.subr.bf16.mxu1 %v1952_v23  ;;  %v1491_v2 = vcombine.low %v97_v54, %v101_v55  ;;  %v71_v23 = vld [vmem:[%s2344_s0 + $0xf0] sm:$0xff] }
  0x59   :  { %1090 = vmatmul.mubr.bf16.gmra.mrb[8].mxu1 %v1453_v6  ;;  %1000 = vmatprep.mubr.bf16.mxu0 %v1460_v7  ;;  %v51_v6 = vld [vmem:[%s2344_s0 + $0x50] sm:$0xff] }
  0x5a   :  { %1097 = vmatprep.mubr.bf16.mxu1 %v1462_v9  ;;  %1779 = vmatpush3.bf16.msra.mxu0 %v1951_v20  ;;  %v55_v7 = vld [vmem:[%s2344_s0 + $0x70] sm:$0xff]  ;;  %v56_v9 = vld [vmem:[%s2344_s0 + $0x78] sm:$0xff]  ;;  %v1456_v20 = vcombine.high %v59_v14, %v63_v15 }
  0x5b   :  { %1843 = vmatpush3.bf16.msra.mxu1 %v1953_v25  ;;  %1780 = vmatprep.subr.bf16.mxu0 %v1954_v28  ;;  %v1448_v12 = vcombine.high %v51_v6, %v55_v7  ;;  %v1450_v13 = vcombine.high %v52_v8, %v56_v9  ;;  %v1447_v18 = vcombine.low %v51_v6, %v55_v7  ;;  %v72_v25 = vld [vmem:[%s2344_s0 + $0xf8] sm:$0xff]  ;;  %v99_v54 = vld [vmem:[%s2344_s0 + $0x1d0] sm:$0xff] }
  0x5c   :  { %1844 = vmatprep.subr.bf16.mxu1 %v1956_v32  ;;  %v76_v32 = vld [vmem:[%s2344_s0 + $0x118] sm:$0xff]  ;;  %v103_v55 = vld [vmem:[%s2344_s0 + $0x1f0] sm:$0xff] }
  0x5d   :  { %v1495_v62 = vcombine.low %v99_v54, %v103_v55 }
  0x5e   :  { %1781 = vmatpush3.bf16.msra.mxu0 %v1955_v31  ;;  %v79_v31 = vld [vmem:[%s2344_s0 + $0x130] sm:$0xff] }
  0x5f   :  { %1845 = vmatpush3.bf16.msra.mxu1 %v1957_v33  ;;  %1782 = vmatprep.subr.bf16.mxu0 %v1958_v38  ;;  %v80_v33 = vld [vmem:[%s2344_s0 + $0x138] sm:$0xff]  ;;  %v83_v38 = vld [vmem:[%s2344_s0 + $0x150] sm:$0xff]  ;;  %v1471_v42 = vcombine.low %v75_v30, %v79_v31 }
  0x60   :  { %1001 = vmatmul.mubr.bf16.gmra.mrb[12].mxu0 %v1459_v19  ;;  %1846 = vmatprep.subr.bf16.mxu1 %v1960_v40  ;;  %v1449_v19 = vcombine.low %v52_v8, %v56_v9  ;;  %v84_v40 = vld [vmem:[%s2344_s0 + $0x158] sm:$0xff] }
  0x61   :  { %1098 = vmatmul.mubr.bf16.gmra.mrb[12].mxu1 %v1461_v21  ;;  %1008 = vmatprep.mubr.bf16.mxu0 %v1468_v22  ;;  %v1458_v21 = vcombine.high %v60_v16, %v64_v17  ;;  %v67_v22 = vld [vmem:[%s2344_s0 + $0xd0] sm:$0xff]  ;;  %v1482_v45 = vcombine.high %v84_v40, %v88_v41 }
  0x62   :  { %1105 = vmatprep.mubr.bf16.mxu1 %v1470_v24  ;;  %1783 = vmatpush3.bf16.msra.mxu0 %v1959_v39  ;;  %v68_v24 = vld [vmem:[%s2344_s0 + $0xd8] sm:$0xff]  ;;  %v1464_v28 = vcombine.high %v67_v22, %v71_v23  ;;  %v87_v39 = vld [vmem:[%s2344_s0 + $0x170] sm:$0xff] }
  0x63   :  { %1847 = vmatpush3.bf16.msra.mxu1 %v1961_v43  ;;  %1784 = vmatprep.subr.bf16.mxu0 %v1962_v46  ;;  %v1466_v29 = vcombine.high %v68_v24, %v72_v25  ;;  %v1473_v43 = vcombine.low %v76_v32, %v80_v33  ;;  %v1480_v44 = vcombine.high %v83_v38, %v87_v39  ;;  %v91_v46 = vld [vmem:[%s2344_s0 + $0x190] sm:$0xff] }
  0x64   :  { %1848 = vmatprep.subr.bf16.mxu1 %v1964_v51  ;;  %v1481_v51 = vcombine.low %v84_v40, %v88_v41 }
  0x66   :  { %1785 = vmatpush3.bf16.msra.mxu0 %v1963_v48  ;;  %v92_v48 = vld [vmem:[%s2344_s0 + $0x198] sm:$0xff] }
  0x67   :  { %1849 = vmatpush3.bf16.msra.mxu1 %v1965_v53 }
  0x68   :  { %1009 = vmatmul.mubr.bf16.gmra.mrb[16].mxu0 %v1467_v34  ;;  %v1463_v34 = vcombine.low %v67_v22, %v71_v23 }
  0x69   :  { %1106 = vmatmul.mubr.bf16.gmra.mrb[16].mxu1 %v1469_v35  ;;  %1016 = vmatprep.mubr.bf16.mxu0 %v1476_v36  ;;  %v1465_v35 = vcombine.low %v68_v24, %v72_v25  ;;  %v1472_v36 = vcombine.high %v75_v30, %v79_v31 }
  0x6a   :  { %1113 = vmatprep.mubr.bf16.mxu1 %v1478_v37  ;;  %v1474_v37 = vcombine.high %v76_v32, %v80_v33 }
  0x70   :  { %1017 = vmatmul.mubr.bf16.gmra.mrb[20].mxu0 %v1475_v47  ;;  %v95_v47 = vld [vmem:[%s2344_s0 + $0x1b0] sm:$0xff] }
  0x71   :  { %1114 = vmatmul.mubr.bf16.gmra.mrb[20].mxu1 %v1477_v49  ;;  %1024 = vmatprep.mubr.bf16.mxu0 %v1484_v50  ;;  %v96_v49 = vld [vmem:[%s2344_s0 + $0x1b8] sm:$0xff]  ;;  %v1479_v50 = vcombine.low %v83_v38, %v87_v39 }
  0x72   :  { %1121 = vmatprep.mubr.bf16.mxu1 %v1486_v52  ;;  %v1488_v52 = vcombine.high %v91_v46, %v95_v47  ;;  %v1490_v53 = vcombine.high %v92_v48, %v96_v49 }
  0x78   :  { %1025 = vmatmul.mubr.bf16.gmra.mrb[24].mxu0 %v1483_v58  ;;  %v1487_v58 = vcombine.low %v91_v46, %v95_v47 }
  0x79   :  { %1122 = vmatmul.mubr.bf16.gmra.mrb[24].mxu1 %v1485_v59  ;;  %1032 = vmatprep.mubr.bf16.mxu0 %v1492_v60  ;;  %v1489_v59 = vcombine.low %v92_v48, %v96_v49  ;;  %v1496_v60 = vcombine.high %v99_v54, %v103_v55 }
  0x7a   :  { %1129 = vmatprep.mubr.bf16.mxu1 %v1494_v61  ;;  %v1498_v61 = vcombine.high %v100_v56, %v104_v57 }
  0x80   :  { %1033 = vmatmul.mubr.bf16.gmra.mrb[28].mxu0 %v1491_v2  ;;  %v2254_v2 = vld [vmem:[#allocation4] ss:$0 sm:$0xff] }
  0x81   :  { %1130 = vmatmul.mubr.bf16.gmra.mrb[28].mxu1 %v1493_v3  ;;  %1170 = vmatprep.mubr.bf16.mxu0 %v1440_v4 }
  0x82   :  { %1267 = vmatprep.mubr.bf16.mxu1 %v1442_v5 }
  0x88   :  { %1171 = vmatmul.mubr.bf16.vlgmr.msra.gmra.mrb[32].mxu0 %v1439_v10 }
  0x89   :  { %1268 = vmatmul.mubr.bf16.vlgmr.msra.gmra.mrb[32].mxu1 %v1441_v11  ;;  %1178 = vmatprep.mubr.bf16.mxu0 %v1448_v12 }
  0x8a   :  { %1275 = vmatprep.mubr.bf16.mxu1 %v1450_v13 }
  0x90   :  { %1179 = vmatmul.mubr.bf16.gmra.mrb[36].mxu0 %v1447_v18 }
  0x91   :  { %1276 = vmatmul.mubr.bf16.gmra.mrb[36].mxu1 %v1449_v19  ;;  %1186 = vmatprep.mubr.bf16.mxu0 %v1456_v20 }
  0x92   :  { %1283 = vmatprep.mubr.bf16.mxu1 %v1458_v21 }
  0x98   :  { %1187 = vmatmul.mubr.bf16.gmra.mrb[40].mxu0 %v1455_v26 }
  0x99   :  { %1284 = vmatmul.mubr.bf16.gmra.mrb[40].mxu1 %v1457_v27  ;;  %1194 = vmatprep.mubr.bf16.mxu0 %v1464_v28 }
  0x9a   :  { %1291 = vmatprep.mubr.bf16.mxu1 %v1466_v29 }
  0xa0   :  { %1195 = vmatmul.mubr.bf16.gmra.mrb[44].mxu0 %v1463_v34 }
  0xa1   :  { %1292 = vmatmul.mubr.bf16.gmra.mrb[44].mxu1 %v1465_v35  ;;  %1202 = vmatprep.mubr.bf16.mxu0 %v1472_v36 }
  0xa2   :  { %1299 = vmatprep.mubr.bf16.mxu1 %v1474_v37 }
  0xa8   :  { %1203 = vmatmul.mubr.bf16.gmra.mrb[48].mxu0 %v1471_v42 }
  0xa9   :  { %1300 = vmatmul.mubr.bf16.gmra.mrb[48].mxu1 %v1473_v43  ;;  %1210 = vmatprep.mubr.bf16.mxu0 %v1480_v44 }
  0xaa   :  { %1307 = vmatprep.mubr.bf16.mxu1 %v1482_v45 }
  0xb0   :  { %1211 = vmatmul.mubr.bf16.gmra.mrb[52].mxu0 %v1479_v50 }
  0xb1   :  { %1308 = vmatmul.mubr.bf16.gmra.mrb[52].mxu1 %v1481_v51  ;;  %1218 = vmatprep.mubr.bf16.mxu0 %v1488_v52 }
  0xb2   :  { %1315 = vmatprep.mubr.bf16.mxu1 %v1490_v53 }
  0xb8   :  { %1219 = vmatmul.mubr.bf16.gmra.mrb[56].mxu0 %v1487_v58 }
  0xb9   :  { %1316 = vmatmul.mubr.bf16.gmra.mrb[56].mxu1 %v1489_v59  ;;  %1226 = vmatprep.mubr.bf16.mxu0 %v1496_v60 }
  0xba   :  { %1323 = vmatprep.mubr.bf16.mxu1 %v1498_v61 }
  0xc0   :  { %1227 = vmatmul.mubr.bf16.gmra.mrb[60].mxu0 %v1495_v62 }
  0xc1   :  { %1324 = vmatmul.mubr.bf16.gmra.mrb[60].mxu1 %v1497_v63 }
 0x11b   :  { %v1658_v0 = vpop.f32.mrb[0].mxu0 }
 0x11c   :  { %v1722_v1 = vpop.f32.mrb[0].mxu1  ;;  %v1659_v3 = vpop.f32.mrb[1].mxu0 }
 0x11d   :  { %v1660_v4 = vadd.f32 %v1659_v3, %v1658_v0  ;;  %v1723_v5 = vpop.f32.mrb[1].mxu1  ;;  %v1661_v6 = vpop.f32.mrb[2].mxu0 }
 0x11e   :  { %v1724_v7 = vadd.f32 %v1723_v5, %v1722_v1  ;;  %v1725_v8 = vpop.f32.mrb[2].mxu1  ;;  %v1662_v9 = vpop.f32.mrb[3].mxu0 }
 0x11f   :  { %v979_v10 = vadd.f32 %v1660_v4, %v2254_v2  ;;  %v1663_v11 = vadd.f32 %v1662_v9, %v1661_v6  ;;  %v1726_v12 = vpop.f32.mrb[3].mxu1 }
 0x120   :  { %v1727_v13 = vadd.f32 %v1726_v12, %v1725_v8 }
 0x121   :  { %v2257_v14 = vadd.f32 %v1724_v7, %v979_v10  ;;  %v982_v15 = vadd.f32 %v1663_v11, %v2254_v2 }
 0x123   :  { %v2260_v16 = vadd.f32 %v1727_v13, %v982_v15  ;;  %v1664_v17 = vpop.f32.mrb[4].mxu0 }
 0x124   :  { %v1728_v18 = vpop.f32.mrb[4].mxu1  ;;  %v1665_v19 = vpop.f32.mrb[5].mxu0 }
 0x125   :  { %v1666_v20 = vadd.f32 %v1665_v19, %v1664_v17  ;;  %v1729_v21 = vpop.f32.mrb[5].mxu1  ;;  %v1667_v22 = vpop.f32.mrb[6].mxu0 }
 0x126   :  { %v1730_v23 = vadd.f32 %v1729_v21, %v1728_v18  ;;  %v1731_v24 = vpop.f32.mrb[6].mxu1  ;;  %v1668_v25 = vpop.f32.mrb[7].mxu0 }
 0x127   :  { %v987_v26 = vadd.f32 %v1666_v20, %v2254_v2  ;;  %v1669_v27 = vadd.f32 %v1668_v25, %v1667_v22  ;;  %v1732_v28 = vpop.f32.mrb[7].mxu1 }
 0x128   :  { %v1733_v29 = vadd.f32 %v1732_v28, %v1731_v24 }
 0x129   :  { %v2263_v30 = vadd.f32 %v1730_v23, %v987_v26  ;;  %v990_v31 = vadd.f32 %v1669_v27, %v2254_v2 }
 0x12b   :  { %v2266_v32 = vadd.f32 %v1733_v29, %v990_v31  ;;  %v1670_v33 = vpop.f32.mrb[8].mxu0 }
 0x12c   :  { %v1734_v34 = vpop.f32.mrb[8].mxu1  ;;  %v1671_v35 = vpop.f32.mrb[9].mxu0 }
 0x12d   :  { %v1672_v36 = vadd.f32 %v1671_v35, %v1670_v33  ;;  %v1735_v37 = vpop.f32.mrb[9].mxu1  ;;  %v1673_v38 = vpop.f32.mrb[10].mxu0 }
 0x12e   :  { %v1736_v39 = vadd.f32 %v1735_v37, %v1734_v34  ;;  %v1737_v40 = vpop.f32.mrb[10].mxu1  ;;  %v1674_v41 = vpop.f32.mrb[11].mxu0 }
 0x12f   :  { %v995_v42 = vadd.f32 %v1672_v36, %v2254_v2  ;;  %v1675_v43 = vadd.f32 %v1674_v41, %v1673_v38  ;;  %v1738_v44 = vpop.f32.mrb[11].mxu1 }
 0x130   :  { %v1739_v45 = vadd.f32 %v1738_v44, %v1737_v40 }
 0x131   :  { %v2269_v46 = vadd.f32 %v1736_v39, %v995_v42  ;;  %v998_v47 = vadd.f32 %v1675_v43, %v2254_v2 }
 0x133   :  { %v2272_v48 = vadd.f32 %v1739_v45, %v998_v47  ;;  %v1676_v49 = vpop.f32.mrb[12].mxu0 }
 0x134   :  { %v1740_v50 = vpop.f32.mrb[12].mxu1  ;;  %v1677_v51 = vpop.f32.mrb[13].mxu0 }
 0x135   :  { %v1678_v52 = vadd.f32 %v1677_v51, %v1676_v49  ;;  %v1741_v53 = vpop.f32.mrb[13].mxu1  ;;  %v1679_v54 = vpop.f32.mrb[14].mxu0 }
 0x136   :  { %v1742_v55 = vadd.f32 %v1741_v53, %v1740_v50  ;;  %v1743_v56 = vpop.f32.mrb[14].mxu1  ;;  %v1680_v57 = vpop.f32.mrb[15].mxu0 }
 0x137   :  { %v1003_v58 = vadd.f32 %v1678_v52, %v2254_v2  ;;  %v1681_v59 = vadd.f32 %v1680_v57, %v1679_v54  ;;  %v1744_v60 = vpop.f32.mrb[15].mxu1 }
 0x138   :  { %v1745_v61 = vadd.f32 %v1744_v60, %v1743_v56 }
 0x139   :  { %v2275_v62 = vadd.f32 %v1742_v55, %v1003_v58  ;;  %v1006_v63 = vadd.f32 %v1681_v59, %v2254_v2 }
 0x13b   :  { %v2278_v0 = vadd.f32 %v1745_v61, %v1006_v63  ;;  %v1682_v1 = vpop.f32.mrb[16].mxu0 }
 0x13c   :  { %v1746_v3 = vpop.f32.mrb[16].mxu1  ;;  %v1683_v4 = vpop.f32.mrb[17].mxu0 }
 0x13d   :  { %v1684_v5 = vadd.f32 %v1683_v4, %v1682_v1  ;;  %v1747_v6 = vpop.f32.mrb[17].mxu1  ;;  %v1685_v7 = vpop.f32.mrb[18].mxu0 }
 0x13e   :  { %v1748_v8 = vadd.f32 %v1747_v6, %v1746_v3  ;;  %v1749_v9 = vpop.f32.mrb[18].mxu1  ;;  %v1686_v10 = vpop.f32.mrb[19].mxu0 }
 0x13f   :  { %v1011_v11 = vadd.f32 %v1684_v5, %v2254_v2  ;;  %v1687_v12 = vadd.f32 %v1686_v10, %v1685_v7  ;;  %v1750_v13 = vpop.f32.mrb[19].mxu1 }
 0x140   :  { %v1751_v15 = vadd.f32 %v1750_v13, %v1749_v9 }
 0x141   :  { %v2281_v17 = vadd.f32 %v1748_v8, %v1011_v11  ;;  %v1014_v18 = vadd.f32 %v1687_v12, %v2254_v2 }
 0x143   :  { %v2284_v19 = vadd.f32 %v1751_v15, %v1014_v18  ;;  %v1688_v20 = vpop.f32.mrb[20].mxu0 }
 0x144   :  { %v1752_v21 = vpop.f32.mrb[20].mxu1  ;;  %v1689_v22 = vpop.f32.mrb[21].mxu0 }
 0x145   :  { %v1690_v23 = vadd.f32 %v1689_v22, %v1688_v20  ;;  %v1753_v24 = vpop.f32.mrb[21].mxu1  ;;  %v1691_v25 = vpop.f32.mrb[22].mxu0 }
 0x146   :  { %v1754_v26 = vadd.f32 %v1753_v24, %v1752_v21  ;;  %v1755_v27 = vpop.f32.mrb[22].mxu1  ;;  %v1692_v28 = vpop.f32.mrb[23].mxu0 }
 0x147   :  { %v1019_v29 = vadd.f32 %v1690_v23, %v2254_v2  ;;  %v1693_v31 = vadd.f32 %v1692_v28, %v1691_v25  ;;  %v1756_v33 = vpop.f32.mrb[23].mxu1 }
 0x148   :  { %v1757_v34 = vadd.f32 %v1756_v33, %v1755_v27 }
 0x149   :  { %v2287_v35 = vadd.f32 %v1754_v26, %v1019_v29  ;;  %v1022_v36 = vadd.f32 %v1693_v31, %v2254_v2 }
 0x14b   :  { %v2290_v37 = vadd.f32 %v1757_v34, %v1022_v36  ;;  %v1694_v38 = vpop.f32.mrb[24].mxu0 }
 0x14c   :  { %v1758_v39 = vpop.f32.mrb[24].mxu1  ;;  %v1695_v40 = vpop.f32.mrb[25].mxu0 }
 0x14d   :  { %v1696_v41 = vadd.f32 %v1695_v40, %v1694_v38  ;;  %v1759_v42 = vpop.f32.mrb[25].mxu1  ;;  %v1697_v43 = vpop.f32.mrb[26].mxu0 }
 0x14e   :  { %v1760_v44 = vadd.f32 %v1759_v42, %v1758_v39  ;;  %v1761_v45 = vpop.f32.mrb[26].mxu1  ;;  %v1698_v47 = vpop.f32.mrb[27].mxu0 }
 0x14f   :  { %v1027_v49 = vadd.f32 %v1696_v41, %v2254_v2  ;;  %v1699_v50 = vadd.f32 %v1698_v47, %v1697_v43  ;;  %v1762_v51 = vpop.f32.mrb[27].mxu1 }
 0x150   :  { %v1763_v52 = vadd.f32 %v1762_v51, %v1761_v45 }
 0x151   :  { %v2293_v53 = vadd.f32 %v1760_v44, %v1027_v49  ;;  %v1030_v54 = vadd.f32 %v1699_v50, %v2254_v2 }
 0x153   :  { %v2296_v55 = vadd.f32 %v1763_v52, %v1030_v54  ;;  %v1700_v56 = vpop.f32.mrb[28].mxu0 }
 0x154   :  { %v1764_v57 = vpop.f32.mrb[28].mxu1  ;;  %v1701_v58 = vpop.f32.mrb[29].mxu0 }
 0x155   :  { %v1702_v59 = vadd.f32 %v1701_v58, %v1700_v56  ;;  %v1765_v60 = vpop.f32.mrb[29].mxu1  ;;  %v1703_v61 = vpop.f32.mrb[30].mxu0 }
 0x156   :  { %v1766_v63 = vadd.f32 %v1765_v60, %v1764_v57  ;;  %v1767_v1 = vpop.f32.mrb[30].mxu1  ;;  %v1704_v3 = vpop.f32.mrb[31].mxu0 }
 0x157   :  { %v1035_v4 = vadd.f32 %v1702_v59, %v2254_v2  ;;  %v1705_v5 = vadd.f32 %v1704_v3, %v1703_v61  ;;  %v1768_v6 = vpop.f32.mrb[31].mxu1 }
 0x158   :  { %v1769_v7 = vadd.f32 %v1768_v6, %v1767_v1 }
 0x159   :  { %v2299_v8 = vadd.f32 %v1766_v63, %v1035_v4  ;;  %v1038_v9 = vadd.f32 %v1705_v5, %v2254_v2 }
 0x15b   :  { %v2302_v10 = vadd.f32 %v1769_v7, %v1038_v9  ;;  %v1786_v11 = vpop.f32.mrb[32].mxu0 }
 0x15c   :  { %v1850_v12 = vpop.f32.mrb[32].mxu1  ;;  %v1787_v13 = vpop.f32.mrb[33].mxu0 }
 0x15d   :  { %v1788_v15 = vadd.f32 %v1787_v13, %v1786_v11  ;;  %v1851_v18 = vpop.f32.mrb[33].mxu1  ;;  %v1789_v20 = vpop.f32.mrb[34].mxu0 }
 0x15e   :  { %v1852_v21 = vadd.f32 %v1851_v18, %v1850_v12  ;;  %v1853_v22 = vpop.f32.mrb[34].mxu1  ;;  %v1790_v23 = vpop.f32.mrb[35].mxu0 }
 0x15f   :  { %v1173_v24 = vadd.f32 %v1788_v15, %v2257_v14  ;;  %v1791_v25 = vadd.f32 %v1790_v23, %v1789_v20  ;;  %v1854_v26 = vpop.f32.mrb[35].mxu1 }
 0x160   :  { %v1855_v27 = vadd.f32 %v1854_v26, %v1853_v22 }
 0x161   :  { %v1270_v28 = vadd.f32 %v1852_v21, %v1173_v24  ;;  %v1176_v29 = vadd.f32 %v1791_v25, %v2260_v16 }
 0x163   :  { %v1273_v2 = vadd.f32 %v1855_v27, %v1176_v29  ;;  %v1792_v31 = vpop.f32.mrb[36].mxu0  ;;  %v1332_v36 = vmax.f32 %v1270_v28, 0.0 }
 0x164   :  { %v1856_v33 = vpop.f32.mrb[36].mxu1  ;;  %v1793_v34 = vpop.f32.mrb[37].mxu0 }
 0x165   :  { %v1333_v38 = vmax.f32 %v1273_v2, 0.0  ;;  %v1794_v39 = vadd.f32 %v1793_v34, %v1792_v31  ;;  %v1857_v40 = vpop.f32.mrb[37].mxu1  ;;  %v1795_v41 = vpop.f32.mrb[38].mxu0 }
 0x166   :  { %v1858_v42 = vadd.f32 %v1857_v40, %v1856_v33  ;;  %v1859_v43 = vpop.f32.mrb[38].mxu1  ;;  %v1796_v44 = vpop.f32.mrb[39].mxu0 }
 0x167   :  { %v1598_v45 = vpack.c.bf16 %v1333_v38, %v1332_v36  ;;  %v1181_v14 = vadd.f32 %v1794_v39, %v2263_v30  ;;  %v1797_v47 = vadd.f32 %v1796_v44, %v1795_v41  ;;  %v1860_v49 = vpop.f32.mrb[39].mxu1 }
 0x168   :  { %v1861_v50 = vadd.f32 %v1860_v49, %v1859_v43 }
 0x169   :  { %1599 = vst [vmem:[%s2347_s3] sm:$0xff] %v1598_v45   ;;  %v1278_v16 = vadd.f32 %v1858_v42, %v1181_v14  ;;  %v1184_v51 = vadd.f32 %v1797_v47, %v2266_v32 }
 0x16b   :  { %v1281_v52 = vadd.f32 %v1861_v50, %v1184_v51  ;;  %v1798_v54 = vpop.f32.mrb[40].mxu0  ;;  %v1334_v58 = vmax.f32 %v1278_v16, 0.0 }
 0x16c   :  { %v1862_v56 = vpop.f32.mrb[40].mxu1  ;;  %v1799_v57 = vpop.f32.mrb[41].mxu0 }
 0x16d   :  { %v1335_v59 = vmax.f32 %v1281_v52, 0.0  ;;  %v1800_v60 = vadd.f32 %v1799_v57, %v1798_v54  ;;  %v1863_v61 = vpop.f32.mrb[41].mxu1  ;;  %v1801_v63 = vpop.f32.mrb[42].mxu0 }
 0x16e   :  { %v1864_v30 = vadd.f32 %v1863_v61, %v1862_v56  ;;  %v1865_v1 = vpop.f32.mrb[42].mxu1  ;;  %v1802_v3 = vpop.f32.mrb[43].mxu0 }
 0x16f   :  { %v1603_v4 = vpack.c.bf16 %v1335_v59, %v1334_v58  ;;  %v1189_v5 = vadd.f32 %v1800_v60, %v2269_v46  ;;  %v1803_v6 = vadd.f32 %v1802_v3, %v1801_v63  ;;  %v1866_v7 = vpop.f32.mrb[43].mxu1 }
 0x170   :  { %v1867_v9 = vadd.f32 %v1866_v7, %v1865_v1 }
 0x171   :  { %1635 = vst [vmem:[%s2347_s3 + $0x8] sm:$0xff] %v1603_v4   ;;  %v1286_v32 = vadd.f32 %v1864_v30, %v1189_v5  ;;  %v1192_v11 = vadd.f32 %v1803_v6, %v2272_v48 }
 0x173   :  { %v1289_v12 = vadd.f32 %v1867_v9, %v1192_v11  ;;  %v1804_v13 = vpop.f32.mrb[44].mxu0  ;;  %v1336_v20 = vmax.f32 %v1286_v32, 0.0 }
 0x174   :  { %v1868_v15 = vpop.f32.mrb[44].mxu1  ;;  %v1805_v18 = vpop.f32.mrb[45].mxu0 }
 0x175   :  { %v1337_v21 = vmax.f32 %v1289_v12, 0.0  ;;  %v1806_v22 = vadd.f32 %v1805_v18, %v1804_v13  ;;  %v1869_v23 = vpop.f32.mrb[45].mxu1  ;;  %v1807_v24 = vpop.f32.mrb[46].mxu0 }
 0x176   :  { %v1870_v46 = vadd.f32 %v1869_v23, %v1868_v15  ;;  %v1871_v25 = vpop.f32.mrb[46].mxu1  ;;  %v1808_v26 = vpop.f32.mrb[47].mxu0 }
 0x177   :  { %v1608_v27 = vpack.c.bf16 %v1337_v21, %v1336_v20  ;;  %v1197_v28 = vadd.f32 %v1806_v22, %v2275_v62  ;;  %v1809_v29 = vadd.f32 %v1808_v26, %v1807_v24  ;;  %v1872_v2 = vpop.f32.mrb[47].mxu1 }
 0x178   :  { %v1873_v31 = vadd.f32 %v1872_v2, %v1871_v25 }
 0x179   :  { %1636 = vst [vmem:[%s2347_s3 + $0x10] sm:$0xff] %v1608_v27   ;;  %v1294_v48 = vadd.f32 %v1870_v46, %v1197_v28  ;;  %v1200_v33 = vadd.f32 %v1809_v29, %v2278_v0 }
 0x17b   :  { %v1297_v34 = vadd.f32 %v1873_v31, %v1200_v33  ;;  %v1810_v36 = vpop.f32.mrb[48].mxu0  ;;  %v1338_v40 = vmax.f32 %v1294_v48, 0.0 }
 0x17c   :  { %v1874_v38 = vpop.f32.mrb[48].mxu1  ;;  %v1811_v39 = vpop.f32.mrb[49].mxu0 }
 0x17d   :  { %v1339_v41 = vmax.f32 %v1297_v34, 0.0  ;;  %v1812_v42 = vadd.f32 %v1811_v39, %v1810_v36  ;;  %v1875_v43 = vpop.f32.mrb[49].mxu1  ;;  %v1813_v44 = vpop.f32.mrb[50].mxu0 }
 0x17e   :  { %v1876_v62 = vadd.f32 %v1875_v43, %v1874_v38  ;;  %v1877_v45 = vpop.f32.mrb[50].mxu1  ;;  %v1814_v14 = vpop.f32.mrb[51].mxu0 }
 0x17f   :  { %v1613_v47 = vpack.c.bf16 %v1339_v41, %v1338_v40  ;;  %v1205_v49 = vadd.f32 %v1812_v42, %v2281_v17  ;;  %v1815_v50 = vadd.f32 %v1814_v14, %v1813_v44  ;;  %v1878_v16 = vpop.f32.mrb[51].mxu1 }
 0x180   :  { %v1879_v51 = vadd.f32 %v1878_v16, %v1877_v45 }
 0x181   :  { %1637 = vst [vmem:[%s2347_s3 + $0x18] sm:$0xff] %v1613_v47   ;;  %v1302_v0 = vadd.f32 %v1876_v62, %v1205_v49  ;;  %v1208_v52 = vadd.f32 %v1815_v50, %v2284_v19 }
 0x183   :  { %v1305_v54 = vadd.f32 %v1879_v51, %v1208_v52  ;;  %v1816_v56 = vpop.f32.mrb[52].mxu0  ;;  %v1340_v59 = vmax.f32 %v1302_v0, 0.0 }
 0x184   :  { %v1880_v57 = vpop.f32.mrb[52].mxu1  ;;  %v1817_v58 = vpop.f32.mrb[53].mxu0 }
 0x185   :  { %v1341_v60 = vmax.f32 %v1305_v54, 0.0  ;;  %v1818_v61 = vadd.f32 %v1817_v58, %v1816_v56  ;;  %v1881_v63 = vpop.f32.mrb[53].mxu1  ;;  %v1819_v30 = vpop.f32.mrb[54].mxu0 }
 0x186   :  { %v1882_v17 = vadd.f32 %v1881_v63, %v1880_v57  ;;  %v1883_v1 = vpop.f32.mrb[54].mxu1  ;;  %v1820_v3 = vpop.f32.mrb[55].mxu0 }
 0x187   :  { %v1618_v4 = vpack.c.bf16 %v1341_v60, %v1340_v59  ;;  %v1213_v5 = vadd.f32 %v1818_v61, %v2287_v35  ;;  %v1821_v6 = vadd.f32 %v1820_v3, %v1819_v30  ;;  %v1884_v7 = vpop.f32.mrb[55].mxu1 }
 0x188   :  { %v1885_v9 = vadd.f32 %v1884_v7, %v1883_v1 }
 0x189   :  { %1638 = vst [vmem:[%s2347_s3 + $0x20] sm:$0xff] %v1618_v4   ;;  %v1310_v19 = vadd.f32 %v1882_v17, %v1213_v5  ;;  %v1216_v32 = vadd.f32 %v1821_v6, %v2290_v37 }
 0x18b   :  { %v1313_v11 = vadd.f32 %v1885_v9, %v1216_v32  ;;  %v1822_v12 = vpop.f32.mrb[56].mxu0  ;;  %v1342_v18 = vmax.f32 %v1310_v19, 0.0 }
 0x18c   :  { %v1886_v13 = vpop.f32.mrb[56].mxu1  ;;  %v1823_v15 = vpop.f32.mrb[57].mxu0 }
 0x18d   :  { %v1343_v20 = vmax.f32 %v1313_v11, 0.0  ;;  %v1824_v21 = vadd.f32 %v1823_v15, %v1822_v12  ;;  %v1887_v22 = vpop.f32.mrb[57].mxu1  ;;  %v1825_v23 = vpop.f32.mrb[58].mxu0 }
 0x18e   :  { %v1888_v35 = vadd.f32 %v1887_v22, %v1886_v13  ;;  %v1889_v24 = vpop.f32.mrb[58].mxu1  ;;  %v1826_v46 = vpop.f32.mrb[59].mxu0 }
 0x18f   :  { %v1623_v25 = vpack.c.bf16 %v1343_v20, %v1342_v18  ;;  %v1221_v26 = vadd.f32 %v1824_v21, %v2293_v53  ;;  %v1827_v27 = vadd.f32 %v1826_v46, %v1825_v23  ;;  %v1890_v28 = vpop.f32.mrb[59].mxu1 }
 0x190   :  { %v1891_v29 = vadd.f32 %v1890_v28, %v1889_v24 }
 0x191   :  { %1639 = vst [vmem:[%s2347_s3 + $0x28] sm:$0xff] %v1623_v25   ;;  %v1318_v37 = vadd.f32 %v1888_v35, %v1221_v26  ;;  %v1224_v2 = vadd.f32 %v1827_v27, %v2296_v55 }
 0x193   :  { %v1321_v31 = vadd.f32 %v1891_v29, %v1224_v2  ;;  %v1828_v48 = vpop.f32.mrb[60].mxu0  ;;  %v1344_v36 = vmax.f32 %v1318_v37, 0.0 }
 0x194   :  { %v1892_v33 = vpop.f32.mrb[60].mxu1  ;;  %v1829_v34 = vpop.f32.mrb[61].mxu0 }
 0x195   :  { %v1345_v38 = vmax.f32 %v1321_v31, 0.0  ;;  %v1830_v39 = vadd.f32 %v1829_v34, %v1828_v48  ;;  %v1893_v40 = vpop.f32.mrb[61].mxu1  ;;  %v1831_v41 = vpop.f32.mrb[62].mxu0 }
 0x196   :  { %v1894_v53 = vadd.f32 %v1893_v40, %v1892_v33  ;;  %v1895_v42 = vpop.f32.mrb[62].mxu1  ;;  %v1832_v43 = vpop.f32.mrb[63].mxu0 }
 0x197   :  { %v1628_v44 = vpack.c.bf16 %v1345_v38, %v1344_v36  ;;  %v1229_v62 = vadd.f32 %v1830_v39, %v2299_v8  ;;  %v1833_v45 = vadd.f32 %v1832_v43, %v1831_v41  ;;  %v1896_v14 = vpop.f32.mrb[63].mxu1 }
 0x198   :  { %v1897_v47 = vadd.f32 %v1896_v14, %v1895_v42 }
 0x199   :  { %1640 = vst [vmem:[%s2347_s3 + $0x30] sm:$0xff] %v1628_v44   ;;  %v1326_v55 = vadd.f32 %v1894_v53, %v1229_v62  ;;  %v1232_v49 = vadd.f32 %v1833_v45, %v2302_v10 }
 0x19b   :  { %v1329_v50 = vadd.f32 %v1897_v47, %v1232_v49  ;;  %v1346_v16 = vmax.f32 %v1326_v55, 0.0 }
 0x19d   :  { %v1347_v51 = vmax.f32 %v1329_v50, 0.0 }
 0x19f   :  { %v1633_v0 = vpack.c.bf16 %v1347_v51, %v1346_v16 }
 0x1a1   :  { %1641 = vst [vmem:[%s2347_s3 + $0x38] sm:$0xff] %v1633_v0  }
 0x1a2   :  { %1432 = vsyncpa [#allocation3], 1 }
 0x1a3   :  { %1433 = vsyncpa [#allocation5], 1 }

// kernel: generator_forward.7
= control target key start
LH: loop header
LB: loop body
LE: loop exit
PB: predicated region body
PF: predicated region fallthrough
CT: control target
= control target key end

     0   :  { %s2052_s12 = smov 0   ;;  %s2292_s0 = inlined_call_operand.vmem [shape: bf16[512,512], index: 0, kind: input, shape index: {}]   ;;  %s2293_s1 = inlined_call_operand.vmem [shape: bf16[512,128], index: 1, kind: input, shape index: {}]   ;;  %s2294_s2 = inlined_call_operand.vmem [shape: f32[1,128], index: 2, kind: input, shape index: {}]   ;;  %s2295_s3 = inlined_call_operand.vmem [shape: bf16[512,128], index: 3, kind: output, shape index: {}]  }
   0x1 LB: > { %s1395_s13 = sadd.s32 4294967295, %s2030_s12   ;;  %p1399_p0 = scmp.ge.s32.totalorder %s2030_s12, 1  ;;  %s2030_s12 = sphi %s2052_s12, %s13_s12  }
   0x2   : > { %p139_p1 = scmp.lt.s32.totalorder %s2030_s12, 3 }
   0x4   : > { %p140_p2 = pnand %p1399_p0, %p139_p1 }
   0x5   : > { %v1896_v0 = vld [vmem:[%s2293_s1 + $0x40] sm:$0xff] (!%p140_p2)   ;;  %v1900_v4 = vld [vmem:[%s2293_s1 + $0x48] sm:$0xff] (!%p140_p2)   ;;  %v1904_v8 = vld [vmem:[%s2293_s1 + $0x50] sm:$0xff] (!%p140_p2)   ;;  %s1400_s21 = sshll.u32 (!%p140_p2), %s1395_s13, 5 }
   0x6   : > { %143 = sbr.rel (%p140_p2) target bundleno = 385 (0x181), region = 32  ;;  %v1897_v1 = vld [vmem:[%s2293_s1 + $0xc0] sm:$0xff] (!%p140_p2)   ;;  %1664 = vmatprep.subr.bf16.mxu0 (!%p140_p2), %v1896_v0  ;;  %v1901_v5 = vld [vmem:[%s2293_s1 + $0xc8] sm:$0xff] (!%p140_p2)   ;;  %v1905_v9 = vld [vmem:[%s2293_s1 + $0xd0] sm:$0xff] (!%p140_p2)   ;;  %p165_p3 = scmp.lt.s32.totalorder (!%p140_p2), %s1400_s21, 63 }
   0x7   : > { %v1898_v2 = vld [vmem:[%s2293_s1] sm:$0xff] (!%p140_p2)   ;;  %1776 = vmatprep.subr.bf16.mxu1 (!%p140_p2), %v1897_v1  ;;  %v1902_v6 = vld [vmem:[%s2293_s1 + $0x8] sm:$0xff] (!%p140_p2)   ;;  %v1906_v10 = vld [vmem:[%s2293_s1 + $0x10] sm:$0xff] (!%p140_p2)  }
   0x8   : > { %v1899_v3 = vld [vmem:[%s2293_s1 + $0x80] sm:$0xff] (!%p140_p2)   ;;  %1665 = vmatpush3.bf16.msra.mxu0 (!%p140_p2), %v1898_v2  ;;  %v1903_v7 = vld [vmem:[%s2293_s1 + $0x88] sm:$0xff] (!%p140_p2)   ;;  %v1907_v11 = vld [vmem:[%s2293_s1 + $0x90] sm:$0xff] (!%p140_p2)  }
   0x9   : > { %1777 = vmatpush3.bf16.msra.mxu1 (!%p140_p2), %v1899_v3  ;;  %1666 = vmatprep.subr.bf16.mxu0 (!%p140_p2), %v1900_v4  ;;  %v1908_v12 = vld [vmem:[%s2293_s1 + $0x58] sm:$0xff] (!%p140_p2)   ;;  %v1912_v16 = vld [vmem:[%s2293_s1 + $0x60] sm:$0xff] (!%p140_p2)   ;;  %v1916_v20 = vld [vmem:[%s2293_s1 + $0x68] sm:$0xff] (!%p140_p2)  }
   0xa   : > { %1778 = vmatprep.subr.bf16.mxu1 (!%p140_p2), %v1901_v5  ;;  %v1909_v13 = vld [vmem:[%s2293_s1 + $0xd8] sm:$0xff] (!%p140_p2)   ;;  %v1913_v17 = vld [vmem:[%s2293_s1 + $0xe0] sm:$0xff] (!%p140_p2)   ;;  %v1917_v21 = vld [vmem:[%s2293_s1 + $0xe8] sm:$0xff] (!%p140_p2)  }
   0xb   : > { %v1910_v14 = vld [vmem:[%s2293_s1 + $0x18] sm:$0xff] (!%p140_p2)   ;;  %v1914_v18 = vld [vmem:[%s2293_s1 + $0x20] sm:$0xff] (!%p140_p2)   ;;  %v1918_v22 = vld [vmem:[%s2293_s1 + $0x28] sm:$0xff] (!%p140_p2)  }
   0xc   : > { %1667 = vmatpush3.bf16.msra.mxu0 (!%p140_p2), %v1902_v6  ;;  %v1911_v15 = vld [vmem:[%s2293_s1 + $0x98] sm:$0xff] (!%p140_p2)   ;;  %v1915_v19 = vld [vmem:[%s2293_s1 + $0xa0] sm:$0xff] (!%p140_p2)   ;;  %v1919_v23 = vld [vmem:[%s2293_s1 + $0xa8] sm:$0xff] (!%p140_p2)  }
   0xd   : > { %1779 = vmatpush3.bf16.msra.mxu1 %v1903_v7  ;;  %1668 = vmatprep.subr.bf16.mxu0 %v1904_v8  ;;  %s2297_s21 = smov (!%p165_p3, %s1400_s21), 63  ;;  %v1920_v24 = vld [vmem:[%s2293_s1 + $0x70] sm:$0xff]   ;;  %v1924_v28 = vld [vmem:[%s2293_s1 + $0x78] sm:$0xff]  }
   0xe   : > { %1780 = vmatprep.subr.bf16.mxu1 %v1905_v9  ;;  %v1921_v25 = vld [vmem:[%s2293_s1 + $0xf0] sm:$0xff]   ;;  %s1536_s18 = sshll.u32 %s2297_s21, 4  ;;  %v1925_v29 = vld [vmem:[%s2293_s1 + $0xf8] sm:$0xff]   ;;  %s1404_s7 = sshll.u32 %s2297_s21, 2 }
   0xf   : > { %v1922_v26 = vld [vmem:[%s2293_s1 + $0x30] sm:$0xff]   ;;  %s2158_s28 = scalar_lea.vmem %s2292_s0, %s1536_s18  ;;  %v1926_v30 = vld [vmem:[%s2293_s1 + $0x38] sm:$0xff]   ;;  %s2241_s10 = scalar_lea.vmem %s2295_s3, %s1404_s7 }
  0x10   : > { %1669 = vmatpush3.bf16.msra.mxu0 %v1906_v10  ;;  %v1923_v27 = vld [vmem:[%s2293_s1 + $0xb0] sm:$0xff]   ;;  %v1927_v31 = vld [vmem:[%s2293_s1 + $0xb8] sm:$0xff]  }
  0x11   : > { %1781 = vmatpush3.bf16.msra.mxu1 %v1907_v11  ;;  %1670 = vmatprep.subr.bf16.mxu0 %v1908_v12  ;;  %v1928_v32 = vld [vmem:[%s2158_s28] ss:$16 sps:$4 sm:$0xff]   ;;  %v1930_v33 = vld [vmem:[%s2158_s28 + $0x4] ss:$16 sps:$4 sm:$0xff]   ;;  %v1931_v34 = vld [vmem:[%s2158_s28 + $0x8] ss:$16 sps:$4 sm:$0xff]  }
  0x12   : > { %1782 = vmatprep.subr.bf16.mxu1 %v1909_v13  ;;  %v1933_v35 = vld [vmem:[%s2158_s28 + $0xc] ss:$16 sps:$4 sm:$0xff]   ;;  %857 = vmatprep.mubr.bf16.mxu0 %v1930_v33  ;;  %v1934_v36 = vld [vmem:[%s2158_s28 + $0x24] ss:$16 sps:$4 sm:$0xff]   ;;  %v1938_v38 = vld [vmem:[%s2158_s28 + $0x20] ss:$16 sps:$4 sm:$0xff]  }
  0x13   : > { %1018 = vmatprep.mubr.bf16.mxu1 %v1933_v35  ;;  %v1936_v37 = vld [vmem:[%s2158_s28 + $0x2c] ss:$16 sps:$4 sm:$0xff]   ;;  %v1939_v39 = vld [vmem:[%s2158_s28 + $0x28] ss:$16 sps:$4 sm:$0xff]   ;;  %v1940_v40 = vld [vmem:[%s2158_s28 + $0x44] ss:$16 sps:$4 sm:$0xff]  }
  0x14   : > { %1671 = vmatpush3.bf16.msra.mxu0 %v1910_v14  ;;  %v1942_v41 = vld [vmem:[%s2158_s28 + $0x4c] ss:$16 sps:$4 sm:$0xff]   ;;  %v1944_v42 = vld [vmem:[%s2158_s28 + $0x40] ss:$16 sps:$4 sm:$0xff]   ;;  %v1945_v43 = vld [vmem:[%s2158_s28 + $0x48] ss:$16 sps:$4 sm:$0xff]  }
  0x15   : > { %1783 = vmatpush3.bf16.msra.mxu1 %v1911_v15  ;;  %1672 = vmatprep.subr.bf16.mxu0 %v1912_v16  ;;  %v1946_v44 = vld [vmem:[%s2158_s28 + $0x64] ss:$16 sps:$4 sm:$0xff]   ;;  %v1948_v45 = vld [vmem:[%s2158_s28 + $0x6c] ss:$16 sps:$4 sm:$0xff]   ;;  %v1950_v46 = vld [vmem:[%s2158_s28 + $0x60] ss:$16 sps:$4 sm:$0xff]  }
  0x16   : > { %1784 = vmatprep.subr.bf16.mxu1 %v1913_v17  ;;  %v1951_v47 = vld [vmem:[%s2158_s28 + $0x68] ss:$16 sps:$4 sm:$0xff]   ;;  %v1952_v48 = vld [vmem:[%s2158_s28 + $0x84] ss:$16 sps:$4 sm:$0xff]   ;;  %v1954_v49 = vld [vmem:[%s2158_s28 + $0x8c] ss:$16 sps:$4 sm:$0xff]  }
  0x17   : > { %v1956_v50 = vld [vmem:[%s2158_s28 + $0x80] ss:$16 sps:$4 sm:$0xff]   ;;  %v1957_v51 = vld [vmem:[%s2158_s28 + $0x88] ss:$16 sps:$4 sm:$0xff]   ;;  %v1958_v52 = vld [vmem:[%s2158_s28 + $0xa4] ss:$16 sps:$4 sm:$0xff]  }
  0x18   : > { %1673 = vmatpush3.bf16.msra.mxu0 %v1914_v18  ;;  %v1960_v53 = vld [vmem:[%s2158_s28 + $0xac] ss:$16 sps:$4 sm:$0xff]   ;;  %v1962_v54 = vld [vmem:[%s2158_s28 + $0xa0] ss:$16 sps:$4 sm:$0xff]   ;;  %v1963_v55 = vld [vmem:[%s2158_s28 + $0xa8] ss:$16 sps:$4 sm:$0xff]  }
  0x19   : > { %1785 = vmatpush3.bf16.msra.mxu1 %v1915_v19  ;;  %1674 = vmatprep.subr.bf16.mxu0 %v1916_v20  ;;  %v1964_v56 = vld [vmem:[%s2158_s28 + $0xc4] ss:$16 sps:$4 sm:$0xff]   ;;  %v1966_v57 = vld [vmem:[%s2158_s28 + $0xcc] ss:$16 sps:$4 sm:$0xff]   ;;  %v1968_v58 = vld [vmem:[%s2158_s28 + $0xc0] ss:$16 sps:$4 sm:$0xff]  }
  0x1a   : > { %1786 = vmatprep.subr.bf16.mxu1 %v1917_v21  ;;  %v1969_v59 = vld [vmem:[%s2158_s28 + $0xc8] ss:$16 sps:$4 sm:$0xff]   ;;  %v1970_v60 = vld [vmem:[%s2158_s28 + $0xe4] ss:$16 sps:$4 sm:$0xff]   ;;  %v1972_v61 = vld [vmem:[%s2158_s28 + $0xec] ss:$16 sps:$4 sm:$0xff]  }
  0x1b   : > { %v1974_v62 = vld [vmem:[%s2158_s28 + $0xe0] ss:$16 sps:$4 sm:$0xff]   ;;  %v1975_v63 = vld [vmem:[%s2158_s28 + $0xe8] ss:$16 sps:$4 sm:$0xff]   ;;  %v1976_v0 = vld [vmem:[%s2158_s28 + $0x104] ss:$16 sps:$4 sm:$0xff]  }
  0x1c   : > { %1675 = vmatpush3.bf16.msra.mxu0 %v1918_v22  ;;  %v1978_v1 = vld [vmem:[%s2158_s28 + $0x10c] ss:$16 sps:$4 sm:$0xff]   ;;  %v1980_v2 = vld [vmem:[%s2158_s28 + $0x100] ss:$16 sps:$4 sm:$0xff]   ;;  %v1981_v3 = vld [vmem:[%s2158_s28 + $0x108] ss:$16 sps:$4 sm:$0xff]  }
  0x1d   : > { %1787 = vmatpush3.bf16.msra.mxu1 %v1919_v23  ;;  %1676 = vmatprep.subr.bf16.mxu0 %v1920_v24  ;;  %v1982_v4 = vld [vmem:[%s2158_s28 + $0x124] ss:$16 sps:$4 sm:$0xff]   ;;  %v1984_v5 = vld [vmem:[%s2158_s28 + $0x12c] ss:$16 sps:$4 sm:$0xff]   ;;  %v1986_v6 = vld [vmem:[%s2158_s28 + $0x120] ss:$16 sps:$4 sm:$0xff]  }
  0x1e   : > { %1788 = vmatprep.subr.bf16.mxu1 %v1921_v25  ;;  %v1987_v7 = vld [vmem:[%s2158_s28 + $0x128] ss:$16 sps:$4 sm:$0xff]   ;;  %v1988_v8 = vld [vmem:[%s2158_s28 + $0x144] ss:$16 sps:$4 sm:$0xff]   ;;  %v1990_v9 = vld [vmem:[%s2158_s28 + $0x14c] ss:$16 sps:$4 sm:$0xff]  }
  0x1f   : > { %v1992_v10 = vld [vmem:[%s2158_s28 + $0x140] ss:$16 sps:$4 sm:$0xff]   ;;  %v1993_v11 = vld [vmem:[%s2158_s28 + $0x148] ss:$16 sps:$4 sm:$0xff]   ;;  %v1994_v12 = vld [vmem:[%s2158_s28 + $0x164] ss:$16 sps:$4 sm:$0xff]  }
  0x20   : > { %1677 = vmatpush3.bf16.msra.mxu0 %v1922_v26  ;;  %v1996_v13 = vld [vmem:[%s2158_s28 + $0x16c] ss:$16 sps:$4 sm:$0xff]   ;;  %v1998_v14 = vld [vmem:[%s2158_s28 + $0x160] ss:$16 sps:$4 sm:$0xff]   ;;  %v1999_v15 = vld [vmem:[%s2158_s28 + $0x168] ss:$16 sps:$4 sm:$0xff]  }
  0x21   : > { %1789 = vmatpush3.bf16.msra.mxu1 %v1923_v27  ;;  %1678 = vmatprep.subr.bf16.mxu0 %v1924_v28  ;;  %v2000_v16 = vld [vmem:[%s2158_s28 + $0x184] ss:$16 sps:$4 sm:$0xff]   ;;  %v2002_v17 = vld [vmem:[%s2158_s28 + $0x18c] ss:$16 sps:$4 sm:$0xff]   ;;  %v2004_v18 = vld [vmem:[%s2158_s28 + $0x180] ss:$16 sps:$4 sm:$0xff]  }
  0x22   : > { %1790 = vmatprep.subr.bf16.mxu1 %v1925_v29  ;;  %v2005_v19 = vld [vmem:[%s2158_s28 + $0x188] ss:$16 sps:$4 sm:$0xff]   ;;  %v2006_v20 = vld [vmem:[%s2158_s28 + $0x1a4] ss:$16 sps:$4 sm:$0xff]   ;;  %v2008_v21 = vld [vmem:[%s2158_s28 + $0x1ac] ss:$16 sps:$4 sm:$0xff]  }
  0x23   : > { %v2010_v22 = vld [vmem:[%s2158_s28 + $0x1a0] ss:$16 sps:$4 sm:$0xff]   ;;  %v2011_v23 = vld [vmem:[%s2158_s28 + $0x1a8] ss:$16 sps:$4 sm:$0xff]   ;;  %v2012_v24 = vld [vmem:[%s2158_s28 + $0x1c4] ss:$16 sps:$4 sm:$0xff]  }
  0x24   : > { %1679 = vmatpush3.bf16.msra.mxu0 %v1926_v30  ;;  %v2014_v25 = vld [vmem:[%s2158_s28 + $0x1cc] ss:$16 sps:$4 sm:$0xff]   ;;  %v2016_v26 = vld [vmem:[%s2158_s28 + $0x1c0] ss:$16 sps:$4 sm:$0xff]   ;;  %v2017_v27 = vld [vmem:[%s2158_s28 + $0x1c8] ss:$16 sps:$4 sm:$0xff]  }
  0x25   : > { %1791 = vmatpush3.bf16.msra.mxu1 %v1927_v31  ;;  %v2018_v28 = vld [vmem:[%s2158_s28 + $0x1e4] ss:$16 sps:$4 sm:$0xff]   ;;  %v2020_v29 = vld [vmem:[%s2158_s28 + $0x1ec] ss:$16 sps:$4 sm:$0xff]   ;;  %v2022_v30 = vld [vmem:[%s2158_s28 + $0x1e0] ss:$16 sps:$4 sm:$0xff]  }
  0x26   : > { %v2023_v31 = vld [vmem:[%s2158_s28 + $0x1e8] ss:$16 sps:$4 sm:$0xff]  }
  0x27   : > { %858 = vmatmul.mubr.bf16.vlgmr.msra.gmra.mrb[0].mxu0 %v1928_v32 }
  0x28   : > { %1019 = vmatmul.mubr.bf16.vlgmr.msra.gmra.mrb[0].mxu1 %v1931_v34  ;;  %865 = vmatprep.mubr.bf16.mxu0 %v1934_v36  ;;  %v2233_v34 = vld [vmem:[%s2294_s2] ss:$0 sm:$0xff] }
  0x29   : > { %1026 = vmatprep.mubr.bf16.mxu1 %v1936_v37 }
  0x2f   : > { %866 = vmatmul.mubr.bf16.gmra.mrb[4].mxu0 %v1938_v38 }
  0x30   : > { %1027 = vmatmul.mubr.bf16.gmra.mrb[4].mxu1 %v1939_v39  ;;  %873 = vmatprep.mubr.bf16.mxu0 %v1940_v40 }
  0x31   : > { %1034 = vmatprep.mubr.bf16.mxu1 %v1942_v41 }
  0x37   : > { %874 = vmatmul.mubr.bf16.gmra.mrb[8].mxu0 %v1944_v42 }
  0x38   : > { %1035 = vmatmul.mubr.bf16.gmra.mrb[8].mxu1 %v1945_v43  ;;  %881 = vmatprep.mubr.bf16.mxu0 %v1946_v44 }
  0x39   : > { %1042 = vmatprep.mubr.bf16.mxu1 %v1948_v45 }
  0x3f   : > { %882 = vmatmul.mubr.bf16.gmra.mrb[12].mxu0 %v1950_v46 }
  0x40   : > { %1043 = vmatmul.mubr.bf16.gmra.mrb[12].mxu1 %v1951_v47  ;;  %889 = vmatprep.mubr.bf16.mxu0 %v1952_v48 }
  0x41   : > { %1050 = vmatprep.mubr.bf16.mxu1 %v1954_v49 }
  0x47   : > { %890 = vmatmul.mubr.bf16.gmra.mrb[16].mxu0 %v1956_v50 }
  0x48   : > { %1051 = vmatmul.mubr.bf16.gmra.mrb[16].mxu1 %v1957_v51  ;;  %897 = vmatprep.mubr.bf16.mxu0 %v1958_v52 }
  0x49   : > { %1058 = vmatprep.mubr.bf16.mxu1 %v1960_v53 }
  0x4f   : > { %898 = vmatmul.mubr.bf16.gmra.mrb[20].mxu0 %v1962_v54 }
  0x50   : > { %1059 = vmatmul.mubr.bf16.gmra.mrb[20].mxu1 %v1963_v55  ;;  %905 = vmatprep.mubr.bf16.mxu0 %v1964_v56 }
  0x51   : > { %1066 = vmatprep.mubr.bf16.mxu1 %v1966_v57 }
  0x57   : > { %906 = vmatmul.mubr.bf16.gmra.mrb[24].mxu0 %v1968_v58 }
  0x58   : > { %1067 = vmatmul.mubr.bf16.gmra.mrb[24].mxu1 %v1969_v59  ;;  %913 = vmatprep.mubr.bf16.mxu0 %v1970_v60 }
  0x59   : > { %1074 = vmatprep.mubr.bf16.mxu1 %v1972_v61 }
  0x5f   : > { %914 = vmatmul.mubr.bf16.gmra.mrb[28].mxu0 %v1974_v62 }
  0x60   : > { %1075 = vmatmul.mubr.bf16.gmra.mrb[28].mxu1 %v1975_v63  ;;  %921 = vmatprep.mubr.bf16.mxu0 %v1976_v0 }
  0x61   : > { %1082 = vmatprep.mubr.bf16.mxu1 %v1978_v1 }
  0x67   : > { %922 = vmatmul.mubr.bf16.gmra.mrb[32].mxu0 %v1980_v2 }
  0x68   : > { %1083 = vmatmul.mubr.bf16.gmra.mrb[32].mxu1 %v1981_v3  ;;  %929 = vmatprep.mubr.bf16.mxu0 %v1982_v4 }
  0x69   : > { %1090 = vmatprep.mubr.bf16.mxu1 %v1984_v5 }
  0x6f   : > { %930 = vmatmul.mubr.bf16.gmra.mrb[36].mxu0 %v1986_v6 }
  0x70   : > { %1091 = vmatmul.mubr.bf16.gmra.mrb[36].mxu1 %v1987_v7  ;;  %937 = vmatprep.mubr.bf16.mxu0 %v1988_v8 }
  0x71   : > { %1098 = vmatprep.mubr.bf16.mxu1 %v1990_v9 }
  0x77   : > { %938 = vmatmul.mubr.bf16.gmra.mrb[40].mxu0 %v1992_v10 }
  0x78   : > { %1099 = vmatmul.mubr.bf16.gmra.mrb[40].mxu1 %v1993_v11  ;;  %945 = vmatprep.mubr.bf16.mxu0 %v1994_v12 }
  0x79   : > { %1106 = vmatprep.mubr.bf16.mxu1 %v1996_v13 }
  0x7f   : > { %946 = vmatmul.mubr.bf16.gmra.mrb[44].mxu0 %v1998_v14 }
  0x80   : > { %1107 = vmatmul.mubr.bf16.gmra.mrb[44].mxu1 %v1999_v15  ;;  %953 = vmatprep.mubr.bf16.mxu0 %v2000_v16 }
  0x81   : > { %1114 = vmatprep.mubr.bf16.mxu1 %v2002_v17 }
  0x87   : > { %954 = vmatmul.mubr.bf16.gmra.mrb[48].mxu0 %v2004_v18 }
  0x88   : > { %1115 = vmatmul.mubr.bf16.gmra.mrb[48].mxu1 %v2005_v19  ;;  %961 = vmatprep.mubr.bf16.mxu0 %v2006_v20 }
  0x89   : > { %1122 = vmatprep.mubr.bf16.mxu1 %v2008_v21 }
  0x8f   : > { %962 = vmatmul.mubr.bf16.gmra.mrb[52].mxu0 %v2010_v22 }
  0x90   : > { %1123 = vmatmul.mubr.bf16.gmra.mrb[52].mxu1 %v2011_v23  ;;  %969 = vmatprep.mubr.bf16.mxu0 %v2012_v24 }
  0x91   : > { %1130 = vmatprep.mubr.bf16.mxu1 %v2014_v25 }
  0x97   : > { %970 = vmatmul.mubr.bf16.gmra.mrb[56].mxu0 %v2016_v26 }
  0x98   : > { %1131 = vmatmul.mubr.bf16.gmra.mrb[56].mxu1 %v2017_v27  ;;  %977 = vmatprep.mubr.bf16.mxu0 %v2018_v28 }
  0x99   : > { %1138 = vmatprep.mubr.bf16.mxu1 %v2020_v29 }
  0x9f   : > { %978 = vmatmul.mubr.bf16.gmra.mrb[60].mxu0 %v2022_v30 }
  0xa0   : > { %1139 = vmatmul.mubr.bf16.gmra.mrb[60].mxu1 %v2023_v31 }
  0xfa   : > { %v1680_v32 = vpop.f32.mrb[0].mxu0 }
  0xfb   : > { %v1792_v33 = vpop.f32.mrb[0].mxu1  ;;  %v1681_v35 = vpop.f32.mrb[1].mxu0 }
  0xfc   : > { %v1682_v36 = vadd.f32 %v1681_v35, %v1680_v32  ;;  %v1793_v37 = vpop.f32.mrb[1].mxu1  ;;  %v1683_v38 = vpop.f32.mrb[2].mxu0 }
  0xfd   : > { %v1794_v39 = vadd.f32 %v1793_v37, %v1792_v33  ;;  %v1795_v40 = vpop.f32.mrb[2].mxu1  ;;  %v1684_v41 = vpop.f32.mrb[3].mxu0 }
  0xfe   : > { %v860_v42 = vadd.f32 %v1682_v36, %v2233_v34  ;;  %v1685_v43 = vadd.f32 %v1684_v41, %v1683_v38  ;;  %v1796_v44 = vpop.f32.mrb[3].mxu1 }
  0xff   : > { %v1797_v45 = vadd.f32 %v1796_v44, %v1795_v40 }
 0x100   : > { %v1021_v46 = vadd.f32 %v1794_v39, %v860_v42  ;;  %v863_v47 = vadd.f32 %v1685_v43, %v2233_v34 }
 0x102   : > { %v1024_v48 = vadd.f32 %v1797_v45, %v863_v47  ;;  %v1686_v49 = vpop.f32.mrb[4].mxu0  ;;  %v1147_v52 = vmax.f32 %v1021_v46, 0.0 }
 0x103   : > { %v1798_v50 = vpop.f32.mrb[4].mxu1  ;;  %v1687_v51 = vpop.f32.mrb[5].mxu0 }
 0x104   : > { %v1148_v53 = vmax.f32 %v1024_v48, 0.0  ;;  %v1688_v54 = vadd.f32 %v1687_v51, %v1686_v49  ;;  %v1799_v55 = vpop.f32.mrb[5].mxu1  ;;  %v1689_v56 = vpop.f32.mrb[6].mxu0 }
 0x105   : > { %v1800_v57 = vadd.f32 %v1799_v55, %v1798_v50  ;;  %v1801_v58 = vpop.f32.mrb[6].mxu1  ;;  %v1690_v59 = vpop.f32.mrb[7].mxu0 }
 0x106   : > { %v1572_v60 = vpack.c.bf16 %v1148_v53, %v1147_v52  ;;  %v868_v61 = vadd.f32 %v1688_v54, %v2233_v34  ;;  %v1691_v62 = vadd.f32 %v1690_v59, %v1689_v56  ;;  %v1802_v63 = vpop.f32.mrb[7].mxu1 }
 0x107   : > { %v1803_v0 = vadd.f32 %v1802_v63, %v1801_v58 }
 0x108   : > { %1573 = vst [vmem:[%s2241_s10] sm:$0xff] %v1572_v60   ;;  %v1029_v1 = vadd.f32 %v1800_v57, %v868_v61  ;;  %v871_v2 = vadd.f32 %v1691_v62, %v2233_v34 }
 0x10a   : > { %v1032_v3 = vadd.f32 %v1803_v0, %v871_v2  ;;  %v1692_v4 = vpop.f32.mrb[8].mxu0  ;;  %v1149_v7 = vmax.f32 %v1029_v1, 0.0 }
 0x10b   : > { %v1804_v5 = vpop.f32.mrb[8].mxu1  ;;  %v1693_v6 = vpop.f32.mrb[9].mxu0 }
 0x10c   : > { %v1150_v8 = vmax.f32 %v1032_v3, 0.0  ;;  %v1694_v9 = vadd.f32 %v1693_v6, %v1692_v4  ;;  %v1805_v10 = vpop.f32.mrb[9].mxu1  ;;  %v1695_v11 = vpop.f32.mrb[10].mxu0 }
 0x10d   : > { %v1806_v12 = vadd.f32 %v1805_v10, %v1804_v5  ;;  %v1807_v13 = vpop.f32.mrb[10].mxu1  ;;  %v1696_v14 = vpop.f32.mrb[11].mxu0 }
 0x10e   : > { %v1577_v15 = vpack.c.bf16 %v1150_v8, %v1149_v7  ;;  %v876_v16 = vadd.f32 %v1694_v9, %v2233_v34  ;;  %v1697_v17 = vadd.f32 %v1696_v14, %v1695_v11  ;;  %v1808_v18 = vpop.f32.mrb[11].mxu1 }
 0x10f   : > { %v1809_v19 = vadd.f32 %v1808_v18, %v1807_v13 }
 0x110   : > { %1649 = vst [vmem:[%s2241_s10 + $0x8] sm:$0xff] %v1577_v15   ;;  %v1037_v20 = vadd.f32 %v1806_v12, %v876_v16  ;;  %v879_v21 = vadd.f32 %v1697_v17, %v2233_v34 }
 0x112   : > { %v1040_v22 = vadd.f32 %v1809_v19, %v879_v21  ;;  %v1698_v23 = vpop.f32.mrb[12].mxu0  ;;  %v1151_v26 = vmax.f32 %v1037_v20, 0.0 }
 0x113   : > { %v1810_v24 = vpop.f32.mrb[12].mxu1  ;;  %v1699_v25 = vpop.f32.mrb[13].mxu0 }
 0x114   : > { %v1152_v27 = vmax.f32 %v1040_v22, 0.0  ;;  %v1700_v28 = vadd.f32 %v1699_v25, %v1698_v23  ;;  %v1811_v29 = vpop.f32.mrb[13].mxu1  ;;  %v1701_v30 = vpop.f32.mrb[14].mxu0 }
 0x115   : > { %v1812_v31 = vadd.f32 %v1811_v29, %v1810_v24  ;;  %v1813_v32 = vpop.f32.mrb[14].mxu1  ;;  %v1702_v33 = vpop.f32.mrb[15].mxu0 }
 0x116   : > { %v1582_v35 = vpack.c.bf16 %v1152_v27, %v1151_v26  ;;  %v884_v36 = vadd.f32 %v1700_v28, %v2233_v34  ;;  %v1703_v37 = vadd.f32 %v1702_v33, %v1701_v30  ;;  %v1814_v38 = vpop.f32.mrb[15].mxu1 }
 0x117   : > { %v1815_v39 = vadd.f32 %v1814_v38, %v1813_v32 }
 0x118   : > { %1650 = vst [vmem:[%s2241_s10 + $0x10] sm:$0xff] %v1582_v35   ;;  %v1045_v40 = vadd.f32 %v1812_v31, %v884_v36  ;;  %v887_v41 = vadd.f32 %v1703_v37, %v2233_v34 }
 0x11a   : > { %v1048_v42 = vadd.f32 %v1815_v39, %v887_v41  ;;  %v1704_v43 = vpop.f32.mrb[16].mxu0  ;;  %v1153_v46 = vmax.f32 %v1045_v40, 0.0 }
 0x11b   : > { %v1816_v44 = vpop.f32.mrb[16].mxu1  ;;  %v1705_v45 = vpop.f32.mrb[17].mxu0 }
 0x11c   : > { %v1154_v47 = vmax.f32 %v1048_v42, 0.0  ;;  %v1706_v48 = vadd.f32 %v1705_v45, %v1704_v43  ;;  %v1817_v49 = vpop.f32.mrb[17].mxu1  ;;  %v1707_v50 = vpop.f32.mrb[18].mxu0 }
 0x11d   : > { %v1818_v51 = vadd.f32 %v1817_v49, %v1816_v44  ;;  %v1819_v52 = vpop.f32.mrb[18].mxu1  ;;  %v1708_v53 = vpop.f32.mrb[19].mxu0 }
 0x11e   : > { %v1587_v54 = vpack.c.bf16 %v1154_v47, %v1153_v46  ;;  %v892_v55 = vadd.f32 %v1706_v48, %v2233_v34  ;;  %v1709_v56 = vadd.f32 %v1708_v53, %v1707_v50  ;;  %v1820_v57 = vpop.f32.mrb[19].mxu1 }
 0x11f   : > { %v1821_v58 = vadd.f32 %v1820_v57, %v1819_v52 }
 0x120   : > { %1651 = vst [vmem:[%s2241_s10 + $0x18] sm:$0xff] %v1587_v54   ;;  %v1053_v59 = vadd.f32 %v1818_v51, %v892_v55  ;;  %v895_v60 = vadd.f32 %v1709_v56, %v2233_v34 }
 0x122   : > { %v1056_v61 = vadd.f32 %v1821_v58, %v895_v60  ;;  %v1710_v62 = vpop.f32.mrb[20].mxu0  ;;  %v1155_v1 = vmax.f32 %v1053_v59, 0.0 }
 0x123   : > { %v1822_v63 = vpop.f32.mrb[20].mxu1  ;;  %v1711_v0 = vpop.f32.mrb[21].mxu0 }
 0x124   : > { %v1156_v2 = vmax.f32 %v1056_v61, 0.0  ;;  %v1712_v3 = vadd.f32 %v1711_v0, %v1710_v62  ;;  %v1823_v4 = vpop.f32.mrb[21].mxu1  ;;  %v1713_v5 = vpop.f32.mrb[22].mxu0 }
 0x125   : > { %v1824_v6 = vadd.f32 %v1823_v4, %v1822_v63  ;;  %v1825_v7 = vpop.f32.mrb[22].mxu1  ;;  %v1714_v8 = vpop.f32.mrb[23].mxu0 }
 0x126   : > { %v1592_v9 = vpack.c.bf16 %v1156_v2, %v1155_v1  ;;  %v900_v10 = vadd.f32 %v1712_v3, %v2233_v34  ;;  %v1715_v11 = vadd.f32 %v1714_v8, %v1713_v5  ;;  %v1826_v12 = vpop.f32.mrb[23].mxu1 }
 0x127   : > { %v1827_v13 = vadd.f32 %v1826_v12, %v1825_v7 }
 0x128   : > { %1652 = vst [vmem:[%s2241_s10 + $0x20] sm:$0xff] %v1592_v9   ;;  %v1061_v14 = vadd.f32 %v1824_v6, %v900_v10  ;;  %v903_v15 = vadd.f32 %v1715_v11, %v2233_v34 }
 0x12a   : > { %v1064_v16 = vadd.f32 %v1827_v13, %v903_v15  ;;  %v1716_v17 = vpop.f32.mrb[24].mxu0  ;;  %v1157_v20 = vmax.f32 %v1061_v14, 0.0 }
 0x12b   : > { %v1828_v18 = vpop.f32.mrb[24].mxu1  ;;  %v1717_v19 = vpop.f32.mrb[25].mxu0 }
 0x12c   : > { %v1158_v21 = vmax.f32 %v1064_v16, 0.0  ;;  %v1718_v22 = vadd.f32 %v1717_v19, %v1716_v17  ;;  %v1829_v23 = vpop.f32.mrb[25].mxu1  ;;  %v1719_v24 = vpop.f32.mrb[26].mxu0 }
 0x12d   : > { %v1830_v25 = vadd.f32 %v1829_v23, %v1828_v18  ;;  %v1831_v26 = vpop.f32.mrb[26].mxu1  ;;  %v1720_v27 = vpop.f32.mrb[27].mxu0 }
 0x12e   : > { %v1597_v28 = vpack.c.bf16 %v1158_v21, %v1157_v20  ;;  %v908_v29 = vadd.f32 %v1718_v22, %v2233_v34  ;;  %v1721_v30 = vadd.f32 %v1720_v27, %v1719_v24  ;;  %v1832_v31 = vpop.f32.mrb[27].mxu1 }
 0x12f   : > { %v1833_v32 = vadd.f32 %v1832_v31, %v1831_v26 }
 0x130   : > { %1653 = vst [vmem:[%s2241_s10 + $0x28] sm:$0xff] %v1597_v28   ;;  %v1069_v33 = vadd.f32 %v1830_v25, %v908_v29  ;;  %v911_v35 = vadd.f32 %v1721_v30, %v2233_v34 }
 0x132   : > { %v1072_v36 = vadd.f32 %v1833_v32, %v911_v35  ;;  %v1722_v37 = vpop.f32.mrb[28].mxu0  ;;  %v1159_v40 = vmax.f32 %v1069_v33, 0.0 }
 0x133   : > { %v1834_v38 = vpop.f32.mrb[28].mxu1  ;;  %v1723_v39 = vpop.f32.mrb[29].mxu0 }
 0x134   : > { %v1160_v41 = vmax.f32 %v1072_v36, 0.0  ;;  %v1724_v42 = vadd.f32 %v1723_v39, %v1722_v37  ;;  %v1835_v43 = vpop.f32.mrb[29].mxu1  ;;  %v1725_v44 = vpop.f32.mrb[30].mxu0 }
 0x135   : > { %v1836_v45 = vadd.f32 %v1835_v43, %v1834_v38  ;;  %v1837_v46 = vpop.f32.mrb[30].mxu1  ;;  %v1726_v47 = vpop.f32.mrb[31].mxu0 }
 0x136   : > { %v1602_v48 = vpack.c.bf16 %v1160_v41, %v1159_v40  ;;  %v916_v49 = vadd.f32 %v1724_v42, %v2233_v34  ;;  %v1727_v50 = vadd.f32 %v1726_v47, %v1725_v44  ;;  %v1838_v51 = vpop.f32.mrb[31].mxu1 }
 0x137   : > { %v1839_v52 = vadd.f32 %v1838_v51, %v1837_v46 }
 0x138   : > { %1654 = vst [vmem:[%s2241_s10 + $0x30] sm:$0xff] %v1602_v48   ;;  %v1077_v53 = vadd.f32 %v1836_v45, %v916_v49  ;;  %v919_v54 = vadd.f32 %v1727_v50, %v2233_v34 }
 0x13a   : > { %v1080_v55 = vadd.f32 %v1839_v52, %v919_v54  ;;  %v1728_v56 = vpop.f32.mrb[32].mxu0  ;;  %v1161_v59 = vmax.f32 %v1077_v53, 0.0 }
 0x13b   : > { %v1840_v57 = vpop.f32.mrb[32].mxu1  ;;  %v1729_v58 = vpop.f32.mrb[33].mxu0 }
 0x13c   : > { %v1162_v60 = vmax.f32 %v1080_v55, 0.0  ;;  %v1730_v61 = vadd.f32 %v1729_v58, %v1728_v56  ;;  %v1841_v62 = vpop.f32.mrb[33].mxu1  ;;  %v1731_v63 = vpop.f32.mrb[34].mxu0 }
 0x13d   : > { %v1842_v0 = vadd.f32 %v1841_v62, %v1840_v57  ;;  %v1843_v1 = vpop.f32.mrb[34].mxu1  ;;  %v1732_v2 = vpop.f32.mrb[35].mxu0 }
 0x13e   : > { %v1607_v3 = vpack.c.bf16 %v1162_v60, %v1161_v59  ;;  %v924_v4 = vadd.f32 %v1730_v61, %v2233_v34  ;;  %v1733_v5 = vadd.f32 %v1732_v2, %v1731_v63  ;;  %v1844_v6 = vpop.f32.mrb[35].mxu1 }
 0x13f   : > { %v1845_v7 = vadd.f32 %v1844_v6, %v1843_v1 }
 0x140   : > { %1655 = vst [vmem:[%s2241_s10 + $0x38] sm:$0xff] %v1607_v3   ;;  %v1085_v8 = vadd.f32 %v1842_v0, %v924_v4  ;;  %v927_v9 = vadd.f32 %v1733_v5, %v2233_v34 }
 0x142   : > { %v1088_v10 = vadd.f32 %v1845_v7, %v927_v9  ;;  %v1734_v11 = vpop.f32.mrb[36].mxu0  ;;  %v1163_v14 = vmax.f32 %v1085_v8, 0.0 }
 0x143   : > { %v1846_v12 = vpop.f32.mrb[36].mxu1  ;;  %v1735_v13 = vpop.f32.mrb[37].mxu0 }
 0x144   : > { %v1164_v15 = vmax.f32 %v1088_v10, 0.0  ;;  %v1736_v16 = vadd.f32 %v1735_v13, %v1734_v11  ;;  %v1847_v17 = vpop.f32.mrb[37].mxu1  ;;  %v1737_v18 = vpop.f32.mrb[38].mxu0 }
 0x145   : > { %v1848_v19 = vadd.f32 %v1847_v17, %v1846_v12  ;;  %v1849_v20 = vpop.f32.mrb[38].mxu1  ;;  %v1738_v21 = vpop.f32.mrb[39].mxu0 }
 0x146   : > { %v1612_v22 = vpack.c.bf16 %v1164_v15, %v1163_v14  ;;  %v932_v23 = vadd.f32 %v1736_v16, %v2233_v34  ;;  %v1739_v24 = vadd.f32 %v1738_v21, %v1737_v18  ;;  %v1850_v25 = vpop.f32.mrb[39].mxu1 }
 0x147   : > { %v1851_v26 = vadd.f32 %v1850_v25, %v1849_v20 }
 0x148   : > { %1656 = vst [vmem:[%s2241_s10 + $0x40] sm:$0xff] %v1612_v22   ;;  %v1093_v27 = vadd.f32 %v1848_v19, %v932_v23  ;;  %v935_v28 = vadd.f32 %v1739_v24, %v2233_v34 }
 0x14a   : > { %v1096_v29 = vadd.f32 %v1851_v26, %v935_v28  ;;  %v1740_v30 = vpop.f32.mrb[40].mxu0  ;;  %v1165_v33 = vmax.f32 %v1093_v27, 0.0 }
 0x14b   : > { %v1852_v31 = vpop.f32.mrb[40].mxu1  ;;  %v1741_v32 = vpop.f32.mrb[41].mxu0 }
 0x14c   : > { %v1166_v35 = vmax.f32 %v1096_v29, 0.0  ;;  %v1742_v36 = vadd.f32 %v1741_v32, %v1740_v30  ;;  %v1853_v37 = vpop.f32.mrb[41].mxu1  ;;  %v1743_v38 = vpop.f32.mrb[42].mxu0 }
 0x14d   : > { %v1854_v39 = vadd.f32 %v1853_v37, %v1852_v31  ;;  %v1855_v40 = vpop.f32.mrb[42].mxu1  ;;  %v1744_v41 = vpop.f32.mrb[43].mxu0 }
 0x14e   : > { %v1617_v42 = vpack.c.bf16 %v1166_v35, %v1165_v33  ;;  %v940_v43 = vadd.f32 %v1742_v36, %v2233_v34  ;;  %v1745_v44 = vadd.f32 %v1744_v41, %v1743_v38  ;;  %v1856_v45 = vpop.f32.mrb[43].mxu1 }
 0x14f   : > { %v1857_v46 = vadd.f32 %v1856_v45, %v1855_v40 }
 0x150   : > { %1657 = vst [vmem:[%s2241_s10 + $0x48] sm:$0xff] %v1617_v42   ;;  %v1101_v47 = vadd.f32 %v1854_v39, %v940_v43  ;;  %v943_v48 = vadd.f32 %v1745_v44, %v2233_v34 }
 0x152   : > { %v1104_v49 = vadd.f32 %v1857_v46, %v943_v48  ;;  %v1746_v50 = vpop.f32.mrb[44].mxu0  ;;  %v1167_v53 = vmax.f32 %v1101_v47, 0.0 }
 0x153   : > { %v1858_v51 = vpop.f32.mrb[44].mxu1  ;;  %v1747_v52 = vpop.f32.mrb[45].mxu0 }
 0x154   : > { %v1168_v54 = vmax.f32 %v1104_v49, 0.0  ;;  %v1748_v55 = vadd.f32 %v1747_v52, %v1746_v50  ;;  %v1859_v56 = vpop.f32.mrb[45].mxu1  ;;  %v1749_v57 = vpop.f32.mrb[46].mxu0 }
 0x155   : > { %v1860_v58 = vadd.f32 %v1859_v56, %v1858_v51  ;;  %v1861_v59 = vpop.f32.mrb[46].mxu1  ;;  %v1750_v60 = vpop.f32.mrb[47].mxu0 }
 0x156   : > { %v1622_v61 = vpack.c.bf16 %v1168_v54, %v1167_v53  ;;  %v948_v62 = vadd.f32 %v1748_v55, %v2233_v34  ;;  %v1751_v63 = vadd.f32 %v1750_v60, %v1749_v57  ;;  %v1862_v0 = vpop.f32.mrb[47].mxu1 }
 0x157   : > { %v1863_v1 = vadd.f32 %v1862_v0, %v1861_v59 }
 0x158   : > { %1658 = vst [vmem:[%s2241_s10 + $0x50] sm:$0xff] %v1622_v61   ;;  %v1109_v2 = vadd.f32 %v1860_v58, %v948_v62  ;;  %v951_v3 = vadd.f32 %v1751_v63, %v2233_v34 }
 0x15a   : > { %v1112_v4 = vadd.f32 %v1863_v1, %v951_v3  ;;  %v1752_v5 = vpop.f32.mrb[48].mxu0  ;;  %v1169_v8 = vmax.f32 %v1109_v2, 0.0 }
 0x15b   : > { %v1864_v6 = vpop.f32.mrb[48].mxu1  ;;  %v1753_v7 = vpop.f32.mrb[49].mxu0 }
 0x15c   : > { %v1170_v9 = vmax.f32 %v1112_v4, 0.0  ;;  %v1754_v10 = vadd.f32 %v1753_v7, %v1752_v5  ;;  %v1865_v11 = vpop.f32.mrb[49].mxu1  ;;  %v1755_v12 = vpop.f32.mrb[50].mxu0 }
 0x15d   : > { %v1866_v13 = vadd.f32 %v1865_v11, %v1864_v6  ;;  %v1867_v14 = vpop.f32.mrb[50].mxu1  ;;  %v1756_v15 = vpop.f32.mrb[51].mxu0 }
 0x15e   : > { %v1627_v16 = vpack.c.bf16 %v1170_v9, %v1169_v8  ;;  %v956_v17 = vadd.f32 %v1754_v10, %v2233_v34  ;;  %v1757_v18 = vadd.f32 %v1756_v15, %v1755_v12  ;;  %v1868_v19 = vpop.f32.mrb[51].mxu1 }
 0x15f   : > { %v1869_v20 = vadd.f32 %v1868_v19, %v1867_v14 }
 0x160   : > { %1659 = vst [vmem:[%s2241_s10 + $0x58] sm:$0xff] %v1627_v16   ;;  %v1117_v21 = vadd.f32 %v1866_v13, %v956_v17  ;;  %v959_v22 = vadd.f32 %v1757_v18, %v2233_v34 }
 0x162   : > { %v1120_v23 = vadd.f32 %v1869_v20, %v959_v22  ;;  %v1758_v24 = vpop.f32.mrb[52].mxu0  ;;  %v1171_v27 = vmax.f32 %v1117_v21, 0.0 }
 0x163   : > { %v1870_v25 = vpop.f32.mrb[52].mxu1  ;;  %v1759_v26 = vpop.f32.mrb[53].mxu0 }
 0x164   : > { %v1172_v28 = vmax.f32 %v1120_v23, 0.0  ;;  %v1760_v29 = vadd.f32 %v1759_v26, %v1758_v24  ;;  %v1871_v30 = vpop.f32.mrb[53].mxu1  ;;  %v1761_v31 = vpop.f32.mrb[54].mxu0 }
 0x165   : > { %v1872_v32 = vadd.f32 %v1871_v30, %v1870_v25  ;;  %v1873_v33 = vpop.f32.mrb[54].mxu1  ;;  %v1762_v35 = vpop.f32.mrb[55].mxu0 }
 0x166   : > { %v1632_v36 = vpack.c.bf16 %v1172_v28, %v1171_v27  ;;  %v964_v37 = vadd.f32 %v1760_v29, %v2233_v34  ;;  %v1763_v38 = vadd.f32 %v1762_v35, %v1761_v31  ;;  %v1874_v39 = vpop.f32.mrb[55].mxu1 }
 0x167   : > { %v1875_v40 = vadd.f32 %v1874_v39, %v1873_v33 }
 0x168   : > { %1660 = vst [vmem:[%s2241_s10 + $0x60] sm:$0xff] %v1632_v36   ;;  %v1125_v41 = vadd.f32 %v1872_v32, %v964_v37  ;;  %v967_v42 = vadd.f32 %v1763_v38, %v2233_v34 }
 0x16a   : > { %v1128_v43 = vadd.f32 %v1875_v40, %v967_v42  ;;  %v1764_v44 = vpop.f32.mrb[56].mxu0  ;;  %v1173_v47 = vmax.f32 %v1125_v41, 0.0 }
 0x16b   : > { %v1876_v45 = vpop.f32.mrb[56].mxu1  ;;  %v1765_v46 = vpop.f32.mrb[57].mxu0 }
 0x16c   : > { %v1174_v48 = vmax.f32 %v1128_v43, 0.0  ;;  %v1766_v49 = vadd.f32 %v1765_v46, %v1764_v44  ;;  %v1877_v50 = vpop.f32.mrb[57].mxu1  ;;  %v1767_v51 = vpop.f32.mrb[58].mxu0 }
 0x16d   : > { %v1878_v52 = vadd.f32 %v1877_v50, %v1876_v45  ;;  %v1879_v53 = vpop.f32.mrb[58].mxu1  ;;  %v1768_v54 = vpop.f32.mrb[59].mxu0 }
 0x16e   : > { %v1637_v55 = vpack.c.bf16 %v1174_v48, %v1173_v47  ;;  %v972_v56 = vadd.f32 %v1766_v49, %v2233_v34  ;;  %v1769_v57 = vadd.f32 %v1768_v54, %v1767_v51  ;;  %v1880_v58 = vpop.f32.mrb[59].mxu1 }
 0x16f   : > { %v1881_v59 = vadd.f32 %v1880_v58, %v1879_v53 }
 0x170   : > { %1661 = vst [vmem:[%s2241_s10 + $0x68] sm:$0xff] %v1637_v55   ;;  %v1133_v60 = vadd.f32 %v1878_v52, %v972_v56  ;;  %v975_v61 = vadd.f32 %v1769_v57, %v2233_v34 }
 0x172   : > { %v1136_v62 = vadd.f32 %v1881_v59, %v975_v61  ;;  %v1770_v63 = vpop.f32.mrb[60].mxu0  ;;  %v1175_v2 = vmax.f32 %v1133_v60, 0.0 }
 0x173   : > { %v1882_v0 = vpop.f32.mrb[60].mxu1  ;;  %v1771_v1 = vpop.f32.mrb[61].mxu0 }
 0x174   : > { %v1176_v3 = vmax.f32 %v1136_v62, 0.0  ;;  %v1772_v4 = vadd.f32 %v1771_v1, %v1770_v63  ;;  %v1883_v5 = vpop.f32.mrb[61].mxu1  ;;  %v1773_v6 = vpop.f32.mrb[62].mxu0 }
 0x175   : > { %v1884_v7 = vadd.f32 %v1883_v5, %v1882_v0  ;;  %v1885_v8 = vpop.f32.mrb[62].mxu1  ;;  %v1774_v9 = vpop.f32.mrb[63].mxu0 }
 0x176   : > { %v1642_v10 = vpack.c.bf16 %v1176_v3, %v1175_v2  ;;  %v980_v11 = vadd.f32 %v1772_v4, %v2233_v34  ;;  %v1775_v12 = vadd.f32 %v1774_v9, %v1773_v6  ;;  %v1886_v13 = vpop.f32.mrb[63].mxu1 }
 0x177   : > { %v1887_v14 = vadd.f32 %v1886_v13, %v1885_v8 }
 0x178   : > { %1662 = vst [vmem:[%s2241_s10 + $0x70] sm:$0xff] %v1642_v10   ;;  %v1141_v15 = vadd.f32 %v1884_v7, %v980_v11  ;;  %v983_v16 = vadd.f32 %v1775_v12, %v2233_v34 }
 0x17a   : > { %v1144_v17 = vadd.f32 %v1887_v14, %v983_v16  ;;  %v1177_v18 = vmax.f32 %v1141_v15, 0.0 }
 0x17c   : > { %v1178_v19 = vmax.f32 %v1144_v17, 0.0 }
 0x17e   : > { %v1647_v20 = vpack.c.bf16 %v1178_v19, %v1177_v18 }
 0x180   : > { %1663 = vst [vmem:[%s2241_s10 + $0x78] sm:$0xff] %v1647_v20  }
 0x181 PF: > { %s13_s12 = sadd.s32 1, %s2030_s12  }
 0x182   : > { %p10_p4 = scmp.ge.s32.totalorder %s13_s12, 4  }
 0x184   :  { %12 = sbr.rel (!%p10_p4) target bundleno = 1 (0x1), region = 62 }

// kernel: generator_forward.8
= control target key start
LH: loop header
LB: loop body
LE: loop exit
PB: predicated region body
PF: predicated region fallthrough
CT: control target
= control target key end

     0   :  { %s3526_s12 = smov 0   ;;  %s3961_s0 = inlined_call_operand.vmem [shape: bf16[2048,256], index: 0, kind: input, shape index: {}]   ;;  %s3962_s1 = inlined_call_operand.vmem [shape: bf16[256,128], index: 1, kind: input, shape index: {}]   ;;  %s3963_s2 = inlined_call_operand.vmem [shape: f32[1,128], index: 2, kind: input, shape index: {}]   ;;  %s3964_s3 = inlined_call_operand.vmem [shape: bf16[2048,128], index: 3, kind: output, shape index: {}]  }
   0x1 LB: > { %s2450_s13 = sadd.s32 4294967295, %s3503_s12   ;;  %p2454_p0 = scmp.ge.s32.totalorder %s3503_s12, 1  ;;  %s3503_s12 = sphi %s3526_s12, %s13_s12  }
   0x2   : > { %p139_p1 = scmp.lt.s32.totalorder %s3503_s12, 3 }
   0x4   : > { %p140_p2 = pnand %p2454_p0, %p139_p1 }
   0x5   : > { %v3288_v0 = vld [vmem:[%s3962_s1] sm:$0xff] (!%p140_p2)   ;;  %v3505_v1 = vmov (!%p140_p2), 0   ;;  %s2455_s16 = sshll.u32 (!%p140_p2), %s2450_s13, 7  ;;  %v3289_v2 = vld [vmem:[%s3962_s1 + $0x8] sm:$0xff] (!%p140_p2)   ;;  %v3290_v3 = vld [vmem:[%s3962_s1 + $0x10] sm:$0xff] (!%p140_p2)  }
   0x6   : > { %143 = sbr.rel (%p140_p2) target bundleno = 539 (0x21b), region = 32  ;;  %1081 = vmatprep.subr.bf16.mxu0 (!%p140_p2), %v3505_v1  ;;  %3247 = vmatprep.subr.bf16.mxu1 (!%p140_p2), %v3505_v1  ;;  %p165_p3 = scmp.lt.s32.totalorder (!%p140_p2), %s2455_s16, 255  ;;  %v3291_v4 = vld [vmem:[%s3962_s1 + $0x18] sm:$0xff] (!%p140_p2)   ;;  %v3292_v5 = vld [vmem:[%s3962_s1 + $0x20] sm:$0xff] (!%p140_p2)   ;;  %v3293_v7 = vld [vmem:[%s3962_s1 + $0x28] sm:$0xff] (!%p140_p2)  }
   0x7   : > { %1082 = vmatpush1.bf16.msra.mxu0 (!%p140_p2), %v3288_v0  ;;  %3263 = vmatpush1.bf16.msra.mxu1 (!%p140_p2), %v3288_v0  ;;  %v3294_v9 = vld [vmem:[%s3962_s1 + $0x30] sm:$0xff] (!%p140_p2)   ;;  %v3295_v10 = vld [vmem:[%s3962_s1 + $0x38] sm:$0xff] (!%p140_p2)   ;;  %v3296_v11 = vld [vmem:[%s3962_s1 + $0x40] sm:$0xff] (!%p140_p2)  }
   0x8   : > { %1083 = vmatprep.subr.bf16.mxu0 (!%p140_p2), %v3505_v1  ;;  %3248 = vmatprep.subr.bf16.mxu1 (!%p140_p2), %v3505_v1  ;;  %v3297_v12 = vld [vmem:[%s3962_s1 + $0x48] sm:$0xff] (!%p140_p2)   ;;  %v3298_v13 = vld [vmem:[%s3962_s1 + $0x50] sm:$0xff] (!%p140_p2)   ;;  %v3299_v14 = vld [vmem:[%s3962_s1 + $0x58] sm:$0xff] (!%p140_p2)  }
   0x9   : > { %v3300_v15 = vld [vmem:[%s3962_s1 + $0x60] sm:$0xff] (!%p140_p2)   ;;  %v3301_v16 = vld [vmem:[%s3962_s1 + $0x68] sm:$0xff] (!%p140_p2)   ;;  %v3302_v17 = vld [vmem:[%s3962_s1 + $0x70] sm:$0xff] (!%p140_p2)  }
   0xa   : > { %v3303_v18 = vld [vmem:[%s3962_s1 + $0x78] sm:$0xff] (!%p140_p2)  }
   0xb   : > { %1084 = vmatpush1.bf16.msra.mxu0 (!%p140_p2), %v3289_v2  ;;  %3264 = vmatpush1.bf16.msra.mxu1 (!%p140_p2), %v3289_v2 }
   0xc   : > { %1085 = vmatprep.subr.bf16.mxu0 (!%p140_p2), %v3505_v1  ;;  %3249 = vmatprep.subr.bf16.mxu1 (!%p140_p2), %v3505_v1 }
   0xd   : > { %s3966_s16 = smov (!%p165_p3, %s2455_s16), 255 }
   0xe   : > { %s2735_s23 = sshll.u32 %s3966_s16, 3  ;;  %s2459_s29 = sshll.u32 %s3966_s16, 2 }
   0xf   : > { %1086 = vmatpush1.bf16.msra.mxu0 %v3290_v3  ;;  %3265 = vmatpush1.bf16.msra.mxu1 %v3290_v3  ;;  %s3563_s28 = scalar_lea.vmem %s3961_s0, %s2735_s23  ;;  %s3749_s5 = scalar_lea.vmem %s3964_s3, %s2459_s29 }
  0x10   : > { %1087 = vmatprep.subr.bf16.mxu0 %v3505_v1  ;;  %3250 = vmatprep.subr.bf16.mxu1 %v3505_v1  ;;  %v3306_v6 = vld [vmem:[%s3563_s28 + $0x4] ss:$8 sps:$4 sm:$0xff]   ;;  %v3304_v19 = vld [vmem:[%s3563_s28] ss:$8 sps:$4 sm:$0xff]   ;;  %v3310_v21 = vld [vmem:[%s3563_s28 + $0x14] ss:$8 sps:$4 sm:$0xff]  }
  0x11   : > { %v3309_v8 = vld [vmem:[%s3563_s28 + $0x204] ss:$8 sps:$4 sm:$0xff]   ;;  %1113 = vmatprep.mubr.bf16.mxu0 %v3306_v6  ;;  %v3307_v20 = vld [vmem:[%s3563_s28 + $0x200] ss:$8 sps:$4 sm:$0xff]   ;;  %v3312_v22 = vld [vmem:[%s3563_s28 + $0x214] ss:$8 sps:$4 sm:$0xff]  }
  0x12   : > { %1369 = vmatprep.mubr.bf16.mxu1 %v3309_v8  ;;  %v3314_v23 = vld [vmem:[%s3563_s28 + $0x10] ss:$8 sps:$4 sm:$0xff]   ;;  %v3316_v25 = vld [vmem:[%s3563_s28 + $0x24] ss:$8 sps:$4 sm:$0xff]   ;;  %v3320_v27 = vld [vmem:[%s3563_s28 + $0x20] ss:$8 sps:$4 sm:$0xff]  }
  0x13   : > { %1088 = vmatpush1.bf16.msra.mxu0 %v3291_v4  ;;  %3266 = vmatpush1.bf16.msra.mxu1 %v3291_v4  ;;  %v3315_v24 = vld [vmem:[%s3563_s28 + $0x210] ss:$8 sps:$4 sm:$0xff]   ;;  %v3318_v26 = vld [vmem:[%s3563_s28 + $0x224] ss:$8 sps:$4 sm:$0xff]   ;;  %v3321_v28 = vld [vmem:[%s3563_s28 + $0x220] ss:$8 sps:$4 sm:$0xff]  }
  0x14   : > { %1089 = vmatprep.subr.bf16.mxu0 %v3505_v1  ;;  %3251 = vmatprep.subr.bf16.mxu1 %v3505_v1  ;;  %v3322_v29 = vld [vmem:[%s3563_s28 + $0x34] ss:$8 sps:$4 sm:$0xff]   ;;  %v3326_v31 = vld [vmem:[%s3563_s28 + $0x30] ss:$8 sps:$4 sm:$0xff]   ;;  %v3328_v33 = vld [vmem:[%s3563_s28 + $0x44] ss:$8 sps:$4 sm:$0xff]  }
  0x15   : > { %v3324_v30 = vld [vmem:[%s3563_s28 + $0x234] ss:$8 sps:$4 sm:$0xff]   ;;  %v3327_v32 = vld [vmem:[%s3563_s28 + $0x230] ss:$8 sps:$4 sm:$0xff]   ;;  %v3330_v34 = vld [vmem:[%s3563_s28 + $0x244] ss:$8 sps:$4 sm:$0xff]  }
  0x16   : > { %v3332_v35 = vld [vmem:[%s3563_s28 + $0x40] ss:$8 sps:$4 sm:$0xff]   ;;  %v3334_v37 = vld [vmem:[%s3563_s28 + $0x54] ss:$8 sps:$4 sm:$0xff]   ;;  %v3338_v39 = vld [vmem:[%s3563_s28 + $0x50] ss:$8 sps:$4 sm:$0xff]  }
  0x17   : > { %1090 = vmatpush1.bf16.msra.mxu0 %v3292_v5  ;;  %3267 = vmatpush1.bf16.msra.mxu1 %v3292_v5  ;;  %v3333_v36 = vld [vmem:[%s3563_s28 + $0x240] ss:$8 sps:$4 sm:$0xff]   ;;  %v3336_v38 = vld [vmem:[%s3563_s28 + $0x254] ss:$8 sps:$4 sm:$0xff]   ;;  %v3339_v40 = vld [vmem:[%s3563_s28 + $0x250] ss:$8 sps:$4 sm:$0xff]  }
  0x18   : > { %1091 = vmatprep.subr.bf16.mxu0 %v3505_v1  ;;  %3252 = vmatprep.subr.bf16.mxu1 %v3505_v1  ;;  %v3340_v41 = vld [vmem:[%s3563_s28 + $0x64] ss:$8 sps:$4 sm:$0xff]   ;;  %v3344_v43 = vld [vmem:[%s3563_s28 + $0x60] ss:$8 sps:$4 sm:$0xff]   ;;  %v3346_v45 = vld [vmem:[%s3563_s28 + $0x74] ss:$8 sps:$4 sm:$0xff]  }
  0x19   : > { %v3342_v42 = vld [vmem:[%s3563_s28 + $0x264] ss:$8 sps:$4 sm:$0xff]   ;;  %v3345_v44 = vld [vmem:[%s3563_s28 + $0x260] ss:$8 sps:$4 sm:$0xff]   ;;  %v3348_v46 = vld [vmem:[%s3563_s28 + $0x274] ss:$8 sps:$4 sm:$0xff]  }
  0x1a   : > { %v3350_v47 = vld [vmem:[%s3563_s28 + $0x70] ss:$8 sps:$4 sm:$0xff]   ;;  %v3352_v49 = vld [vmem:[%s3563_s28 + $0x84] ss:$8 sps:$4 sm:$0xff]   ;;  %v3356_v51 = vld [vmem:[%s3563_s28 + $0x80] ss:$8 sps:$4 sm:$0xff]  }
  0x1b   : > { %1092 = vmatpush1.bf16.msra.mxu0 %v3293_v7  ;;  %3268 = vmatpush1.bf16.msra.mxu1 %v3293_v7  ;;  %v3351_v48 = vld [vmem:[%s3563_s28 + $0x270] ss:$8 sps:$4 sm:$0xff]   ;;  %v3354_v50 = vld [vmem:[%s3563_s28 + $0x284] ss:$8 sps:$4 sm:$0xff]   ;;  %v3357_v52 = vld [vmem:[%s3563_s28 + $0x280] ss:$8 sps:$4 sm:$0xff]  }
  0x1c   : > { %1093 = vmatprep.subr.bf16.mxu0 %v3505_v1  ;;  %3253 = vmatprep.subr.bf16.mxu1 %v3505_v1  ;;  %v3358_v53 = vld [vmem:[%s3563_s28 + $0x94] ss:$8 sps:$4 sm:$0xff]   ;;  %v3362_v55 = vld [vmem:[%s3563_s28 + $0x90] ss:$8 sps:$4 sm:$0xff]   ;;  %v3364_v57 = vld [vmem:[%s3563_s28 + $0xa4] ss:$8 sps:$4 sm:$0xff]  }
  0x1d   : > { %v3360_v54 = vld [vmem:[%s3563_s28 + $0x294] ss:$8 sps:$4 sm:$0xff]   ;;  %v3363_v56 = vld [vmem:[%s3563_s28 + $0x290] ss:$8 sps:$4 sm:$0xff]   ;;  %v3366_v58 = vld [vmem:[%s3563_s28 + $0x2a4] ss:$8 sps:$4 sm:$0xff]  }
  0x1e   : > { %v3368_v59 = vld [vmem:[%s3563_s28 + $0xa0] ss:$8 sps:$4 sm:$0xff]   ;;  %v3370_v61 = vld [vmem:[%s3563_s28 + $0xb4] ss:$8 sps:$4 sm:$0xff]   ;;  %v3374_v63 = vld [vmem:[%s3563_s28 + $0xb0] ss:$8 sps:$4 sm:$0xff]  }
  0x1f   : > { %1094 = vmatpush1.bf16.msra.mxu0 %v3294_v9  ;;  %3269 = vmatpush1.bf16.msra.mxu1 %v3294_v9  ;;  %v3369_v60 = vld [vmem:[%s3563_s28 + $0x2a0] ss:$8 sps:$4 sm:$0xff]   ;;  %v3372_v62 = vld [vmem:[%s3563_s28 + $0x2b4] ss:$8 sps:$4 sm:$0xff]   ;;  %v3375_v0 = vld [vmem:[%s3563_s28 + $0x2b0] ss:$8 sps:$4 sm:$0xff]  }
  0x20   : > { %1095 = vmatprep.subr.bf16.mxu0 %v3505_v1  ;;  %3254 = vmatprep.subr.bf16.mxu1 %v3505_v1  ;;  %v3378_v2 = vld [vmem:[%s3563_s28 + $0x2c4] ss:$8 sps:$4 sm:$0xff]   ;;  %v3380_v3 = vld [vmem:[%s3563_s28 + $0xc0] ss:$8 sps:$4 sm:$0xff]   ;;  %v3382_v5 = vld [vmem:[%s3563_s28 + $0xd4] ss:$8 sps:$4 sm:$0xff]  }
  0x21   : > { %v3381_v4 = vld [vmem:[%s3563_s28 + $0x2c0] ss:$8 sps:$4 sm:$0xff]   ;;  %v3384_v6 = vld [vmem:[%s3563_s28 + $0x2d4] ss:$8 sps:$4 sm:$0xff]   ;;  %v3386_v7 = vld [vmem:[%s3563_s28 + $0xd0] ss:$8 sps:$4 sm:$0xff]  }
  0x22   : > { %v3387_v8 = vld [vmem:[%s3563_s28 + $0x2d0] ss:$8 sps:$4 sm:$0xff]   ;;  %v3388_v9 = vld [vmem:[%s3563_s28 + $0xe4] ss:$8 sps:$4 sm:$0xff]  }
  0x23   : > { %1096 = vmatpush1.bf16.msra.mxu0 %v3295_v10  ;;  %3270 = vmatpush1.bf16.msra.mxu1 %v3295_v10  ;;  %v3390_v10 = vld [vmem:[%s3563_s28 + $0x2e4] ss:$8 sps:$4 sm:$0xff]  }
  0x24   : > { %1097 = vmatprep.subr.bf16.mxu0 %v3505_v1  ;;  %3255 = vmatprep.subr.bf16.mxu1 %v3505_v1 }
  0x27   : > { %1098 = vmatpush1.bf16.msra.mxu0 %v3296_v11  ;;  %3271 = vmatpush1.bf16.msra.mxu1 %v3296_v11  ;;  %v3392_v11 = vld [vmem:[%s3563_s28 + $0xe0] ss:$8 sps:$4 sm:$0xff]  }
  0x28   : > { %1099 = vmatprep.subr.bf16.mxu0 %v3505_v1  ;;  %3256 = vmatprep.subr.bf16.mxu1 %v3505_v1 }
  0x2b   : > { %1100 = vmatpush1.bf16.msra.mxu0 %v3297_v12  ;;  %3272 = vmatpush1.bf16.msra.mxu1 %v3297_v12  ;;  %v3393_v12 = vld [vmem:[%s3563_s28 + $0x2e0] ss:$8 sps:$4 sm:$0xff]  }
  0x2c   : > { %1101 = vmatprep.subr.bf16.mxu0 %v3505_v1  ;;  %3257 = vmatprep.subr.bf16.mxu1 %v3505_v1 }
  0x2f   : > { %1102 = vmatpush1.bf16.msra.mxu0 %v3298_v13  ;;  %3273 = vmatpush1.bf16.msra.mxu1 %v3298_v13  ;;  %v3394_v13 = vld [vmem:[%s3563_s28 + $0xf4] ss:$8 sps:$4 sm:$0xff]  }
  0x30   : > { %1103 = vmatprep.subr.bf16.mxu0 %v3505_v1  ;;  %3258 = vmatprep.subr.bf16.mxu1 %v3505_v1 }
  0x33   : > { %1104 = vmatpush1.bf16.msra.mxu0 %v3299_v14  ;;  %3274 = vmatpush1.bf16.msra.mxu1 %v3299_v14  ;;  %v3396_v14 = vld [vmem:[%s3563_s28 + $0x2f4] ss:$8 sps:$4 sm:$0xff]  }
  0x34   : > { %1105 = vmatprep.subr.bf16.mxu0 %v3505_v1  ;;  %3259 = vmatprep.subr.bf16.mxu1 %v3505_v1 }
  0x37   : > { %1106 = vmatpush1.bf16.msra.mxu0 %v3300_v15  ;;  %3275 = vmatpush1.bf16.msra.mxu1 %v3300_v15  ;;  %v3398_v15 = vld [vmem:[%s3563_s28 + $0xf0] ss:$8 sps:$4 sm:$0xff]  }
  0x38   : > { %1107 = vmatprep.subr.bf16.mxu0 %v3505_v1  ;;  %3260 = vmatprep.subr.bf16.mxu1 %v3505_v1 }
  0x3b   : > { %1108 = vmatpush1.bf16.msra.mxu0 %v3301_v16  ;;  %3276 = vmatpush1.bf16.msra.mxu1 %v3301_v16  ;;  %v3399_v16 = vld [vmem:[%s3563_s28 + $0x2f0] ss:$8 sps:$4 sm:$0xff]  }
  0x3c   : > { %1109 = vmatprep.subr.bf16.mxu0 %v3505_v1  ;;  %3261 = vmatprep.subr.bf16.mxu1 %v3505_v1 }
  0x3f   : > { %1110 = vmatpush1.bf16.msra.mxu0 %v3302_v17  ;;  %3277 = vmatpush1.bf16.msra.mxu1 %v3302_v17  ;;  %v3400_v17 = vld [vmem:[%s3563_s28 + $0x104] ss:$8 sps:$4 sm:$0xff]  }
  0x40   : > { %1111 = vmatprep.subr.bf16.mxu0 %v3505_v1  ;;  %3262 = vmatprep.subr.bf16.mxu1 %v3505_v1  ;;  %v3376_v1 = vld [vmem:[%s3563_s28 + $0xc4] ss:$8 sps:$4 sm:$0xff]  }
  0x43   : > { %1112 = vmatpush1.bf16.msra.mxu0 %v3303_v18  ;;  %3278 = vmatpush1.bf16.msra.mxu1 %v3303_v18  ;;  %v3402_v18 = vld [vmem:[%s3563_s28 + $0x304] ss:$8 sps:$4 sm:$0xff]  }
  0x46   : > { %1114 = vmatmul.mubr.bf16.vlgmr.msra.gmra.mrb[0].mxu0 %v3304_v19  ;;  %1370 = vmatmul.mubr.bf16.vlgmr.msra.gmra.mrb[0].mxu1 %v3307_v20  ;;  %v3404_v19 = vld [vmem:[%s3563_s28 + $0x100] ss:$8 sps:$4 sm:$0xff]  }
  0x47   : > { %1121 = vmatprep.mubr.bf16.mxu0 %v3310_v21  ;;  %1377 = vmatprep.mubr.bf16.mxu1 %v3312_v22  ;;  %v3405_v20 = vld [vmem:[%s3563_s28 + $0x300] ss:$8 sps:$4 sm:$0xff]   ;;  %v3406_v21 = vld [vmem:[%s3563_s28 + $0x114] ss:$8 sps:$4 sm:$0xff]  }
  0x48   : > { %v3408_v22 = vld [vmem:[%s3563_s28 + $0x314] ss:$8 sps:$4 sm:$0xff]  }
  0x4e   : > { %1122 = vmatmul.mubr.bf16.gmra.mrb[4].mxu0 %v3314_v23  ;;  %1378 = vmatmul.mubr.bf16.gmra.mrb[4].mxu1 %v3315_v24  ;;  %v3410_v23 = vld [vmem:[%s3563_s28 + $0x110] ss:$8 sps:$4 sm:$0xff]  }
  0x4f   : > { %1129 = vmatprep.mubr.bf16.mxu0 %v3316_v25  ;;  %1385 = vmatprep.mubr.bf16.mxu1 %v3318_v26  ;;  %v3411_v24 = vld [vmem:[%s3563_s28 + $0x310] ss:$8 sps:$4 sm:$0xff]   ;;  %v3412_v25 = vld [vmem:[%s3563_s28 + $0x124] ss:$8 sps:$4 sm:$0xff]  }
  0x50   : > { %v3414_v26 = vld [vmem:[%s3563_s28 + $0x324] ss:$8 sps:$4 sm:$0xff]  }
  0x56   : > { %1130 = vmatmul.mubr.bf16.gmra.mrb[8].mxu0 %v3320_v27  ;;  %1386 = vmatmul.mubr.bf16.gmra.mrb[8].mxu1 %v3321_v28  ;;  %v3416_v27 = vld [vmem:[%s3563_s28 + $0x120] ss:$8 sps:$4 sm:$0xff]  }
  0x57   : > { %1137 = vmatprep.mubr.bf16.mxu0 %v3322_v29  ;;  %1393 = vmatprep.mubr.bf16.mxu1 %v3324_v30  ;;  %v3417_v28 = vld [vmem:[%s3563_s28 + $0x320] ss:$8 sps:$4 sm:$0xff]   ;;  %v3418_v29 = vld [vmem:[%s3563_s28 + $0x134] ss:$8 sps:$4 sm:$0xff]  }
  0x58   : > { %v3420_v30 = vld [vmem:[%s3563_s28 + $0x334] ss:$8 sps:$4 sm:$0xff]  }
  0x5e   : > { %1138 = vmatmul.mubr.bf16.gmra.mrb[12].mxu0 %v3326_v31  ;;  %1394 = vmatmul.mubr.bf16.gmra.mrb[12].mxu1 %v3327_v32  ;;  %v3422_v31 = vld [vmem:[%s3563_s28 + $0x130] ss:$8 sps:$4 sm:$0xff]  }
  0x5f   : > { %1145 = vmatprep.mubr.bf16.mxu0 %v3328_v33  ;;  %1401 = vmatprep.mubr.bf16.mxu1 %v3330_v34  ;;  %v3423_v32 = vld [vmem:[%s3563_s28 + $0x330] ss:$8 sps:$4 sm:$0xff]   ;;  %v3424_v33 = vld [vmem:[%s3563_s28 + $0x144] ss:$8 sps:$4 sm:$0xff]  }
  0x60   : > { %v3426_v34 = vld [vmem:[%s3563_s28 + $0x344] ss:$8 sps:$4 sm:$0xff]  }
  0x66   : > { %1146 = vmatmul.mubr.bf16.gmra.mrb[16].mxu0 %v3332_v35  ;;  %1402 = vmatmul.mubr.bf16.gmra.mrb[16].mxu1 %v3333_v36  ;;  %v3428_v35 = vld [vmem:[%s3563_s28 + $0x140] ss:$8 sps:$4 sm:$0xff]  }
  0x67   : > { %1153 = vmatprep.mubr.bf16.mxu0 %v3334_v37  ;;  %1409 = vmatprep.mubr.bf16.mxu1 %v3336_v38  ;;  %v3429_v36 = vld [vmem:[%s3563_s28 + $0x340] ss:$8 sps:$4 sm:$0xff]   ;;  %v3430_v37 = vld [vmem:[%s3563_s28 + $0x154] ss:$8 sps:$4 sm:$0xff]  }
  0x68   : > { %v3432_v38 = vld [vmem:[%s3563_s28 + $0x354] ss:$8 sps:$4 sm:$0xff]  }
  0x6e   : > { %1154 = vmatmul.mubr.bf16.gmra.mrb[20].mxu0 %v3338_v39  ;;  %1410 = vmatmul.mubr.bf16.gmra.mrb[20].mxu1 %v3339_v40  ;;  %v3434_v39 = vld [vmem:[%s3563_s28 + $0x150] ss:$8 sps:$4 sm:$0xff]  }
  0x6f   : > { %1161 = vmatprep.mubr.bf16.mxu0 %v3340_v41  ;;  %1417 = vmatprep.mubr.bf16.mxu1 %v3342_v42  ;;  %v3435_v40 = vld [vmem:[%s3563_s28 + $0x350] ss:$8 sps:$4 sm:$0xff]   ;;  %v3436_v41 = vld [vmem:[%s3563_s28 + $0x164] ss:$8 sps:$4 sm:$0xff]  }
  0x70   : > { %v3438_v42 = vld [vmem:[%s3563_s28 + $0x364] ss:$8 sps:$4 sm:$0xff]  }
  0x76   : > { %1162 = vmatmul.mubr.bf16.gmra.mrb[24].mxu0 %v3344_v43  ;;  %1418 = vmatmul.mubr.bf16.gmra.mrb[24].mxu1 %v3345_v44  ;;  %v3440_v43 = vld [vmem:[%s3563_s28 + $0x160] ss:$8 sps:$4 sm:$0xff]  }
  0x77   : > { %1169 = vmatprep.mubr.bf16.mxu0 %v3346_v45  ;;  %1425 = vmatprep.mubr.bf16.mxu1 %v3348_v46  ;;  %v3441_v44 = vld [vmem:[%s3563_s28 + $0x360] ss:$8 sps:$4 sm:$0xff]   ;;  %v3442_v45 = vld [vmem:[%s3563_s28 + $0x174] ss:$8 sps:$4 sm:$0xff]  }
  0x78   : > { %v3444_v46 = vld [vmem:[%s3563_s28 + $0x374] ss:$8 sps:$4 sm:$0xff]  }
  0x7e   : > { %1170 = vmatmul.mubr.bf16.gmra.mrb[28].mxu0 %v3350_v47  ;;  %1426 = vmatmul.mubr.bf16.gmra.mrb[28].mxu1 %v3351_v48  ;;  %v3446_v47 = vld [vmem:[%s3563_s28 + $0x170] ss:$8 sps:$4 sm:$0xff]  }
  0x7f   : > { %1177 = vmatprep.mubr.bf16.mxu0 %v3352_v49  ;;  %1433 = vmatprep.mubr.bf16.mxu1 %v3354_v50  ;;  %v3447_v48 = vld [vmem:[%s3563_s28 + $0x370] ss:$8 sps:$4 sm:$0xff]   ;;  %v3448_v49 = vld [vmem:[%s3563_s28 + $0x184] ss:$8 sps:$4 sm:$0xff]  }
  0x80   : > { %v3450_v50 = vld [vmem:[%s3563_s28 + $0x384] ss:$8 sps:$4 sm:$0xff]  }
  0x86   : > { %1178 = vmatmul.mubr.bf16.gmra.mrb[32].mxu0 %v3356_v51  ;;  %1434 = vmatmul.mubr.bf16.gmra.mrb[32].mxu1 %v3357_v52  ;;  %v3452_v51 = vld [vmem:[%s3563_s28 + $0x180] ss:$8 sps:$4 sm:$0xff]  }
  0x87   : > { %1185 = vmatprep.mubr.bf16.mxu0 %v3358_v53  ;;  %1441 = vmatprep.mubr.bf16.mxu1 %v3360_v54  ;;  %v3453_v52 = vld [vmem:[%s3563_s28 + $0x380] ss:$8 sps:$4 sm:$0xff]   ;;  %v3454_v53 = vld [vmem:[%s3563_s28 + $0x194] ss:$8 sps:$4 sm:$0xff]  }
  0x88   : > { %v3456_v54 = vld [vmem:[%s3563_s28 + $0x394] ss:$8 sps:$4 sm:$0xff]  }
  0x8e   : > { %1186 = vmatmul.mubr.bf16.gmra.mrb[36].mxu0 %v3362_v55  ;;  %1442 = vmatmul.mubr.bf16.gmra.mrb[36].mxu1 %v3363_v56  ;;  %v3458_v55 = vld [vmem:[%s3563_s28 + $0x190] ss:$8 sps:$4 sm:$0xff]  }
  0x8f   : > { %1193 = vmatprep.mubr.bf16.mxu0 %v3364_v57  ;;  %1449 = vmatprep.mubr.bf16.mxu1 %v3366_v58  ;;  %v3459_v56 = vld [vmem:[%s3563_s28 + $0x390] ss:$8 sps:$4 sm:$0xff]   ;;  %v3460_v57 = vld [vmem:[%s3563_s28 + $0x1a4] ss:$8 sps:$4 sm:$0xff]  }
  0x90   : > { %v3462_v58 = vld [vmem:[%s3563_s28 + $0x3a4] ss:$8 sps:$4 sm:$0xff]  }
  0x96   : > { %1194 = vmatmul.mubr.bf16.gmra.mrb[40].mxu0 %v3368_v59  ;;  %1450 = vmatmul.mubr.bf16.gmra.mrb[40].mxu1 %v3369_v60  ;;  %v3464_v59 = vld [vmem:[%s3563_s28 + $0x1a0] ss:$8 sps:$4 sm:$0xff]  }
  0x97   : > { %1201 = vmatprep.mubr.bf16.mxu0 %v3370_v61  ;;  %1457 = vmatprep.mubr.bf16.mxu1 %v3372_v62  ;;  %v3465_v60 = vld [vmem:[%s3563_s28 + $0x3a0] ss:$8 sps:$4 sm:$0xff]   ;;  %v3466_v61 = vld [vmem:[%s3563_s28 + $0x1b4] ss:$8 sps:$4 sm:$0xff]  }
  0x98   : > { %v3468_v62 = vld [vmem:[%s3563_s28 + $0x3b4] ss:$8 sps:$4 sm:$0xff]  }
  0x9e   : > { %1202 = vmatmul.mubr.bf16.gmra.mrb[44].mxu0 %v3374_v63  ;;  %1458 = vmatmul.mubr.bf16.gmra.mrb[44].mxu1 %v3375_v0  ;;  %v3735_v63 = vld [vmem:[%s3963_s2] ss:$0 sm:$0xff] }
  0x9f   : > { %1209 = vmatprep.mubr.bf16.mxu0 %v3376_v1  ;;  %1465 = vmatprep.mubr.bf16.mxu1 %v3378_v2 }
  0xa6   : > { %1210 = vmatmul.mubr.bf16.gmra.mrb[48].mxu0 %v3380_v3  ;;  %1466 = vmatmul.mubr.bf16.gmra.mrb[48].mxu1 %v3381_v4 }
  0xa7   : > { %1217 = vmatprep.mubr.bf16.mxu0 %v3382_v5  ;;  %1473 = vmatprep.mubr.bf16.mxu1 %v3384_v6  ;;  %v3470_v6 = vld [vmem:[%s3563_s28 + $0x1b0] ss:$8 sps:$4 sm:$0xff]  }
  0xae   : > { %1218 = vmatmul.mubr.bf16.gmra.mrb[52].mxu0 %v3386_v7  ;;  %1474 = vmatmul.mubr.bf16.gmra.mrb[52].mxu1 %v3387_v8  ;;  %v3471_v7 = vld [vmem:[%s3563_s28 + $0x3b0] ss:$8 sps:$4 sm:$0xff]  }
  0xaf   : > { %1225 = vmatprep.mubr.bf16.mxu0 %v3388_v9  ;;  %1481 = vmatprep.mubr.bf16.mxu1 %v3390_v10  ;;  %v3472_v10 = vld [vmem:[%s3563_s28 + $0x1c4] ss:$8 sps:$4 sm:$0xff]  }
  0xb6   : > { %1226 = vmatmul.mubr.bf16.gmra.mrb[56].mxu0 %v3392_v11  ;;  %1482 = vmatmul.mubr.bf16.gmra.mrb[56].mxu1 %v3393_v12  ;;  %v3474_v11 = vld [vmem:[%s3563_s28 + $0x3c4] ss:$8 sps:$4 sm:$0xff]  }
  0xb7   : > { %1233 = vmatprep.mubr.bf16.mxu0 %v3394_v13  ;;  %1489 = vmatprep.mubr.bf16.mxu1 %v3396_v14 }
  0xbe   : > { %1234 = vmatmul.mubr.bf16.gmra.mrb[60].mxu0 %v3398_v15  ;;  %1490 = vmatmul.mubr.bf16.gmra.mrb[60].mxu1 %v3399_v16 }
  0xbf   : > { %1241 = vmatprep.mubr.bf16.mxu0 %v3400_v17  ;;  %1497 = vmatprep.mubr.bf16.mxu1 %v3402_v18 }
  0xc6   : > { %1242 = vmatmul.mubr.bf16.gmra.mrb[64].mxu0 %v3404_v19  ;;  %1498 = vmatmul.mubr.bf16.gmra.mrb[64].mxu1 %v3405_v20 }
  0xc7   : > { %1249 = vmatprep.mubr.bf16.mxu0 %v3406_v21  ;;  %1505 = vmatprep.mubr.bf16.mxu1 %v3408_v22 }
  0xce   : > { %1250 = vmatmul.mubr.bf16.gmra.mrb[68].mxu0 %v3410_v23  ;;  %1506 = vmatmul.mubr.bf16.gmra.mrb[68].mxu1 %v3411_v24 }
  0xcf   : > { %1257 = vmatprep.mubr.bf16.mxu0 %v3412_v25  ;;  %1513 = vmatprep.mubr.bf16.mxu1 %v3414_v26 }
  0xd6   : > { %1258 = vmatmul.mubr.bf16.gmra.mrb[72].mxu0 %v3416_v27  ;;  %1514 = vmatmul.mubr.bf16.gmra.mrb[72].mxu1 %v3417_v28  ;;  %v3476_v28 = vld [vmem:[%s3563_s28 + $0x1c0] ss:$8 sps:$4 sm:$0xff]  }
  0xd7   : > { %1265 = vmatprep.mubr.bf16.mxu0 %v3418_v29  ;;  %1521 = vmatprep.mubr.bf16.mxu1 %v3420_v30  ;;  %v3477_v29 = vld [vmem:[%s3563_s28 + $0x3c0] ss:$8 sps:$4 sm:$0xff]  }
  0xde   : > { %1266 = vmatmul.mubr.bf16.gmra.mrb[76].mxu0 %v3422_v31  ;;  %1522 = vmatmul.mubr.bf16.gmra.mrb[76].mxu1 %v3423_v32  ;;  %v3478_v32 = vld [vmem:[%s3563_s28 + $0x1d4] ss:$8 sps:$4 sm:$0xff]  }
  0xdf   : > { %1273 = vmatprep.mubr.bf16.mxu0 %v3424_v33  ;;  %1529 = vmatprep.mubr.bf16.mxu1 %v3426_v34  ;;  %v3480_v33 = vld [vmem:[%s3563_s28 + $0x3d4] ss:$8 sps:$4 sm:$0xff]  }
  0xe6   : > { %1274 = vmatmul.mubr.bf16.gmra.mrb[80].mxu0 %v3428_v35  ;;  %1530 = vmatmul.mubr.bf16.gmra.mrb[80].mxu1 %v3429_v36 }
  0xe7   : > { %1281 = vmatprep.mubr.bf16.mxu0 %v3430_v37  ;;  %1537 = vmatprep.mubr.bf16.mxu1 %v3432_v38 }
  0xee   : > { %1282 = vmatmul.mubr.bf16.gmra.mrb[84].mxu0 %v3434_v39  ;;  %1538 = vmatmul.mubr.bf16.gmra.mrb[84].mxu1 %v3435_v40 }
  0xef   : > { %1289 = vmatprep.mubr.bf16.mxu0 %v3436_v41  ;;  %1545 = vmatprep.mubr.bf16.mxu1 %v3438_v42 }
  0xf6   : > { %1290 = vmatmul.mubr.bf16.gmra.mrb[88].mxu0 %v3440_v43  ;;  %1546 = vmatmul.mubr.bf16.gmra.mrb[88].mxu1 %v3441_v44 }
  0xf7   : > { %1297 = vmatprep.mubr.bf16.mxu0 %v3442_v45  ;;  %1553 = vmatprep.mubr.bf16.mxu1 %v3444_v46 }
  0xfe   : > { %1298 = vmatmul.mubr.bf16.gmra.mrb[92].mxu0 %v3446_v47  ;;  %1554 = vmatmul.mubr.bf16.gmra.mrb[92].mxu1 %v3447_v48 }
  0xff   : > { %1305 = vmatprep.mubr.bf16.mxu0 %v3448_v49  ;;  %1561 = vmatprep.mubr.bf16.mxu1 %v3450_v50  ;;  %v3482_v50 = vld [vmem:[%s3563_s28 + $0x1d0] ss:$8 sps:$4 sm:$0xff]  }
 0x106   : > { %1306 = vmatmul.mubr.bf16.gmra.mrb[96].mxu0 %v3452_v51  ;;  %1562 = vmatmul.mubr.bf16.gmra.mrb[96].mxu1 %v3453_v52  ;;  %v3483_v51 = vld [vmem:[%s3563_s28 + $0x3d0] ss:$8 sps:$4 sm:$0xff]  }
 0x107   : > { %1313 = vmatprep.mubr.bf16.mxu0 %v3454_v53  ;;  %1569 = vmatprep.mubr.bf16.mxu1 %v3456_v54  ;;  %v3484_v54 = vld [vmem:[%s3563_s28 + $0x1e4] ss:$8 sps:$4 sm:$0xff]  }
 0x10e   : > { %1314 = vmatmul.mubr.bf16.gmra.mrb[100].mxu0 %v3458_v55  ;;  %1570 = vmatmul.mubr.bf16.gmra.mrb[100].mxu1 %v3459_v56  ;;  %v3486_v55 = vld [vmem:[%s3563_s28 + $0x3e4] ss:$8 sps:$4 sm:$0xff]  }
 0x10f   : > { %1321 = vmatprep.mubr.bf16.mxu0 %v3460_v57  ;;  %1577 = vmatprep.mubr.bf16.mxu1 %v3462_v58 }
 0x116   : > { %1322 = vmatmul.mubr.bf16.gmra.mrb[104].mxu0 %v3464_v59  ;;  %1578 = vmatmul.mubr.bf16.gmra.mrb[104].mxu1 %v3465_v60 }
 0x117   : > { %1329 = vmatprep.mubr.bf16.mxu0 %v3466_v61  ;;  %1585 = vmatprep.mubr.bf16.mxu1 %v3468_v62 }
 0x119   : > { %v1115_v0 = vpop.f32.mrb[0].mxu0  ;;  %v1371_v1 = vpop.f32.mrb[0].mxu1 }
 0x11a   : > { %v1116_v2 = vadd.f32 %v3735_v63, %v1115_v0  ;;  %v1372_v3 = vadd.f32 %v3735_v63, %v1371_v1  ;;  %v1117_v4 = vpop.f32.mrb[1].mxu0  ;;  %v1373_v5 = vpop.f32.mrb[1].mxu1 }
 0x11b   : > { %v1118_v8 = vpop.f32.mrb[2].mxu0  ;;  %v1374_v9 = vpop.f32.mrb[2].mxu1 }
 0x11c   : > { %v1119_v12 = vadd.f32 %v3735_v63, %v1118_v8  ;;  %v1375_v13 = vadd.f32 %v3735_v63, %v1374_v9  ;;  %v1120_v14 = vpop.f32.mrb[3].mxu0  ;;  %v1376_v15 = vpop.f32.mrb[3].mxu1  ;;  %v1626_v16 = vmax.f32 %v1116_v2, 0.0  ;;  %v1690_v17 = vmax.f32 %v1372_v3, 0.0  ;;  %v3488_v9 = vld [vmem:[%s3563_s28 + $0x1e0] ss:$8 sps:$4 sm:$0xff]  }
 0x11d   : > { %v3492_v14 = vld [vmem:[%s3563_s28 + $0x3f4] ss:$8 sps:$4 sm:$0xff]  }
 0x11e   : > { %v1627_v18 = vmax.f32 %v1119_v12, 0.0  ;;  %v1691_v19 = vmax.f32 %v1375_v13, 0.0  ;;  %1330 = vmatmul.mubr.bf16.gmra.mrb[108].mxu0 %v3470_v6  ;;  %1586 = vmatmul.mubr.bf16.gmra.mrb[108].mxu1 %v3471_v7  ;;  %v3490_v13 = vld [vmem:[%s3563_s28 + $0x1f4] ss:$8 sps:$4 sm:$0xff]  }
 0x11f   : > { %1337 = vmatprep.mubr.bf16.mxu0 %v3472_v10  ;;  %1593 = vmatprep.mubr.bf16.mxu1 %v3474_v11  ;;  %v3489_v10 = vld [vmem:[%s3563_s28 + $0x3e0] ss:$8 sps:$4 sm:$0xff]  }
 0x120   : > { %v2867_v20 = vpack.c.bf16 %v1627_v18, %v1626_v16  ;;  %v3027_v21 = vpack.c.bf16 %v1691_v19, %v1690_v17 }
 0x121   : > { %v1123_v22 = vpop.f32.mrb[4].mxu0  ;;  %v1379_v23 = vpop.f32.mrb[4].mxu1 }
 0x122   : > { %2868 = vst [vmem:[%s3749_s5] sm:$0xff] %v2867_v20   ;;  %3215 = vst [vmem:[%s3749_s5 + $0x100] sm:$0xff] %v3027_v21   ;;  %v1124_v24 = vadd.f32 %v3735_v63, %v1123_v22  ;;  %v1380_v25 = vadd.f32 %v3735_v63, %v1379_v23  ;;  %v1125_v26 = vpop.f32.mrb[5].mxu0  ;;  %v1381_v27 = vpop.f32.mrb[5].mxu1 }
 0x123   : > { %v1126_v30 = vpop.f32.mrb[6].mxu0  ;;  %v1382_v31 = vpop.f32.mrb[6].mxu1 }
 0x124   : > { %v1127_v34 = vadd.f32 %v3735_v63, %v1126_v30  ;;  %v1383_v35 = vadd.f32 %v3735_v63, %v1382_v31  ;;  %v1128_v36 = vpop.f32.mrb[7].mxu0  ;;  %v1384_v37 = vpop.f32.mrb[7].mxu1  ;;  %v1628_v38 = vmax.f32 %v1124_v24, 0.0  ;;  %v1692_v39 = vmax.f32 %v1380_v25, 0.0  ;;  %v3494_v31 = vld [vmem:[%s3563_s28 + $0x1f0] ss:$8 sps:$4 sm:$0xff]  }
 0x126   : > { %v1629_v40 = vmax.f32 %v1127_v34, 0.0  ;;  %v1693_v41 = vmax.f32 %v1383_v35, 0.0  ;;  %1338 = vmatmul.mubr.bf16.gmra.mrb[112].mxu0 %v3476_v28  ;;  %1594 = vmatmul.mubr.bf16.gmra.mrb[112].mxu1 %v3477_v29 }
 0x127   : > { %1345 = vmatprep.mubr.bf16.mxu0 %v3478_v32  ;;  %1601 = vmatprep.mubr.bf16.mxu1 %v3480_v33  ;;  %v3495_v32 = vld [vmem:[%s3563_s28 + $0x3f0] ss:$8 sps:$4 sm:$0xff]  }
 0x128   : > { %v2872_v42 = vpack.c.bf16 %v1629_v40, %v1628_v38  ;;  %v3032_v43 = vpack.c.bf16 %v1693_v41, %v1692_v39 }
 0x129   : > { %v1131_v44 = vpop.f32.mrb[8].mxu0  ;;  %v1387_v45 = vpop.f32.mrb[8].mxu1 }
 0x12a   : > { %3184 = vst [vmem:[%s3749_s5 + $0x8] sm:$0xff] %v2872_v42   ;;  %3216 = vst [vmem:[%s3749_s5 + $0x108] sm:$0xff] %v3032_v43   ;;  %v1132_v46 = vadd.f32 %v3735_v63, %v1131_v44  ;;  %v1388_v47 = vadd.f32 %v3735_v63, %v1387_v45  ;;  %v1133_v48 = vpop.f32.mrb[9].mxu0  ;;  %v1389_v49 = vpop.f32.mrb[9].mxu1 }
 0x12b   : > { %v1134_v52 = vpop.f32.mrb[10].mxu0  ;;  %v1390_v53 = vpop.f32.mrb[10].mxu1 }
 0x12c   : > { %v1135_v56 = vadd.f32 %v3735_v63, %v1134_v52  ;;  %v1391_v57 = vadd.f32 %v3735_v63, %v1390_v53  ;;  %v1136_v58 = vpop.f32.mrb[11].mxu0  ;;  %v1392_v59 = vpop.f32.mrb[11].mxu1  ;;  %v1630_v60 = vmax.f32 %v1132_v46, 0.0  ;;  %v1694_v61 = vmax.f32 %v1388_v47, 0.0 }
 0x12e   : > { %v1631_v62 = vmax.f32 %v1135_v56, 0.0  ;;  %v1695_v0 = vmax.f32 %v1391_v57, 0.0  ;;  %1346 = vmatmul.mubr.bf16.gmra.mrb[116].mxu0 %v3482_v50  ;;  %1602 = vmatmul.mubr.bf16.gmra.mrb[116].mxu1 %v3483_v51 }
 0x12f   : > { %1353 = vmatprep.mubr.bf16.mxu0 %v3484_v54  ;;  %1609 = vmatprep.mubr.bf16.mxu1 %v3486_v55 }
 0x130   : > { %v2877_v1 = vpack.c.bf16 %v1631_v62, %v1630_v60  ;;  %v3037_v2 = vpack.c.bf16 %v1695_v0, %v1694_v61 }
 0x131   : > { %v1139_v3 = vpop.f32.mrb[12].mxu0  ;;  %v1395_v4 = vpop.f32.mrb[12].mxu1 }
 0x132   : > { %3185 = vst [vmem:[%s3749_s5 + $0x10] sm:$0xff] %v2877_v1   ;;  %3217 = vst [vmem:[%s3749_s5 + $0x110] sm:$0xff] %v3037_v2   ;;  %v1140_v5 = vadd.f32 %v3735_v63, %v1139_v3  ;;  %v1396_v6 = vadd.f32 %v3735_v63, %v1395_v4  ;;  %v1141_v7 = vpop.f32.mrb[13].mxu0  ;;  %v1397_v8 = vpop.f32.mrb[13].mxu1 }
 0x133   : > { %v1142_v11 = vpop.f32.mrb[14].mxu0  ;;  %v1398_v12 = vpop.f32.mrb[14].mxu1 }
 0x134   : > { %v1143_v15 = vadd.f32 %v3735_v63, %v1142_v11  ;;  %v1399_v16 = vadd.f32 %v3735_v63, %v1398_v12  ;;  %v1144_v17 = vpop.f32.mrb[15].mxu0  ;;  %v1400_v18 = vpop.f32.mrb[15].mxu1  ;;  %v1632_v19 = vmax.f32 %v1140_v5, 0.0  ;;  %v1696_v20 = vmax.f32 %v1396_v6, 0.0 }
 0x136   : > { %v1633_v21 = vmax.f32 %v1143_v15, 0.0  ;;  %v1697_v22 = vmax.f32 %v1399_v16, 0.0  ;;  %1354 = vmatmul.mubr.bf16.gmra.mrb[120].mxu0 %v3488_v9  ;;  %1610 = vmatmul.mubr.bf16.gmra.mrb[120].mxu1 %v3489_v10 }
 0x137   : > { %1361 = vmatprep.mubr.bf16.mxu0 %v3490_v13  ;;  %1617 = vmatprep.mubr.bf16.mxu1 %v3492_v14 }
 0x138   : > { %v2882_v23 = vpack.c.bf16 %v1633_v21, %v1632_v19  ;;  %v3042_v24 = vpack.c.bf16 %v1697_v22, %v1696_v20 }
 0x139   : > { %v1147_v25 = vpop.f32.mrb[16].mxu0  ;;  %v1403_v26 = vpop.f32.mrb[16].mxu1 }
 0x13a   : > { %3186 = vst [vmem:[%s3749_s5 + $0x18] sm:$0xff] %v2882_v23   ;;  %3218 = vst [vmem:[%s3749_s5 + $0x118] sm:$0xff] %v3042_v24   ;;  %v1148_v27 = vadd.f32 %v3735_v63, %v1147_v25  ;;  %v1404_v28 = vadd.f32 %v3735_v63, %v1403_v26  ;;  %v1149_v29 = vpop.f32.mrb[17].mxu0  ;;  %v1405_v30 = vpop.f32.mrb[17].mxu1 }
 0x13b   : > { %v1150_v33 = vpop.f32.mrb[18].mxu0  ;;  %v1406_v34 = vpop.f32.mrb[18].mxu1 }
 0x13c   : > { %v1151_v35 = vadd.f32 %v3735_v63, %v1150_v33  ;;  %v1407_v36 = vadd.f32 %v3735_v63, %v1406_v34  ;;  %v1152_v37 = vpop.f32.mrb[19].mxu0  ;;  %v1408_v38 = vpop.f32.mrb[19].mxu1  ;;  %v1634_v39 = vmax.f32 %v1148_v27, 0.0  ;;  %v1698_v40 = vmax.f32 %v1404_v28, 0.0 }
 0x13e   : > { %v1635_v41 = vmax.f32 %v1151_v35, 0.0  ;;  %v1699_v42 = vmax.f32 %v1407_v36, 0.0  ;;  %1362 = vmatmul.mubr.bf16.gmra.mrb[124].mxu0 %v3494_v31  ;;  %1618 = vmatmul.mubr.bf16.gmra.mrb[124].mxu1 %v3495_v32 }
 0x140   : > { %v2887_v43 = vpack.c.bf16 %v1635_v41, %v1634_v39  ;;  %v3047_v44 = vpack.c.bf16 %v1699_v42, %v1698_v40 }
 0x141   : > { %v1155_v45 = vpop.f32.mrb[20].mxu0  ;;  %v1411_v46 = vpop.f32.mrb[20].mxu1 }
 0x142   : > { %3187 = vst [vmem:[%s3749_s5 + $0x20] sm:$0xff] %v2887_v43   ;;  %3219 = vst [vmem:[%s3749_s5 + $0x120] sm:$0xff] %v3047_v44   ;;  %v1156_v47 = vadd.f32 %v3735_v63, %v1155_v45  ;;  %v1412_v48 = vadd.f32 %v3735_v63, %v1411_v46  ;;  %v1157_v49 = vpop.f32.mrb[21].mxu0  ;;  %v1413_v50 = vpop.f32.mrb[21].mxu1 }
 0x143   : > { %v1158_v51 = vpop.f32.mrb[22].mxu0  ;;  %v1414_v52 = vpop.f32.mrb[22].mxu1 }
 0x144   : > { %v1159_v53 = vadd.f32 %v3735_v63, %v1158_v51  ;;  %v1415_v54 = vadd.f32 %v3735_v63, %v1414_v52  ;;  %v1160_v55 = vpop.f32.mrb[23].mxu0  ;;  %v1416_v56 = vpop.f32.mrb[23].mxu1  ;;  %v1636_v57 = vmax.f32 %v1156_v47, 0.0  ;;  %v1700_v58 = vmax.f32 %v1412_v48, 0.0 }
 0x146   : > { %v1637_v59 = vmax.f32 %v1159_v53, 0.0  ;;  %v1701_v60 = vmax.f32 %v1415_v54, 0.0 }
 0x148   : > { %v2892_v61 = vpack.c.bf16 %v1637_v59, %v1636_v57  ;;  %v3052_v62 = vpack.c.bf16 %v1701_v60, %v1700_v58 }
 0x149   : > { %v1163_v0 = vpop.f32.mrb[24].mxu0  ;;  %v1419_v1 = vpop.f32.mrb[24].mxu1 }
 0x14a   : > { %3188 = vst [vmem:[%s3749_s5 + $0x28] sm:$0xff] %v2892_v61   ;;  %3220 = vst [vmem:[%s3749_s5 + $0x128] sm:$0xff] %v3052_v62   ;;  %v1164_v2 = vadd.f32 %v3735_v63, %v1163_v0  ;;  %v1420_v3 = vadd.f32 %v3735_v63, %v1419_v1  ;;  %v1165_v4 = vpop.f32.mrb[25].mxu0  ;;  %v1421_v5 = vpop.f32.mrb[25].mxu1 }
 0x14b   : > { %v1166_v6 = vpop.f32.mrb[26].mxu0  ;;  %v1422_v7 = vpop.f32.mrb[26].mxu1 }
 0x14c   : > { %v1167_v8 = vadd.f32 %v3735_v63, %v1166_v6  ;;  %v1423_v9 = vadd.f32 %v3735_v63, %v1422_v7  ;;  %v1168_v10 = vpop.f32.mrb[27].mxu0  ;;  %v1424_v11 = vpop.f32.mrb[27].mxu1  ;;  %v1638_v12 = vmax.f32 %v1164_v2, 0.0  ;;  %v1702_v13 = vmax.f32 %v1420_v3, 0.0 }
 0x14e   : > { %v1639_v14 = vmax.f32 %v1167_v8, 0.0  ;;  %v1703_v15 = vmax.f32 %v1423_v9, 0.0 }
 0x150   : > { %v2897_v16 = vpack.c.bf16 %v1639_v14, %v1638_v12  ;;  %v3057_v17 = vpack.c.bf16 %v1703_v15, %v1702_v13 }
 0x151   : > { %v1171_v18 = vpop.f32.mrb[28].mxu0  ;;  %v1427_v19 = vpop.f32.mrb[28].mxu1 }
 0x152   : > { %3189 = vst [vmem:[%s3749_s5 + $0x30] sm:$0xff] %v2897_v16   ;;  %3221 = vst [vmem:[%s3749_s5 + $0x130] sm:$0xff] %v3057_v17   ;;  %v1172_v20 = vadd.f32 %v3735_v63, %v1171_v18  ;;  %v1428_v21 = vadd.f32 %v3735_v63, %v1427_v19  ;;  %v1173_v22 = vpop.f32.mrb[29].mxu0  ;;  %v1429_v23 = vpop.f32.mrb[29].mxu1 }
 0x153   : > { %v1174_v24 = vpop.f32.mrb[30].mxu0  ;;  %v1430_v25 = vpop.f32.mrb[30].mxu1 }
 0x154   : > { %v1175_v26 = vadd.f32 %v3735_v63, %v1174_v24  ;;  %v1431_v27 = vadd.f32 %v3735_v63, %v1430_v25  ;;  %v1176_v28 = vpop.f32.mrb[31].mxu0  ;;  %v1432_v29 = vpop.f32.mrb[31].mxu1  ;;  %v1640_v30 = vmax.f32 %v1172_v20, 0.0  ;;  %v1704_v31 = vmax.f32 %v1428_v21, 0.0 }
 0x156   : > { %v1641_v32 = vmax.f32 %v1175_v26, 0.0  ;;  %v1705_v33 = vmax.f32 %v1431_v27, 0.0 }
 0x158   : > { %v2902_v34 = vpack.c.bf16 %v1641_v32, %v1640_v30  ;;  %v3062_v35 = vpack.c.bf16 %v1705_v33, %v1704_v31 }
 0x159   : > { %v1179_v36 = vpop.f32.mrb[32].mxu0  ;;  %v1435_v37 = vpop.f32.mrb[32].mxu1 }
 0x15a   : > { %3190 = vst [vmem:[%s3749_s5 + $0x38] sm:$0xff] %v2902_v34   ;;  %3222 = vst [vmem:[%s3749_s5 + $0x138] sm:$0xff] %v3062_v35   ;;  %v1180_v38 = vadd.f32 %v3735_v63, %v1179_v36  ;;  %v1436_v39 = vadd.f32 %v3735_v63, %v1435_v37  ;;  %v1181_v40 = vpop.f32.mrb[33].mxu0  ;;  %v1437_v41 = vpop.f32.mrb[33].mxu1 }
 0x15b   : > { %v1182_v42 = vpop.f32.mrb[34].mxu0  ;;  %v1438_v43 = vpop.f32.mrb[34].mxu1 }
 0x15c   : > { %v1183_v44 = vadd.f32 %v3735_v63, %v1182_v42  ;;  %v1439_v45 = vadd.f32 %v3735_v63, %v1438_v43  ;;  %v1184_v46 = vpop.f32.mrb[35].mxu0  ;;  %v1440_v47 = vpop.f32.mrb[35].mxu1  ;;  %v1642_v48 = vmax.f32 %v1180_v38, 0.0  ;;  %v1706_v49 = vmax.f32 %v1436_v39, 0.0 }
 0x15e   : > { %v1643_v50 = vmax.f32 %v1183_v44, 0.0  ;;  %v1707_v51 = vmax.f32 %v1439_v45, 0.0 }
 0x160   : > { %v2907_v52 = vpack.c.bf16 %v1643_v50, %v1642_v48  ;;  %v3067_v53 = vpack.c.bf16 %v1707_v51, %v1706_v49 }
 0x161   : > { %v1187_v54 = vpop.f32.mrb[36].mxu0  ;;  %v1443_v55 = vpop.f32.mrb[36].mxu1 }
 0x162   : > { %3191 = vst [vmem:[%s3749_s5 + $0x40] sm:$0xff] %v2907_v52   ;;  %3223 = vst [vmem:[%s3749_s5 + $0x140] sm:$0xff] %v3067_v53   ;;  %v1188_v56 = vadd.f32 %v3735_v63, %v1187_v54  ;;  %v1444_v57 = vadd.f32 %v3735_v63, %v1443_v55  ;;  %v1189_v58 = vpop.f32.mrb[37].mxu0  ;;  %v1445_v59 = vpop.f32.mrb[37].mxu1 }
 0x163   : > { %v1190_v60 = vpop.f32.mrb[38].mxu0  ;;  %v1446_v61 = vpop.f32.mrb[38].mxu1 }
 0x164   : > { %v1191_v62 = vadd.f32 %v3735_v63, %v1190_v60  ;;  %v1447_v0 = vadd.f32 %v3735_v63, %v1446_v61  ;;  %v1192_v1 = vpop.f32.mrb[39].mxu0  ;;  %v1448_v2 = vpop.f32.mrb[39].mxu1  ;;  %v1644_v3 = vmax.f32 %v1188_v56, 0.0  ;;  %v1708_v4 = vmax.f32 %v1444_v57, 0.0 }
 0x166   : > { %v1645_v5 = vmax.f32 %v1191_v62, 0.0  ;;  %v1709_v6 = vmax.f32 %v1447_v0, 0.0 }
 0x168   : > { %v2912_v7 = vpack.c.bf16 %v1645_v5, %v1644_v3  ;;  %v3072_v8 = vpack.c.bf16 %v1709_v6, %v1708_v4 }
 0x169   : > { %v1195_v9 = vpop.f32.mrb[40].mxu0  ;;  %v1451_v10 = vpop.f32.mrb[40].mxu1 }
 0x16a   : > { %3192 = vst [vmem:[%s3749_s5 + $0x48] sm:$0xff] %v2912_v7   ;;  %3224 = vst [vmem:[%s3749_s5 + $0x148] sm:$0xff] %v3072_v8   ;;  %v1196_v11 = vadd.f32 %v3735_v63, %v1195_v9  ;;  %v1452_v12 = vadd.f32 %v3735_v63, %v1451_v10  ;;  %v1197_v13 = vpop.f32.mrb[41].mxu0  ;;  %v1453_v14 = vpop.f32.mrb[41].mxu1 }
 0x16b   : > { %v1198_v15 = vpop.f32.mrb[42].mxu0  ;;  %v1454_v16 = vpop.f32.mrb[42].mxu1 }
 0x16c   : > { %v1199_v17 = vadd.f32 %v3735_v63, %v1198_v15  ;;  %v1455_v18 = vadd.f32 %v3735_v63, %v1454_v16  ;;  %v1200_v19 = vpop.f32.mrb[43].mxu0  ;;  %v1456_v20 = vpop.f32.mrb[43].mxu1  ;;  %v1646_v21 = vmax.f32 %v1196_v11, 0.0  ;;  %v1710_v22 = vmax.f32 %v1452_v12, 0.0 }
 0x16e   : > { %v1647_v23 = vmax.f32 %v1199_v17, 0.0  ;;  %v1711_v24 = vmax.f32 %v1455_v18, 0.0 }
 0x170   : > { %v2917_v25 = vpack.c.bf16 %v1647_v23, %v1646_v21  ;;  %v3077_v26 = vpack.c.bf16 %v1711_v24, %v1710_v22 }
 0x171   : > { %v1203_v27 = vpop.f32.mrb[44].mxu0  ;;  %v1459_v28 = vpop.f32.mrb[44].mxu1 }
 0x172   : > { %3193 = vst [vmem:[%s3749_s5 + $0x50] sm:$0xff] %v2917_v25   ;;  %3225 = vst [vmem:[%s3749_s5 + $0x150] sm:$0xff] %v3077_v26   ;;  %v1204_v29 = vadd.f32 %v3735_v63, %v1203_v27  ;;  %v1460_v30 = vadd.f32 %v3735_v63, %v1459_v28  ;;  %v1205_v31 = vpop.f32.mrb[45].mxu0  ;;  %v1461_v32 = vpop.f32.mrb[45].mxu1 }
 0x173   : > { %v1206_v33 = vpop.f32.mrb[46].mxu0  ;;  %v1462_v34 = vpop.f32.mrb[46].mxu1 }
 0x174   : > { %v1207_v35 = vadd.f32 %v3735_v63, %v1206_v33  ;;  %v1463_v36 = vadd.f32 %v3735_v63, %v1462_v34  ;;  %v1208_v37 = vpop.f32.mrb[47].mxu0  ;;  %v1464_v38 = vpop.f32.mrb[47].mxu1  ;;  %v1648_v39 = vmax.f32 %v1204_v29, 0.0  ;;  %v1712_v40 = vmax.f32 %v1460_v30, 0.0 }
 0x176   : > { %v1649_v41 = vmax.f32 %v1207_v35, 0.0  ;;  %v1713_v42 = vmax.f32 %v1463_v36, 0.0 }
 0x178   : > { %v2922_v43 = vpack.c.bf16 %v1649_v41, %v1648_v39  ;;  %v3082_v44 = vpack.c.bf16 %v1713_v42, %v1712_v40 }
 0x179   : > { %v1211_v45 = vpop.f32.mrb[48].mxu0  ;;  %v1467_v46 = vpop.f32.mrb[48].mxu1 }
 0x17a   : > { %3194 = vst [vmem:[%s3749_s5 + $0x58] sm:$0xff] %v2922_v43   ;;  %3226 = vst [vmem:[%s3749_s5 + $0x158] sm:$0xff] %v3082_v44   ;;  %v1212_v47 = vadd.f32 %v3735_v63, %v1211_v45  ;;  %v1468_v48 = vadd.f32 %v3735_v63, %v1467_v46  ;;  %v1213_v49 = vpop.f32.mrb[49].mxu0  ;;  %v1469_v50 = vpop.f32.mrb[49].mxu1 }
 0x17b   : > { %v1214_v51 = vpop.f32.mrb[50].mxu0  ;;  %v1470_v52 = vpop.f32.mrb[50].mxu1 }
 0x17c   : > { %v1215_v53 = vadd.f32 %v3735_v63, %v1214_v51  ;;  %v1471_v54 = vadd.f32 %v3735_v63, %v1470_v52  ;;  %v1216_v55 = vpop.f32.mrb[51].mxu0  ;;  %v1472_v56 = vpop.f32.mrb[51].mxu1  ;;  %v1650_v57 = vmax.f32 %v1212_v47, 0.0  ;;  %v1714_v58 = vmax.f32 %v1468_v48, 0.0 }
 0x17e   : > { %v1651_v59 = vmax.f32 %v1215_v53, 0.0  ;;  %v1715_v60 = vmax.f32 %v1471_v54, 0.0 }
 0x180   : > { %v2927_v61 = vpack.c.bf16 %v1651_v59, %v1650_v57  ;;  %v3087_v62 = vpack.c.bf16 %v1715_v60, %v1714_v58 }
 0x181   : > { %v1219_v0 = vpop.f32.mrb[52].mxu0  ;;  %v1475_v1 = vpop.f32.mrb[52].mxu1 }
 0x182   : > { %3195 = vst [vmem:[%s3749_s5 + $0x60] sm:$0xff] %v2927_v61   ;;  %3227 = vst [vmem:[%s3749_s5 + $0x160] sm:$0xff] %v3087_v62   ;;  %v1220_v2 = vadd.f32 %v3735_v63, %v1219_v0  ;;  %v1476_v3 = vadd.f32 %v3735_v63, %v1475_v1  ;;  %v1221_v4 = vpop.f32.mrb[53].mxu0  ;;  %v1477_v5 = vpop.f32.mrb[53].mxu1 }
 0x183   : > { %v1222_v6 = vpop.f32.mrb[54].mxu0  ;;  %v1478_v7 = vpop.f32.mrb[54].mxu1 }
 0x184   : > { %v1223_v8 = vadd.f32 %v3735_v63, %v1222_v6  ;;  %v1479_v9 = vadd.f32 %v3735_v63, %v1478_v7  ;;  %v1224_v10 = vpop.f32.mrb[55].mxu0  ;;  %v1480_v11 = vpop.f32.mrb[55].mxu1  ;;  %v1652_v12 = vmax.f32 %v1220_v2, 0.0  ;;  %v1716_v13 = vmax.f32 %v1476_v3, 0.0 }
 0x186   : > { %v1653_v14 = vmax.f32 %v1223_v8, 0.0  ;;  %v1717_v15 = vmax.f32 %v1479_v9, 0.0 }
 0x188   : > { %v2932_v16 = vpack.c.bf16 %v1653_v14, %v1652_v12  ;;  %v3092_v17 = vpack.c.bf16 %v1717_v15, %v1716_v13 }
 0x189   : > { %v1227_v18 = vpop.f32.mrb[56].mxu0  ;;  %v1483_v19 = vpop.f32.mrb[56].mxu1 }
 0x18a   : > { %3196 = vst [vmem:[%s3749_s5 + $0x68] sm:$0xff] %v2932_v16   ;;  %3228 = vst [vmem:[%s3749_s5 + $0x168] sm:$0xff] %v3092_v17   ;;  %v1228_v20 = vadd.f32 %v3735_v63, %v1227_v18  ;;  %v1484_v21 = vadd.f32 %v3735_v63, %v1483_v19  ;;  %v1229_v22 = vpop.f32.mrb[57].mxu0  ;;  %v1485_v23 = vpop.f32.mrb[57].mxu1 }
 0x18b   : > { %v1230_v24 = vpop.f32.mrb[58].mxu0  ;;  %v1486_v25 = vpop.f32.mrb[58].mxu1 }
 0x18c   : > { %v1231_v26 = vadd.f32 %v3735_v63, %v1230_v24  ;;  %v1487_v27 = vadd.f32 %v3735_v63, %v1486_v25  ;;  %v1232_v28 = vpop.f32.mrb[59].mxu0  ;;  %v1488_v29 = vpop.f32.mrb[59].mxu1  ;;  %v1654_v30 = vmax.f32 %v1228_v20, 0.0  ;;  %v1718_v31 = vmax.f32 %v1484_v21, 0.0 }
 0x18e   : > { %v1655_v32 = vmax.f32 %v1231_v26, 0.0  ;;  %v1719_v33 = vmax.f32 %v1487_v27, 0.0 }
 0x190   : > { %v2937_v34 = vpack.c.bf16 %v1655_v32, %v1654_v30  ;;  %v3097_v35 = vpack.c.bf16 %v1719_v33, %v1718_v31 }
 0x191   : > { %v1235_v36 = vpop.f32.mrb[60].mxu0  ;;  %v1491_v37 = vpop.f32.mrb[60].mxu1 }
 0x192   : > { %3197 = vst [vmem:[%s3749_s5 + $0x70] sm:$0xff] %v2937_v34   ;;  %3229 = vst [vmem:[%s3749_s5 + $0x170] sm:$0xff] %v3097_v35   ;;  %v1236_v38 = vadd.f32 %v3735_v63, %v1235_v36  ;;  %v1492_v39 = vadd.f32 %v3735_v63, %v1491_v37  ;;  %v1237_v40 = vpop.f32.mrb[61].mxu0  ;;  %v1493_v41 = vpop.f32.mrb[61].mxu1 }
 0x193   : > { %v1238_v42 = vpop.f32.mrb[62].mxu0  ;;  %v1494_v43 = vpop.f32.mrb[62].mxu1 }
 0x194   : > { %v1239_v44 = vadd.f32 %v3735_v63, %v1238_v42  ;;  %v1495_v45 = vadd.f32 %v3735_v63, %v1494_v43  ;;  %v1240_v46 = vpop.f32.mrb[63].mxu0  ;;  %v1496_v47 = vpop.f32.mrb[63].mxu1  ;;  %v1656_v48 = vmax.f32 %v1236_v38, 0.0  ;;  %v1720_v49 = vmax.f32 %v1492_v39, 0.0 }
 0x196   : > { %v1657_v50 = vmax.f32 %v1239_v44, 0.0  ;;  %v1721_v51 = vmax.f32 %v1495_v45, 0.0 }
 0x198   : > { %v2942_v52 = vpack.c.bf16 %v1657_v50, %v1656_v48  ;;  %v3102_v53 = vpack.c.bf16 %v1721_v51, %v1720_v49 }
 0x199   : > { %v1243_v54 = vpop.f32.mrb[64].mxu0  ;;  %v1499_v55 = vpop.f32.mrb[64].mxu1 }
 0x19a   : > { %3198 = vst [vmem:[%s3749_s5 + $0x78] sm:$0xff] %v2942_v52   ;;  %3230 = vst [vmem:[%s3749_s5 + $0x178] sm:$0xff] %v3102_v53   ;;  %v1244_v56 = vadd.f32 %v3735_v63, %v1243_v54  ;;  %v1500_v57 = vadd.f32 %v3735_v63, %v1499_v55  ;;  %v1245_v58 = vpop.f32.mrb[65].mxu0  ;;  %v1501_v59 = vpop.f32.mrb[65].mxu1 }
 0x19b   : > { %v1246_v60 = vpop.f32.mrb[66].mxu0  ;;  %v1502_v61 = vpop.f32.mrb[66].mxu1 }
 0x19c   : > { %v1247_v62 = vadd.f32 %v3735_v63, %v1246_v60  ;;  %v1503_v0 = vadd.f32 %v3735_v63, %v1502_v61  ;;  %v1248_v1 = vpop.f32.mrb[67].mxu0  ;;  %v1504_v2 = vpop.f32.mrb[67].mxu1  ;;  %v1658_v3 = vmax.f32 %v1244_v56, 0.0  ;;  %v1722_v4 = vmax.f32 %v1500_v57, 0.0 }
 0x19e   : > { %v1659_v5 = vmax.f32 %v1247_v62, 0.0  ;;  %v1723_v6 = vmax.f32 %v1503_v0, 0.0 }
 0x1a0   : > { %v2947_v7 = vpack.c.bf16 %v1659_v5, %v1658_v3  ;;  %v3107_v8 = vpack.c.bf16 %v1723_v6, %v1722_v4 }
 0x1a1   : > { %v1251_v9 = vpop.f32.mrb[68].mxu0  ;;  %v1507_v10 = vpop.f32.mrb[68].mxu1 }
 0x1a2   : > { %3199 = vst [vmem:[%s3749_s5 + $0x80] sm:$0xff] %v2947_v7   ;;  %3231 = vst [vmem:[%s3749_s5 + $0x180] sm:$0xff] %v3107_v8   ;;  %v1252_v11 = vadd.f32 %v3735_v63, %v1251_v9  ;;  %v1508_v12 = vadd.f32 %v3735_v63, %v1507_v10  ;;  %v1253_v13 = vpop.f32.mrb[69].mxu0  ;;  %v1509_v14 = vpop.f32.mrb[69].mxu1 }
 0x1a3   : > { %v1254_v15 = vpop.f32.mrb[70].mxu0  ;;  %v1510_v16 = vpop.f32.mrb[70].mxu1 }
 0x1a4   : > { %v1255_v17 = vadd.f32 %v3735_v63, %v1254_v15  ;;  %v1511_v18 = vadd.f32 %v3735_v63, %v1510_v16  ;;  %v1256_v19 = vpop.f32.mrb[71].mxu0  ;;  %v1512_v20 = vpop.f32.mrb[71].mxu1  ;;  %v1660_v21 = vmax.f32 %v1252_v11, 0.0  ;;  %v1724_v22 = vmax.f32 %v1508_v12, 0.0 }
 0x1a6   : > { %v1661_v23 = vmax.f32 %v1255_v17, 0.0  ;;  %v1725_v24 = vmax.f32 %v1511_v18, 0.0 }
 0x1a8   : > { %v2952_v25 = vpack.c.bf16 %v1661_v23, %v1660_v21  ;;  %v3112_v26 = vpack.c.bf16 %v1725_v24, %v1724_v22 }
 0x1a9   : > { %v1259_v27 = vpop.f32.mrb[72].mxu0  ;;  %v1515_v28 = vpop.f32.mrb[72].mxu1 }
 0x1aa   : > { %3200 = vst [vmem:[%s3749_s5 + $0x88] sm:$0xff] %v2952_v25   ;;  %3232 = vst [vmem:[%s3749_s5 + $0x188] sm:$0xff] %v3112_v26   ;;  %v1260_v29 = vadd.f32 %v3735_v63, %v1259_v27  ;;  %v1516_v30 = vadd.f32 %v3735_v63, %v1515_v28  ;;  %v1261_v31 = vpop.f32.mrb[73].mxu0  ;;  %v1517_v32 = vpop.f32.mrb[73].mxu1 }
 0x1ab   : > { %v1262_v33 = vpop.f32.mrb[74].mxu0  ;;  %v1518_v34 = vpop.f32.mrb[74].mxu1 }
 0x1ac   : > { %v1263_v35 = vadd.f32 %v3735_v63, %v1262_v33  ;;  %v1519_v36 = vadd.f32 %v3735_v63, %v1518_v34  ;;  %v1264_v37 = vpop.f32.mrb[75].mxu0  ;;  %v1520_v38 = vpop.f32.mrb[75].mxu1  ;;  %v1662_v39 = vmax.f32 %v1260_v29, 0.0  ;;  %v1726_v40 = vmax.f32 %v1516_v30, 0.0 }
 0x1ae   : > { %v1663_v41 = vmax.f32 %v1263_v35, 0.0  ;;  %v1727_v42 = vmax.f32 %v1519_v36, 0.0 }
 0x1b0   : > { %v2957_v43 = vpack.c.bf16 %v1663_v41, %v1662_v39  ;;  %v3117_v44 = vpack.c.bf16 %v1727_v42, %v1726_v40 }
 0x1b1   : > { %v1267_v45 = vpop.f32.mrb[76].mxu0  ;;  %v1523_v46 = vpop.f32.mrb[76].mxu1 }
 0x1b2   : > { %3201 = vst [vmem:[%s3749_s5 + $0x90] sm:$0xff] %v2957_v43   ;;  %3233 = vst [vmem:[%s3749_s5 + $0x190] sm:$0xff] %v3117_v44   ;;  %v1268_v47 = vadd.f32 %v3735_v63, %v1267_v45  ;;  %v1524_v48 = vadd.f32 %v3735_v63, %v1523_v46  ;;  %v1269_v49 = vpop.f32.mrb[77].mxu0  ;;  %v1525_v50 = vpop.f32.mrb[77].mxu1 }
 0x1b3   : > { %v1270_v51 = vpop.f32.mrb[78].mxu0  ;;  %v1526_v52 = vpop.f32.mrb[78].mxu1 }
 0x1b4   : > { %v1271_v53 = vadd.f32 %v3735_v63, %v1270_v51  ;;  %v1527_v54 = vadd.f32 %v3735_v63, %v1526_v52  ;;  %v1272_v55 = vpop.f32.mrb[79].mxu0  ;;  %v1528_v56 = vpop.f32.mrb[79].mxu1  ;;  %v1664_v57 = vmax.f32 %v1268_v47, 0.0  ;;  %v1728_v58 = vmax.f32 %v1524_v48, 0.0 }
 0x1b6   : > { %v1665_v59 = vmax.f32 %v1271_v53, 0.0  ;;  %v1729_v60 = vmax.f32 %v1527_v54, 0.0 }
 0x1b8   : > { %v2962_v61 = vpack.c.bf16 %v1665_v59, %v1664_v57  ;;  %v3122_v62 = vpack.c.bf16 %v1729_v60, %v1728_v58 }
 0x1b9   : > { %v1275_v0 = vpop.f32.mrb[80].mxu0  ;;  %v1531_v1 = vpop.f32.mrb[80].mxu1 }
 0x1ba   : > { %3202 = vst [vmem:[%s3749_s5 + $0x98] sm:$0xff] %v2962_v61   ;;  %3234 = vst [vmem:[%s3749_s5 + $0x198] sm:$0xff] %v3122_v62   ;;  %v1276_v2 = vadd.f32 %v3735_v63, %v1275_v0  ;;  %v1532_v3 = vadd.f32 %v3735_v63, %v1531_v1  ;;  %v1277_v4 = vpop.f32.mrb[81].mxu0  ;;  %v1533_v5 = vpop.f32.mrb[81].mxu1 }
 0x1bb   : > { %v1278_v6 = vpop.f32.mrb[82].mxu0  ;;  %v1534_v7 = vpop.f32.mrb[82].mxu1 }
 0x1bc   : > { %v1279_v8 = vadd.f32 %v3735_v63, %v1278_v6  ;;  %v1535_v9 = vadd.f32 %v3735_v63, %v1534_v7  ;;  %v1280_v10 = vpop.f32.mrb[83].mxu0  ;;  %v1536_v11 = vpop.f32.mrb[83].mxu1  ;;  %v1666_v12 = vmax.f32 %v1276_v2, 0.0  ;;  %v1730_v13 = vmax.f32 %v1532_v3, 0.0 }
 0x1bd   : > { %v3908_v11 = vld [vmem:[%s3963_s2] ss:$0 sm:$0xff] }
 0x1be   : > { %v1667_v14 = vmax.f32 %v1279_v8, 0.0  ;;  %v1731_v15 = vmax.f32 %v1535_v9, 0.0 }
 0x1c0   : > { %v2967_v16 = vpack.c.bf16 %v1667_v14, %v1666_v12  ;;  %v3127_v17 = vpack.c.bf16 %v1731_v15, %v1730_v13 }
 0x1c1   : > { %v1283_v18 = vpop.f32.mrb[84].mxu0  ;;  %v1539_v19 = vpop.f32.mrb[84].mxu1 }
 0x1c2   : > { %3203 = vst [vmem:[%s3749_s5 + $0xa0] sm:$0xff] %v2967_v16   ;;  %3235 = vst [vmem:[%s3749_s5 + $0x1a0] sm:$0xff] %v3127_v17   ;;  %v1284_v20 = vadd.f32 %v3735_v63, %v1283_v18  ;;  %v1540_v21 = vadd.f32 %v3735_v63, %v1539_v19  ;;  %v1285_v22 = vpop.f32.mrb[85].mxu0  ;;  %v1541_v23 = vpop.f32.mrb[85].mxu1 }
 0x1c3   : > { %v1286_v24 = vpop.f32.mrb[86].mxu0  ;;  %v1542_v25 = vpop.f32.mrb[86].mxu1 }
 0x1c4   : > { %v1287_v26 = vadd.f32 %v3735_v63, %v1286_v24  ;;  %v1543_v27 = vadd.f32 %v3735_v63, %v1542_v25  ;;  %v1288_v28 = vpop.f32.mrb[87].mxu0  ;;  %v1544_v29 = vpop.f32.mrb[87].mxu1  ;;  %v1668_v30 = vmax.f32 %v1284_v20, 0.0  ;;  %v1732_v31 = vmax.f32 %v1540_v21, 0.0 }
 0x1c6   : > { %v1669_v32 = vmax.f32 %v1287_v26, 0.0  ;;  %v1733_v33 = vmax.f32 %v1543_v27, 0.0 }
 0x1c8   : > { %v2972_v34 = vpack.c.bf16 %v1669_v32, %v1668_v30  ;;  %v3132_v35 = vpack.c.bf16 %v1733_v33, %v1732_v31 }
 0x1c9   : > { %v1291_v36 = vpop.f32.mrb[88].mxu0  ;;  %v1547_v37 = vpop.f32.mrb[88].mxu1 }
 0x1ca   : > { %3204 = vst [vmem:[%s3749_s5 + $0xa8] sm:$0xff] %v2972_v34   ;;  %3236 = vst [vmem:[%s3749_s5 + $0x1a8] sm:$0xff] %v3132_v35   ;;  %v1292_v38 = vadd.f32 %v3735_v63, %v1291_v36  ;;  %v1548_v39 = vadd.f32 %v3735_v63, %v1547_v37  ;;  %v1293_v40 = vpop.f32.mrb[89].mxu0  ;;  %v1549_v41 = vpop.f32.mrb[89].mxu1 }
 0x1cb   : > { %v1294_v42 = vpop.f32.mrb[90].mxu0  ;;  %v1550_v43 = vpop.f32.mrb[90].mxu1 }
 0x1cc   : > { %v1295_v44 = vadd.f32 %v3735_v63, %v1294_v42  ;;  %v1551_v45 = vadd.f32 %v3735_v63, %v1550_v43  ;;  %v1296_v46 = vpop.f32.mrb[91].mxu0  ;;  %v1552_v47 = vpop.f32.mrb[91].mxu1  ;;  %v1670_v48 = vmax.f32 %v1292_v38, 0.0  ;;  %v1734_v49 = vmax.f32 %v1548_v39, 0.0 }
 0x1ce   : > { %v1671_v50 = vmax.f32 %v1295_v44, 0.0  ;;  %v1735_v51 = vmax.f32 %v1551_v45, 0.0 }
 0x1d0   : > { %v2977_v52 = vpack.c.bf16 %v1671_v50, %v1670_v48  ;;  %v3137_v53 = vpack.c.bf16 %v1735_v51, %v1734_v49 }
 0x1d1   : > { %v1299_v54 = vpop.f32.mrb[92].mxu0  ;;  %v1555_v55 = vpop.f32.mrb[92].mxu1 }
 0x1d2   : > { %3205 = vst [vmem:[%s3749_s5 + $0xb0] sm:$0xff] %v2977_v52   ;;  %3237 = vst [vmem:[%s3749_s5 + $0x1b0] sm:$0xff] %v3137_v53   ;;  %v1300_v56 = vadd.f32 %v3735_v63, %v1299_v54  ;;  %v1556_v57 = vadd.f32 %v3735_v63, %v1555_v55  ;;  %v1301_v58 = vpop.f32.mrb[93].mxu0  ;;  %v1557_v59 = vpop.f32.mrb[93].mxu1 }
 0x1d3   : > { %v1302_v60 = vpop.f32.mrb[94].mxu0  ;;  %v1558_v61 = vpop.f32.mrb[94].mxu1 }
 0x1d4   : > { %v1303_v62 = vadd.f32 %v3735_v63, %v1302_v60  ;;  %v1559_v0 = vadd.f32 %v3735_v63, %v1558_v61  ;;  %v1304_v1 = vpop.f32.mrb[95].mxu0  ;;  %v1560_v2 = vpop.f32.mrb[95].mxu1  ;;  %v1672_v3 = vmax.f32 %v1300_v56, 0.0  ;;  %v1736_v4 = vmax.f32 %v1556_v57, 0.0 }
 0x1d6   : > { %v1673_v5 = vmax.f32 %v1303_v62, 0.0  ;;  %v1737_v6 = vmax.f32 %v1559_v0, 0.0 }
 0x1d8   : > { %v2982_v7 = vpack.c.bf16 %v1673_v5, %v1672_v3  ;;  %v3142_v8 = vpack.c.bf16 %v1737_v6, %v1736_v4 }
 0x1d9   : > { %v1307_v9 = vpop.f32.mrb[96].mxu0  ;;  %v1563_v10 = vpop.f32.mrb[96].mxu1 }
 0x1da   : > { %3206 = vst [vmem:[%s3749_s5 + $0xb8] sm:$0xff] %v2982_v7   ;;  %3238 = vst [vmem:[%s3749_s5 + $0x1b8] sm:$0xff] %v3142_v8   ;;  %v1308_v12 = vadd.f32 %v3908_v11, %v1307_v9  ;;  %v1564_v63 = vadd.f32 %v3908_v11, %v1563_v10  ;;  %v1309_v13 = vpop.f32.mrb[97].mxu0  ;;  %v1565_v14 = vpop.f32.mrb[97].mxu1 }
 0x1db   : > { %v1310_v15 = vpop.f32.mrb[98].mxu0  ;;  %v1566_v16 = vpop.f32.mrb[98].mxu1 }
 0x1dc   : > { %v1311_v17 = vadd.f32 %v3908_v11, %v1310_v15  ;;  %v1567_v18 = vadd.f32 %v3908_v11, %v1566_v16  ;;  %v1312_v19 = vpop.f32.mrb[99].mxu0  ;;  %v1568_v20 = vpop.f32.mrb[99].mxu1  ;;  %v1674_v21 = vmax.f32 %v1308_v12, 0.0  ;;  %v1738_v22 = vmax.f32 %v1564_v63, 0.0 }
 0x1de   : > { %v1675_v23 = vmax.f32 %v1311_v17, 0.0  ;;  %v1739_v24 = vmax.f32 %v1567_v18, 0.0 }
 0x1e0   : > { %v2987_v25 = vpack.c.bf16 %v1675_v23, %v1674_v21  ;;  %v3147_v26 = vpack.c.bf16 %v1739_v24, %v1738_v22 }
 0x1e1   : > { %v1315_v27 = vpop.f32.mrb[100].mxu0  ;;  %v1571_v28 = vpop.f32.mrb[100].mxu1 }
 0x1e2   : > { %3207 = vst [vmem:[%s3749_s5 + $0xc0] sm:$0xff] %v2987_v25   ;;  %3239 = vst [vmem:[%s3749_s5 + $0x1c0] sm:$0xff] %v3147_v26   ;;  %v1316_v29 = vadd.f32 %v3908_v11, %v1315_v27  ;;  %v1572_v30 = vadd.f32 %v3908_v11, %v1571_v28  ;;  %v1317_v31 = vpop.f32.mrb[101].mxu0  ;;  %v1573_v32 = vpop.f32.mrb[101].mxu1 }
 0x1e3   : > { %v1318_v33 = vpop.f32.mrb[102].mxu0  ;;  %v1574_v34 = vpop.f32.mrb[102].mxu1 }
 0x1e4   : > { %v1319_v35 = vadd.f32 %v3908_v11, %v1318_v33  ;;  %v1575_v36 = vadd.f32 %v3908_v11, %v1574_v34  ;;  %v1320_v37 = vpop.f32.mrb[103].mxu0  ;;  %v1576_v38 = vpop.f32.mrb[103].mxu1  ;;  %v1676_v39 = vmax.f32 %v1316_v29, 0.0  ;;  %v1740_v40 = vmax.f32 %v1572_v30, 0.0 }
 0x1e6   : > { %v1677_v41 = vmax.f32 %v1319_v35, 0.0  ;;  %v1741_v42 = vmax.f32 %v1575_v36, 0.0 }
 0x1e8   : > { %v2992_v43 = vpack.c.bf16 %v1677_v41, %v1676_v39  ;;  %v3152_v44 = vpack.c.bf16 %v1741_v42, %v1740_v40 }
 0x1e9   : > { %v1323_v45 = vpop.f32.mrb[104].mxu0  ;;  %v1579_v46 = vpop.f32.mrb[104].mxu1 }
 0x1ea   : > { %3208 = vst [vmem:[%s3749_s5 + $0xc8] sm:$0xff] %v2992_v43   ;;  %3240 = vst [vmem:[%s3749_s5 + $0x1c8] sm:$0xff] %v3152_v44   ;;  %v1324_v47 = vadd.f32 %v3908_v11, %v1323_v45  ;;  %v1580_v48 = vadd.f32 %v3908_v11, %v1579_v46  ;;  %v1325_v49 = vpop.f32.mrb[105].mxu0  ;;  %v1581_v50 = vpop.f32.mrb[105].mxu1 }
 0x1eb   : > { %v1326_v51 = vpop.f32.mrb[106].mxu0  ;;  %v1582_v52 = vpop.f32.mrb[106].mxu1 }
 0x1ec   : > { %v1327_v53 = vadd.f32 %v3908_v11, %v1326_v51  ;;  %v1583_v54 = vadd.f32 %v3908_v11, %v1582_v52  ;;  %v1328_v55 = vpop.f32.mrb[107].mxu0  ;;  %v1584_v56 = vpop.f32.mrb[107].mxu1  ;;  %v1678_v57 = vmax.f32 %v1324_v47, 0.0  ;;  %v1742_v58 = vmax.f32 %v1580_v48, 0.0 }
 0x1ee   : > { %v1679_v59 = vmax.f32 %v1327_v53, 0.0  ;;  %v1743_v60 = vmax.f32 %v1583_v54, 0.0 }
 0x1f0   : > { %v2997_v61 = vpack.c.bf16 %v1679_v59, %v1678_v57  ;;  %v3157_v62 = vpack.c.bf16 %v1743_v60, %v1742_v58 }
 0x1f1   : > { %v1331_v0 = vpop.f32.mrb[108].mxu0  ;;  %v1587_v1 = vpop.f32.mrb[108].mxu1 }
 0x1f2   : > { %3209 = vst [vmem:[%s3749_s5 + $0xd0] sm:$0xff] %v2997_v61   ;;  %3241 = vst [vmem:[%s3749_s5 + $0x1d0] sm:$0xff] %v3157_v62   ;;  %v1332_v2 = vadd.f32 %v3908_v11, %v1331_v0  ;;  %v1588_v3 = vadd.f32 %v3908_v11, %v1587_v1  ;;  %v1333_v4 = vpop.f32.mrb[109].mxu0  ;;  %v1589_v5 = vpop.f32.mrb[109].mxu1 }
 0x1f3   : > { %v1334_v6 = vpop.f32.mrb[110].mxu0  ;;  %v1590_v7 = vpop.f32.mrb[110].mxu1 }
 0x1f4   : > { %v1335_v8 = vadd.f32 %v3908_v11, %v1334_v6  ;;  %v1591_v9 = vadd.f32 %v3908_v11, %v1590_v7  ;;  %v1336_v10 = vpop.f32.mrb[111].mxu0  ;;  %v1592_v12 = vpop.f32.mrb[111].mxu1  ;;  %v1680_v63 = vmax.f32 %v1332_v2, 0.0  ;;  %v1744_v13 = vmax.f32 %v1588_v3, 0.0 }
 0x1f6   : > { %v1681_v14 = vmax.f32 %v1335_v8, 0.0  ;;  %v1745_v15 = vmax.f32 %v1591_v9, 0.0 }
 0x1f8   : > { %v3002_v16 = vpack.c.bf16 %v1681_v14, %v1680_v63  ;;  %v3162_v17 = vpack.c.bf16 %v1745_v15, %v1744_v13 }
 0x1f9   : > { %v1339_v18 = vpop.f32.mrb[112].mxu0  ;;  %v1595_v19 = vpop.f32.mrb[112].mxu1 }
 0x1fa   : > { %3210 = vst [vmem:[%s3749_s5 + $0xd8] sm:$0xff] %v3002_v16   ;;  %3242 = vst [vmem:[%s3749_s5 + $0x1d8] sm:$0xff] %v3162_v17   ;;  %v1340_v20 = vadd.f32 %v3908_v11, %v1339_v18  ;;  %v1596_v21 = vadd.f32 %v3908_v11, %v1595_v19  ;;  %v1341_v22 = vpop.f32.mrb[113].mxu0  ;;  %v1597_v23 = vpop.f32.mrb[113].mxu1 }
 0x1fb   : > { %v1342_v24 = vpop.f32.mrb[114].mxu0  ;;  %v1598_v25 = vpop.f32.mrb[114].mxu1 }
 0x1fc   : > { %v1343_v26 = vadd.f32 %v3908_v11, %v1342_v24  ;;  %v1599_v27 = vadd.f32 %v3908_v11, %v1598_v25  ;;  %v1344_v28 = vpop.f32.mrb[115].mxu0  ;;  %v1600_v29 = vpop.f32.mrb[115].mxu1  ;;  %v1682_v30 = vmax.f32 %v1340_v20, 0.0  ;;  %v1746_v31 = vmax.f32 %v1596_v21, 0.0 }
 0x1fe   : > { %v1683_v32 = vmax.f32 %v1343_v26, 0.0  ;;  %v1747_v33 = vmax.f32 %v1599_v27, 0.0 }
 0x200   : > { %v3007_v34 = vpack.c.bf16 %v1683_v32, %v1682_v30  ;;  %v3167_v35 = vpack.c.bf16 %v1747_v33, %v1746_v31 }
 0x201   : > { %v1347_v36 = vpop.f32.mrb[116].mxu0  ;;  %v1603_v37 = vpop.f32.mrb[116].mxu1 }
 0x202   : > { %3211 = vst [vmem:[%s3749_s5 + $0xe0] sm:$0xff] %v3007_v34   ;;  %3243 = vst [vmem:[%s3749_s5 + $0x1e0] sm:$0xff] %v3167_v35   ;;  %v1348_v38 = vadd.f32 %v3908_v11, %v1347_v36  ;;  %v1604_v39 = vadd.f32 %v3908_v11, %v1603_v37  ;;  %v1349_v40 = vpop.f32.mrb[117].mxu0  ;;  %v1605_v41 = vpop.f32.mrb[117].mxu1 }
 0x203   : > { %v1350_v42 = vpop.f32.mrb[118].mxu0  ;;  %v1606_v43 = vpop.f32.mrb[118].mxu1 }
 0x204   : > { %v1351_v44 = vadd.f32 %v3908_v11, %v1350_v42  ;;  %v1607_v45 = vadd.f32 %v3908_v11, %v1606_v43  ;;  %v1352_v46 = vpop.f32.mrb[119].mxu0  ;;  %v1608_v47 = vpop.f32.mrb[119].mxu1  ;;  %v1684_v48 = vmax.f32 %v1348_v38, 0.0  ;;  %v1748_v49 = vmax.f32 %v1604_v39, 0.0 }
 0x206   : > { %v1685_v50 = vmax.f32 %v1351_v44, 0.0  ;;  %v1749_v51 = vmax.f32 %v1607_v45, 0.0 }
 0x208   : > { %v3012_v52 = vpack.c.bf16 %v1685_v50, %v1684_v48  ;;  %v3172_v53 = vpack.c.bf16 %v1749_v51, %v1748_v49 }
 0x209   : > { %v1355_v54 = vpop.f32.mrb[120].mxu0  ;;  %v1611_v55 = vpop.f32.mrb[120].mxu1 }
 0x20a   : > { %3212 = vst [vmem:[%s3749_s5 + $0xe8] sm:$0xff] %v3012_v52   ;;  %3244 = vst [vmem:[%s3749_s5 + $0x1e8] sm:$0xff] %v3172_v53   ;;  %v1356_v56 = vadd.f32 %v3908_v11, %v1355_v54  ;;  %v1612_v57 = vadd.f32 %v3908_v11, %v1611_v55  ;;  %v1357_v58 = vpop.f32.mrb[121].mxu0  ;;  %v1613_v59 = vpop.f32.mrb[121].mxu1 }
 0x20b   : > { %v1358_v60 = vpop.f32.mrb[122].mxu0  ;;  %v1614_v61 = vpop.f32.mrb[122].mxu1 }
 0x20c   : > { %v1359_v62 = vadd.f32 %v3908_v11, %v1358_v60  ;;  %v1615_v0 = vadd.f32 %v3908_v11, %v1614_v61  ;;  %v1360_v1 = vpop.f32.mrb[123].mxu0  ;;  %v1616_v2 = vpop.f32.mrb[123].mxu1  ;;  %v1686_v3 = vmax.f32 %v1356_v56, 0.0  ;;  %v1750_v4 = vmax.f32 %v1612_v57, 0.0 }
 0x20e   : > { %v1687_v5 = vmax.f32 %v1359_v62, 0.0  ;;  %v1751_v6 = vmax.f32 %v1615_v0, 0.0 }
 0x210   : > { %v3017_v7 = vpack.c.bf16 %v1687_v5, %v1686_v3  ;;  %v3177_v8 = vpack.c.bf16 %v1751_v6, %v1750_v4 }
 0x211   : > { %v1363_v9 = vpop.f32.mrb[124].mxu0  ;;  %v1619_v10 = vpop.f32.mrb[124].mxu1 }
 0x212   : > { %3213 = vst [vmem:[%s3749_s5 + $0xf0] sm:$0xff] %v3017_v7   ;;  %3245 = vst [vmem:[%s3749_s5 + $0x1f0] sm:$0xff] %v3177_v8   ;;  %v1364_v12 = vadd.f32 %v3908_v11, %v1363_v9  ;;  %v1620_v63 = vadd.f32 %v3908_v11, %v1619_v10  ;;  %v1365_v13 = vpop.f32.mrb[125].mxu0  ;;  %v1621_v14 = vpop.f32.mrb[125].mxu1 }
 0x213   : > { %v1366_v15 = vpop.f32.mrb[126].mxu0  ;;  %v1622_v16 = vpop.f32.mrb[126].mxu1 }
 0x214   : > { %v1367_v17 = vadd.f32 %v3908_v11, %v1366_v15  ;;  %v1623_v18 = vadd.f32 %v3908_v11, %v1622_v16  ;;  %v1368_v19 = vpop.f32.mrb[127].mxu0  ;;  %v1624_v20 = vpop.f32.mrb[127].mxu1  ;;  %v1688_v21 = vmax.f32 %v1364_v12, 0.0  ;;  %v1752_v22 = vmax.f32 %v1620_v63, 0.0 }
 0x216   : > { %v1689_v23 = vmax.f32 %v1367_v17, 0.0  ;;  %v1753_v24 = vmax.f32 %v1623_v18, 0.0 }
 0x218   : > { %v3022_v25 = vpack.c.bf16 %v1689_v23, %v1688_v21  ;;  %v3182_v26 = vpack.c.bf16 %v1753_v24, %v1752_v22 }
 0x21a   : > { %3214 = vst [vmem:[%s3749_s5 + $0xf8] sm:$0xff] %v3022_v25   ;;  %3246 = vst [vmem:[%s3749_s5 + $0x1f8] sm:$0xff] %v3182_v26  }
 0x21b PF: > { %s13_s12 = sadd.s32 1, %s3503_s12  }
 0x21c   : > { %p10_p4 = scmp.ge.s32.totalorder %s13_s12, 4  }
 0x21e   :  { %12 = sbr.rel (!%p10_p4) target bundleno = 1 (0x1), region = 62 }

// kernel: generator_forward.9
= control target key start
LH: loop header
LB: loop body
LE: loop exit
PB: predicated region body
PF: predicated region fallthrough
CT: control target
= control target key end

     0   :  { %s3321_s12 = smov 0   ;;  %s4007_s0 = inlined_call_operand.vmem [shape: bf16[8192,128], index: 0, kind: input, shape index: {}]   ;;  %s4008_s1 = inlined_call_operand.vmem [shape: bf16[128,128], index: 1, kind: input, shape index: {}]   ;;  %s4009_s2 = inlined_call_operand.vmem [shape: f32[1,128], index: 2, kind: input, shape index: {}]   ;;  %s4010_s3 = inlined_call_operand.vmem [shape: f32[8192,128], index: 3, kind: output, shape index: {}]  }
   0x1 LB: > { %s2255_s13 = sadd.s32 4294967295, %s3299_s12   ;;  %p2259_p0 = scmp.ge.s32.totalorder %s3299_s12, 1  ;;  %s3299_s12 = sphi %s3321_s12, %s13_s12  }
   0x2   : > { %p138_p1 = scmp.lt.s32.totalorder %s3299_s12, 9 }
   0x4   : > { %p139_p2 = pnand %p2259_p0, %p138_p1 }
   0x6   : > { %142 = sbr.rel (%p139_p2) target bundleno = 535 (0x217), region = 32 }
   0xd   : > { %v2707_v0 = vld [vmem:[%s4008_s1] sm:$0xff]   ;;  %s2260_s16 = sshll.u32 %s2255_s13, 7  ;;  %v2708_v1 = vld [vmem:[%s4008_s1 + $0x8] sm:$0xff]   ;;  %v2709_v2 = vld [vmem:[%s4008_s1 + $0x10] sm:$0xff]  }
   0xe   : > { %p163_p3 = scmp.lt.s32.totalorder %s2260_s16, 1023  ;;  %2539 = vmatprep.subr.bf16.mxu0 %v2707_v0  ;;  %2683 = vmatprep.subr.bf16.mxu1 %v2707_v0  ;;  %v2710_v3 = vld [vmem:[%s4008_s1 + $0x18] sm:$0xff]   ;;  %v2711_v6 = vld [vmem:[%s4008_s1 + $0x20] sm:$0xff]   ;;  %v2712_v7 = vld [vmem:[%s4008_s1 + $0x28] sm:$0xff]  }
   0xf   : > { %2540 = vmatpush3.bf16.msra.mxu0 %v2707_v0  ;;  %2691 = vmatpush3.bf16.msra.mxu1 %v2707_v0  ;;  %v2713_v8 = vld [vmem:[%s4008_s1 + $0x30] sm:$0xff]   ;;  %v2714_v9 = vld [vmem:[%s4008_s1 + $0x38] sm:$0xff]  }
  0x10   : > { %s4042_s16 = smov (!%p163_p3, %s2260_s16), 1023  ;;  %2541 = vmatprep.subr.bf16.mxu0 %v2708_v1  ;;  %2684 = vmatprep.subr.bf16.mxu1 %v2708_v1 }
  0x11   : > { %s2261_s21 = sshll.u32 %s4042_s16, 2  ;;  %s2263_s10 = sshll.u32 %s4042_s16, 3 }
  0x12   : > { %s3344_s24 = scalar_lea.vmem %s4007_s0, %s2261_s21  ;;  %s3458_s14 = scalar_lea.vmem %s4010_s3, %s2263_s10 }
  0x13   : > { %2542 = vmatpush3.bf16.msra.mxu0 %v2708_v1  ;;  %2692 = vmatpush3.bf16.msra.mxu1 %v2708_v1  ;;  %v2715_v4 = vld [vmem:[%s3344_s24] sm:$0xff]   ;;  %v2717_v10 = vld [vmem:[%s3344_s24 + $0x8] sm:$0xff]   ;;  %v2719_v12 = vld [vmem:[%s3344_s24 + $0x10] sm:$0xff]  }
  0x14   : > { %2543 = vmatprep.subr.bf16.mxu0 %v2709_v2  ;;  %2685 = vmatprep.subr.bf16.mxu1 %v2709_v2  ;;  %v2716_v5 = vld [vmem:[%s3344_s24 + $0x100] sm:$0xff]   ;;  %v2718_v11 = vld [vmem:[%s3344_s24 + $0x108] sm:$0xff]   ;;  %v2720_v13 = vld [vmem:[%s3344_s24 + $0x110] sm:$0xff]  }
  0x15   : > { %2555 = vmatprep.mubr.bf16.mxu0 %v2715_v4  ;;  %2619 = vmatprep.mubr.bf16.mxu1 %v2716_v5  ;;  %v2721_v14 = vld [vmem:[%s3344_s24 + $0x18] sm:$0xff]   ;;  %v2723_v16 = vld [vmem:[%s3344_s24 + $0x20] sm:$0xff]   ;;  %v2725_v18 = vld [vmem:[%s3344_s24 + $0x28] sm:$0xff]  }
  0x16   : > { %v2722_v15 = vld [vmem:[%s3344_s24 + $0x118] sm:$0xff]   ;;  %v2724_v17 = vld [vmem:[%s3344_s24 + $0x120] sm:$0xff]   ;;  %v2726_v19 = vld [vmem:[%s3344_s24 + $0x128] sm:$0xff]  }
  0x17   : > { %2544 = vmatpush3.bf16.msra.mxu0 %v2709_v2  ;;  %2693 = vmatpush3.bf16.msra.mxu1 %v2709_v2  ;;  %v2727_v20 = vld [vmem:[%s3344_s24 + $0x30] sm:$0xff]   ;;  %v2729_v22 = vld [vmem:[%s3344_s24 + $0x38] sm:$0xff]   ;;  %v2731_v24 = vld [vmem:[%s3344_s24 + $0x40] sm:$0xff]  }
  0x18   : > { %2545 = vmatprep.subr.bf16.mxu0 %v2710_v3  ;;  %2686 = vmatprep.subr.bf16.mxu1 %v2710_v3  ;;  %v2728_v21 = vld [vmem:[%s3344_s24 + $0x130] sm:$0xff]   ;;  %v2730_v23 = vld [vmem:[%s3344_s24 + $0x138] sm:$0xff]   ;;  %v2732_v25 = vld [vmem:[%s3344_s24 + $0x140] sm:$0xff]  }
  0x19   : > { %v2733_v26 = vld [vmem:[%s3344_s24 + $0x48] sm:$0xff]   ;;  %v2735_v28 = vld [vmem:[%s3344_s24 + $0x50] sm:$0xff]   ;;  %v2737_v30 = vld [vmem:[%s3344_s24 + $0x58] sm:$0xff]  }
  0x1a   : > { %v2734_v27 = vld [vmem:[%s3344_s24 + $0x148] sm:$0xff]   ;;  %v2736_v29 = vld [vmem:[%s3344_s24 + $0x150] sm:$0xff]   ;;  %v2738_v31 = vld [vmem:[%s3344_s24 + $0x158] sm:$0xff]  }
  0x1b   : > { %2546 = vmatpush3.bf16.msra.mxu0 %v2710_v3  ;;  %2694 = vmatpush3.bf16.msra.mxu1 %v2710_v3  ;;  %v2739_v32 = vld [vmem:[%s3344_s24 + $0x60] sm:$0xff]   ;;  %v2741_v34 = vld [vmem:[%s3344_s24 + $0x68] sm:$0xff]   ;;  %v2743_v36 = vld [vmem:[%s3344_s24 + $0x70] sm:$0xff]  }
  0x1c   : > { %2547 = vmatprep.subr.bf16.mxu0 %v2711_v6  ;;  %2687 = vmatprep.subr.bf16.mxu1 %v2711_v6  ;;  %v2740_v33 = vld [vmem:[%s3344_s24 + $0x160] sm:$0xff]   ;;  %v2742_v35 = vld [vmem:[%s3344_s24 + $0x168] sm:$0xff]   ;;  %v2744_v37 = vld [vmem:[%s3344_s24 + $0x170] sm:$0xff]  }
  0x1d   : > { %v2745_v38 = vld [vmem:[%s3344_s24 + $0x78] sm:$0xff]   ;;  %v2747_v40 = vld [vmem:[%s3344_s24 + $0x80] sm:$0xff]   ;;  %v2749_v42 = vld [vmem:[%s3344_s24 + $0x88] sm:$0xff]  }
  0x1e   : > { %v2746_v39 = vld [vmem:[%s3344_s24 + $0x178] sm:$0xff]   ;;  %v2748_v41 = vld [vmem:[%s3344_s24 + $0x180] sm:$0xff]   ;;  %v2750_v43 = vld [vmem:[%s3344_s24 + $0x188] sm:$0xff]  }
  0x1f   : > { %2548 = vmatpush3.bf16.msra.mxu0 %v2711_v6  ;;  %2695 = vmatpush3.bf16.msra.mxu1 %v2711_v6  ;;  %v2751_v44 = vld [vmem:[%s3344_s24 + $0x90] sm:$0xff]   ;;  %v2753_v46 = vld [vmem:[%s3344_s24 + $0x98] sm:$0xff]   ;;  %v2755_v48 = vld [vmem:[%s3344_s24 + $0xa0] sm:$0xff]  }
  0x20   : > { %2549 = vmatprep.subr.bf16.mxu0 %v2712_v7  ;;  %2688 = vmatprep.subr.bf16.mxu1 %v2712_v7  ;;  %v2752_v45 = vld [vmem:[%s3344_s24 + $0x190] sm:$0xff]   ;;  %v2754_v47 = vld [vmem:[%s3344_s24 + $0x198] sm:$0xff]   ;;  %v2756_v49 = vld [vmem:[%s3344_s24 + $0x1a0] sm:$0xff]  }
  0x21   : > { %v2757_v50 = vld [vmem:[%s3344_s24 + $0xa8] sm:$0xff]   ;;  %v2759_v52 = vld [vmem:[%s3344_s24 + $0xb0] sm:$0xff]   ;;  %v2761_v54 = vld [vmem:[%s3344_s24 + $0xb8] sm:$0xff]  }
  0x22   : > { %v2758_v51 = vld [vmem:[%s3344_s24 + $0x1a8] sm:$0xff]   ;;  %v2760_v53 = vld [vmem:[%s3344_s24 + $0x1b0] sm:$0xff]   ;;  %v2762_v55 = vld [vmem:[%s3344_s24 + $0x1b8] sm:$0xff]  }
  0x23   : > { %2550 = vmatpush3.bf16.msra.mxu0 %v2712_v7  ;;  %2696 = vmatpush3.bf16.msra.mxu1 %v2712_v7  ;;  %v2763_v56 = vld [vmem:[%s3344_s24 + $0xc0] sm:$0xff]   ;;  %v2765_v58 = vld [vmem:[%s3344_s24 + $0xc8] sm:$0xff]   ;;  %v2767_v60 = vld [vmem:[%s3344_s24 + $0xd0] sm:$0xff]  }
  0x24   : > { %2551 = vmatprep.subr.bf16.mxu0 %v2713_v8  ;;  %2689 = vmatprep.subr.bf16.mxu1 %v2713_v8  ;;  %v2764_v57 = vld [vmem:[%s3344_s24 + $0x1c0] sm:$0xff]   ;;  %v2766_v59 = vld [vmem:[%s3344_s24 + $0x1c8] sm:$0xff]   ;;  %v2768_v61 = vld [vmem:[%s3344_s24 + $0x1d0] sm:$0xff]  }
  0x25   : > { %v2769_v62 = vld [vmem:[%s3344_s24 + $0xd8] sm:$0xff]   ;;  %v2771_v0 = vld [vmem:[%s3344_s24 + $0xe0] sm:$0xff]   ;;  %v2773_v2 = vld [vmem:[%s3344_s24 + $0xe8] sm:$0xff]  }
  0x26   : > { %v2770_v63 = vld [vmem:[%s3344_s24 + $0x1d8] sm:$0xff]   ;;  %v2772_v1 = vld [vmem:[%s3344_s24 + $0x1e0] sm:$0xff]   ;;  %v2774_v3 = vld [vmem:[%s3344_s24 + $0x1e8] sm:$0xff]  }
  0x27   : > { %2552 = vmatpush3.bf16.msra.mxu0 %v2713_v8  ;;  %2697 = vmatpush3.bf16.msra.mxu1 %v2713_v8  ;;  %v2775_v4 = vld [vmem:[%s3344_s24 + $0xf0] sm:$0xff]   ;;  %v2777_v6 = vld [vmem:[%s3344_s24 + $0xf8] sm:$0xff]   ;;  %v3428_v8 = vld [vmem:[%s4009_s2] ss:$0 sm:$0xff] }
  0x28   : > { %2553 = vmatprep.subr.bf16.mxu0 %v2714_v9  ;;  %2690 = vmatprep.subr.bf16.mxu1 %v2714_v9  ;;  %v2776_v5 = vld [vmem:[%s3344_s24 + $0x1f0] sm:$0xff]   ;;  %v2778_v7 = vld [vmem:[%s3344_s24 + $0x1f8] sm:$0xff]  }
  0x2b   : > { %2554 = vmatpush3.bf16.msra.mxu0 %v2714_v9  ;;  %2698 = vmatpush3.bf16.msra.mxu1 %v2714_v9 }
  0x2e   : > { %2556 = vmatmul.mubr.bf16.vlgmr.msra.gmra.mrb[0].mxu0 %v2717_v10  ;;  %2620 = vmatmul.mubr.bf16.vlgmr.msra.gmra.mrb[0].mxu1 %v2718_v11 }
  0x2f   : > { %2559 = vmatprep.mubr.bf16.mxu0 %v2719_v12  ;;  %2623 = vmatprep.mubr.bf16.mxu1 %v2720_v13 }
  0x36   : > { %2560 = vmatmul.mubr.bf16.gmra.mrb[4].mxu0 %v2721_v14  ;;  %2624 = vmatmul.mubr.bf16.gmra.mrb[4].mxu1 %v2722_v15 }
  0x37   : > { %2563 = vmatprep.mubr.bf16.mxu0 %v2723_v16  ;;  %2627 = vmatprep.mubr.bf16.mxu1 %v2724_v17 }
  0x3e   : > { %2564 = vmatmul.mubr.bf16.gmra.mrb[8].mxu0 %v2725_v18  ;;  %2628 = vmatmul.mubr.bf16.gmra.mrb[8].mxu1 %v2726_v19 }
  0x3f   : > { %2567 = vmatprep.mubr.bf16.mxu0 %v2727_v20  ;;  %2631 = vmatprep.mubr.bf16.mxu1 %v2728_v21 }
  0x46   : > { %2568 = vmatmul.mubr.bf16.gmra.mrb[12].mxu0 %v2729_v22  ;;  %2632 = vmatmul.mubr.bf16.gmra.mrb[12].mxu1 %v2730_v23 }
  0x47   : > { %2571 = vmatprep.mubr.bf16.mxu0 %v2731_v24  ;;  %2635 = vmatprep.mubr.bf16.mxu1 %v2732_v25 }
  0x4e   : > { %2572 = vmatmul.mubr.bf16.gmra.mrb[16].mxu0 %v2733_v26  ;;  %2636 = vmatmul.mubr.bf16.gmra.mrb[16].mxu1 %v2734_v27 }
  0x4f   : > { %2575 = vmatprep.mubr.bf16.mxu0 %v2735_v28  ;;  %2639 = vmatprep.mubr.bf16.mxu1 %v2736_v29 }
  0x56   : > { %2576 = vmatmul.mubr.bf16.gmra.mrb[20].mxu0 %v2737_v30  ;;  %2640 = vmatmul.mubr.bf16.gmra.mrb[20].mxu1 %v2738_v31 }
  0x57   : > { %2579 = vmatprep.mubr.bf16.mxu0 %v2739_v32  ;;  %2643 = vmatprep.mubr.bf16.mxu1 %v2740_v33 }
  0x5e   : > { %2580 = vmatmul.mubr.bf16.gmra.mrb[24].mxu0 %v2741_v34  ;;  %2644 = vmatmul.mubr.bf16.gmra.mrb[24].mxu1 %v2742_v35 }
  0x5f   : > { %2583 = vmatprep.mubr.bf16.mxu0 %v2743_v36  ;;  %2647 = vmatprep.mubr.bf16.mxu1 %v2744_v37 }
  0x66   : > { %2584 = vmatmul.mubr.bf16.gmra.mrb[28].mxu0 %v2745_v38  ;;  %2648 = vmatmul.mubr.bf16.gmra.mrb[28].mxu1 %v2746_v39 }
  0x67   : > { %2587 = vmatprep.mubr.bf16.mxu0 %v2747_v40  ;;  %2651 = vmatprep.mubr.bf16.mxu1 %v2748_v41 }
  0x6e   : > { %2588 = vmatmul.mubr.bf16.gmra.mrb[32].mxu0 %v2749_v42  ;;  %2652 = vmatmul.mubr.bf16.gmra.mrb[32].mxu1 %v2750_v43 }
  0x6f   : > { %2591 = vmatprep.mubr.bf16.mxu0 %v2751_v44  ;;  %2655 = vmatprep.mubr.bf16.mxu1 %v2752_v45 }
  0x76   : > { %2592 = vmatmul.mubr.bf16.gmra.mrb[36].mxu0 %v2753_v46  ;;  %2656 = vmatmul.mubr.bf16.gmra.mrb[36].mxu1 %v2754_v47 }
  0x77   : > { %2595 = vmatprep.mubr.bf16.mxu0 %v2755_v48  ;;  %2659 = vmatprep.mubr.bf16.mxu1 %v2756_v49 }
  0x7e   : > { %2596 = vmatmul.mubr.bf16.gmra.mrb[40].mxu0 %v2757_v50  ;;  %2660 = vmatmul.mubr.bf16.gmra.mrb[40].mxu1 %v2758_v51 }
  0x7f   : > { %2599 = vmatprep.mubr.bf16.mxu0 %v2759_v52  ;;  %2663 = vmatprep.mubr.bf16.mxu1 %v2760_v53 }
  0x86   : > { %2600 = vmatmul.mubr.bf16.gmra.mrb[44].mxu0 %v2761_v54  ;;  %2664 = vmatmul.mubr.bf16.gmra.mrb[44].mxu1 %v2762_v55 }
  0x87   : > { %2603 = vmatprep.mubr.bf16.mxu0 %v2763_v56  ;;  %2667 = vmatprep.mubr.bf16.mxu1 %v2764_v57 }
  0x8e   : > { %2604 = vmatmul.mubr.bf16.gmra.mrb[48].mxu0 %v2765_v58  ;;  %2668 = vmatmul.mubr.bf16.gmra.mrb[48].mxu1 %v2766_v59 }
  0x8f   : > { %2607 = vmatprep.mubr.bf16.mxu0 %v2767_v60  ;;  %2671 = vmatprep.mubr.bf16.mxu1 %v2768_v61 }
  0x96   : > { %2608 = vmatmul.mubr.bf16.gmra.mrb[52].mxu0 %v2769_v62  ;;  %2672 = vmatmul.mubr.bf16.gmra.mrb[52].mxu1 %v2770_v63 }
  0x97   : > { %2611 = vmatprep.mubr.bf16.mxu0 %v2771_v0  ;;  %2675 = vmatprep.mubr.bf16.mxu1 %v2772_v1 }
  0x9e   : > { %2612 = vmatmul.mubr.bf16.gmra.mrb[56].mxu0 %v2773_v2  ;;  %2676 = vmatmul.mubr.bf16.gmra.mrb[56].mxu1 %v2774_v3 }
  0x9f   : > { %2615 = vmatprep.mubr.bf16.mxu0 %v2775_v4  ;;  %2679 = vmatprep.mubr.bf16.mxu1 %v2776_v5 }
  0xa6   : > { %2616 = vmatmul.mubr.bf16.gmra.mrb[60].mxu0 %v2777_v6  ;;  %2680 = vmatmul.mubr.bf16.gmra.mrb[60].mxu1 %v2778_v7 }
 0x101   : > { %v2557_v9 = vpop.f32.mrb[0].mxu0  ;;  %v2621_v10 = vpop.f32.mrb[0].mxu1 }
 0x102   : > { %v801_v11 = vadd.f32 %v2557_v9, %v3428_v8  ;;  %v1057_v12 = vadd.f32 %v2621_v10, %v3428_v8  ;;  %v792_v13 = vpop.f32.mrb[1].mxu0  ;;  %v1048_v14 = vpop.f32.mrb[1].mxu1 }
 0x103   : > { %v793_v15 = vadd.f32 %v3428_v8, %v792_v13  ;;  %v1049_v16 = vadd.f32 %v3428_v8, %v1048_v14  ;;  %v2558_v17 = vpop.f32.mrb[2].mxu0  ;;  %v2622_v18 = vpop.f32.mrb[2].mxu1 }
 0x104   : > { %v2339_v19 = vmul.f32 -1.442695, %v801_v11  ;;  %v2403_v20 = vmul.f32 -1.442695, %v1057_v12  ;;  %v804_v21 = vadd.f32 %v2558_v17, %v3428_v8  ;;  %v1060_v22 = vadd.f32 %v2622_v18, %v3428_v8  ;;  %v795_v23 = vpop.f32.mrb[3].mxu0  ;;  %v1051_v24 = vpop.f32.mrb[3].mxu1 }
 0x105   : > { %v2337_v25 = vmul.f32 -1.442695, %v793_v15  ;;  %v2401_v26 = vmul.f32 -1.442695, %v1049_v16  ;;  %v796_v27 = vadd.f32 %v3428_v8, %v795_v23  ;;  %v1052_v28 = vadd.f32 %v3428_v8, %v1051_v24 }
 0x106   : > { %2779 = vpow2.f32 %v2339_v19  ;;  %v2340_v29 = vmul.f32 -1.442695, %v804_v21  ;;  %v2404_v30 = vmul.f32 -1.442695, %v1060_v22 }
 0x107   : > { %2781 = vpow2.f32 %v2403_v20  ;;  %v2338_v31 = vmul.f32 -1.442695, %v796_v27  ;;  %v2402_v32 = vmul.f32 -1.442695, %v1052_v28 }
 0x108   : > { %2783 = vpow2.f32 %v2337_v25 }
 0x109   : > { %2785 = vpow2.f32 %v2401_v26  ;;  %v2561_v33 = vpop.f32.mrb[4].mxu0  ;;  %v2625_v34 = vpop.f32.mrb[4].mxu1 }
 0x10a   : > { %2787 = vpow2.f32 %v2340_v29  ;;  %v817_v35 = vadd.f32 %v2561_v33, %v3428_v8  ;;  %v1073_v36 = vadd.f32 %v2625_v34, %v3428_v8  ;;  %v808_v37 = vpop.f32.mrb[5].mxu0  ;;  %v1064_v38 = vpop.f32.mrb[5].mxu1 }
 0x10b   : > { %2789 = vpow2.f32 %v2404_v30  ;;  %v809_v39 = vadd.f32 %v3428_v8, %v808_v37  ;;  %v1065_v40 = vadd.f32 %v3428_v8, %v1064_v38  ;;  %v2562_v41 = vpop.f32.mrb[6].mxu0  ;;  %v2626_v42 = vpop.f32.mrb[6].mxu1 }
 0x10c   : > { %2791 = vpow2.f32 %v2338_v31  ;;  %v2343_v43 = vmul.f32 -1.442695, %v817_v35  ;;  %v2407_v44 = vmul.f32 -1.442695, %v1073_v36  ;;  %v820_v45 = vadd.f32 %v2562_v41, %v3428_v8  ;;  %v811_v46 = vpop.f32.mrb[7].mxu0  ;;  %v1067_v47 = vpop.f32.mrb[7].mxu1 }
 0x10d   : > { %2793 = vpow2.f32 %v2402_v32  ;;  %v2341_v48 = vmul.f32 -1.442695, %v809_v39  ;;  %v2405_v49 = vmul.f32 -1.442695, %v1065_v40  ;;  %v1076_v13 = vadd.f32 %v2626_v42, %v3428_v8 }
 0x10e   : > { %2795 = vpow2.f32 %v2343_v43  ;;  %v2344_v50 = vmul.f32 -1.442695, %v820_v45  ;;  %v812_v16 = vadd.f32 %v3428_v8, %v811_v46  ;;  %v1068_v20 = vadd.f32 %v3428_v8, %v1067_v47 }
 0x10f   : > { %2797 = vpow2.f32 %v2407_v44  ;;  %v2408_v30 = vmul.f32 -1.442695, %v1076_v13 }
 0x110   : > { %v2780_v51 = vpop.eup %2779  ;;  %2799 = vpow2.f32 %v2341_v48  ;;  %v2342_v36 = vmul.f32 -1.442695, %v812_v16  ;;  %v2406_v40 = vmul.f32 -1.442695, %v1068_v20 }
 0x111   : > { %v2782_v52 = vpop.eup %2781  ;;  %v1689_v53 = vadd.f32 1.0, %v2780_v51  ;;  %2801 = vpow2.f32 %v2405_v49  ;;  %v2565_v54 = vpop.f32.mrb[8].mxu0 }
 0x112   : > { %v2629_v55 = vpop.f32.mrb[8].mxu1  ;;  %v2784_v56 = vpop.eup %2783  ;;  %v1753_v57 = vadd.f32 1.0, %v2782_v52  ;;  %2803 = vpow2.f32 %v2344_v50  ;;  %v833_v25 = vadd.f32 %v2565_v54, %v3428_v8 }
 0x113   : > { %v824_v58 = vpop.f32.mrb[9].mxu0  ;;  %v1080_v59 = vpop.f32.mrb[9].mxu1  ;;  %2805 = vrcp.f32 %v1689_v53  ;;  %v1687_v61 = vadd.f32 1.0, %v2784_v56  ;;  %v1089_v31 = vadd.f32 %v2629_v55, %v3428_v8 }
 0x114   : > { %v2786_v60 = vpop.eup %2785  ;;  %v2566_v62 = vpop.f32.mrb[10].mxu0  ;;  %2807 = vrcp.f32 %v1753_v57  ;;  %v825_v37 = vadd.f32 %v3428_v8, %v824_v58  ;;  %v1081_v41 = vadd.f32 %v3428_v8, %v1080_v59  ;;  %v2347_v43 = vmul.f32 -1.442695, %v833_v25 }
 0x115   : > { %v3443_v63 = vpop.f32.mrb[10].mxu1  ;;  %v2788_v0 = vpop.eup %2787  ;;  %v1751_v1 = vadd.f32 1.0, %v2786_v60  ;;  %2809 = vrcp.f32 %v1687_v61  ;;  %v836_v44 = vadd.f32 %v2566_v62, %v3428_v8  ;;  %v2411_v46 = vmul.f32 -1.442695, %v1089_v31 }
 0x116   : > { %v3445_v2 = vpop.f32.mrb[11].mxu0  ;;  %v2790_v3 = vpop.eup %2789  ;;  %v1690_v4 = vadd.f32 1.0, %v2788_v0  ;;  %v1092_v47 = vadd.f32 %v3443_v63, %v3428_v8  ;;  %v2345_v49 = vmul.f32 -1.442695, %v825_v37  ;;  %v2409_v54 = vmul.f32 -1.442695, %v1081_v41 }
 0x117   : > { %v3447_v5 = vpop.f32.mrb[11].mxu1  ;;  %v2792_v6 = vpop.eup %2791  ;;  %2811 = vrcp.f32 %v1751_v1  ;;  %v1754_v7 = vadd.f32 1.0, %v2790_v3  ;;  %v828_v50 = vadd.f32 %v3428_v8, %v3445_v2  ;;  %v2348_v59 = vmul.f32 -1.442695, %v836_v44 }
 0x118   : > { %v2794_v9 = vpop.eup %2793  ;;  %2813 = vrcp.f32 %v1690_v4  ;;  %v1688_v10 = vadd.f32 1.0, %v2792_v6  ;;  %v1084_v55 = vadd.f32 %v3428_v8, %v3447_v5  ;;  %v2412_v0 = vmul.f32 -1.442695, %v1092_v47 }
 0x119   : > { %v2796_v11 = vpop.eup %2795  ;;  %2815 = vrcp.f32 %v1754_v7  ;;  %v1752_v12 = vadd.f32 1.0, %v2794_v9  ;;  %v2569_v17 = vpop.f32.mrb[12].mxu0  ;;  %v2346_v5 = vmul.f32 -1.442695, %v828_v50 }
 0x11a   : > { %v2798_v14 = vpop.eup %2797  ;;  %2817 = vrcp.f32 %v1688_v10  ;;  %v1693_v15 = vadd.f32 1.0, %v2796_v11  ;;  %v2633_v21 = vpop.f32.mrb[12].mxu1  ;;  %v849_v60 = vadd.f32 %v2569_v17, %v3428_v8  ;;  %v2410_v7 = vmul.f32 -1.442695, %v1084_v55 }
 0x11b   : > { %v2800_v18 = vpop.eup %2799  ;;  %2819 = vrcp.f32 %v1752_v12  ;;  %v1757_v19 = vadd.f32 1.0, %v2798_v14  ;;  %v3453_v22 = vpop.f32.mrb[13].mxu0  ;;  %v1105_v1 = vadd.f32 %v2633_v21, %v3428_v8 }
 0x11c   : > { %v2802_v23 = vpop.eup %2801  ;;  %2821 = vrcp.f32 %v1693_v15  ;;  %v1691_v24 = vadd.f32 1.0, %v2800_v18  ;;  %v3461_v26 = vpop.f32.mrb[13].mxu1  ;;  %v2351_v10 = vmul.f32 -1.442695, %v849_v60 }
 0x11d   : > { %v3463_v27 = vpop.f32.mrb[14].mxu0  ;;  %v2804_v28 = vpop.eup %2803  ;;  %2823 = vrcp.f32 %v1757_v19  ;;  %v1755_v29 = vadd.f32 1.0, %v2802_v23  ;;  %v2415_v12 = vmul.f32 -1.442695, %v1105_v1 }
 0x11e   : > { %v3466_v32 = vpop.f32.mrb[14].mxu1  ;;  %v3468_v33 = vpop.f32.mrb[15].mxu0  ;;  %2825 = vrcp.f32 %v1691_v24  ;;  %v1694_v35 = vadd.f32 1.0, %v2804_v28 }
 0x11f   : > { %v2806_v34 = vpop.eup %2805  ;;  %v3471_v38 = vpop.f32.mrb[15].mxu1  ;;  %2827 = vrcp.f32 %v1755_v29 }
 0x120   : > { %v2808_v39 = vpop.eup %2807  ;;  %2073 = vst [vmem:[%s3458_s14 + $0x10] sm:$0xff] %v2806_v34  ;;  %2829 = vrcp.f32 %v1694_v35 }
 0x121   : > { %v2810_v42 = vpop.eup %2809  ;;  %2137 = vst [vmem:[%s3458_s14 + $0x210] sm:$0xff] %v2808_v39  ;;  %2831 = vpow2.f32 %v2408_v30  ;;  %v3483_v51 = vpop.f32.mrb[16].mxu0 }
 0x122   : > { %v2812_v45 = vpop.eup %2811  ;;  %2071 = vst [vmem:[%s3458_s14] sm:$0xff] %v2810_v42  ;;  %2833 = vpow2.f32 %v2342_v36  ;;  %v3485_v52 = vpop.f32.mrb[16].mxu1 }
 0x123   : > { %v2814_v48 = vpop.eup %2813  ;;  %2135 = vst [vmem:[%s3458_s14 + $0x200] sm:$0xff] %v2812_v45  ;;  %2835 = vpow2.f32 %v2406_v40  ;;  %v3490_v56 = vpop.f32.mrb[17].mxu0 }
 0x124   : > { %v2816_v53 = vpop.eup %2815  ;;  %2074 = vst [vmem:[%s3458_s14 + $0x18] sm:$0xff] %v2814_v48  ;;  %v3492_v57 = vpop.f32.mrb[17].mxu1  ;;  %2837 = vpow2.f32 %v2347_v43 }
 0x125   : > { %v2818_v58 = vpop.eup %2817  ;;  %2138 = vst [vmem:[%s3458_s14 + $0x218] sm:$0xff] %v2816_v53  ;;  %v3496_v61 = vpop.f32.mrb[18].mxu0  ;;  %2839 = vpow2.f32 %v2411_v46  ;;  %v841_v46 = vadd.f32 %v3428_v8, %v3453_v22  ;;  %v1097_v53 = vadd.f32 %v3428_v8, %v3461_v26  ;;  %v852_v22 = vadd.f32 %v3463_v27, %v3428_v8 }
 0x126   : > { %v3498_v62 = vpop.f32.mrb[18].mxu1  ;;  %v2820_v63 = vpop.eup %2819  ;;  %2072 = vst [vmem:[%s3458_s14 + $0x8] sm:$0xff] %v2818_v58  ;;  %2841 = vpow2.f32 %v2345_v49  ;;  %v1108_v26 = vadd.f32 %v3466_v32, %v3428_v8  ;;  %v844_v27 = vadd.f32 %v3428_v8, %v3468_v33 }
 0x127   : > { %v3502_v2 = vpop.f32.mrb[19].mxu0  ;;  %v3504_v3 = vpop.f32.mrb[19].mxu1  ;;  %2136 = vst [vmem:[%s3458_s14 + $0x208] sm:$0xff] %v2820_v63  ;;  %2843 = vpow2.f32 %v2409_v54  ;;  %v2352_v32 = vmul.f32 -1.442695, %v852_v22 }
 0x128   : > { %v2822_v4 = vpop.eup %2821  ;;  %2845 = vpow2.f32 %v2348_v59  ;;  %v2416_v33 = vmul.f32 -1.442695, %v1108_v26 }
 0x129   : > { %v2824_v6 = vpop.eup %2823  ;;  %2077 = vst [vmem:[%s3458_s14 + $0x30] sm:$0xff] %v2822_v4  ;;  %2847 = vpow2.f32 %v2412_v0  ;;  %v3511_v14 = vpop.f32.mrb[20].mxu0 }
 0x12a   : > { %v2826_v9 = vpop.eup %2825  ;;  %2141 = vst [vmem:[%s3458_s14 + $0x230] sm:$0xff] %v2824_v6  ;;  %2849 = vpow2.f32 %v2346_v5  ;;  %v3513_v15 = vpop.f32.mrb[20].mxu1 }
 0x12b   : > { %v2828_v11 = vpop.eup %2827  ;;  %2075 = vst [vmem:[%s3458_s14 + $0x20] sm:$0xff] %v2826_v9  ;;  %2851 = vpow2.f32 %v2410_v7  ;;  %v3516_v17 = vpop.f32.mrb[21].mxu0  ;;  %v2349_v7 = vmul.f32 -1.442695, %v841_v46  ;;  %v1124_v46 = vadd.f32 %v3498_v62, %v3428_v8 }
 0x12c   : > { %v2830_v13 = vpop.eup %2829  ;;  %2139 = vst [vmem:[%s3458_s14 + $0x220] sm:$0xff] %v2828_v11  ;;  %v3518_v18 = vpop.f32.mrb[21].mxu1  ;;  %2853 = vpow2.f32 %v2351_v10  ;;  %v2413_v11 = vmul.f32 -1.442695, %v1097_v53 }
 0x12d   : > { %v2832_v16 = vpop.eup %2831  ;;  %2078 = vst [vmem:[%s3458_s14 + $0x38] sm:$0xff] %v2830_v13  ;;  %v3520_v21 = vpop.f32.mrb[22].mxu0  ;;  %2855 = vpow2.f32 %v2415_v12  ;;  %v1100_v12 = vadd.f32 %v3428_v8, %v3471_v38  ;;  %v2420_v62 = vmul.f32 -1.442695, %v1124_v46 }
 0x12e   : > { %v2834_v19 = vpop.eup %2833  ;;  %v1758_v20 = vadd.f32 1.0, %v2832_v16  ;;  %v3522_v23 = vpop.f32.mrb[22].mxu1  ;;  %v865_v16 = vadd.f32 %v3483_v51, %v3428_v8  ;;  %v857_v51 = vadd.f32 %v3428_v8, %v3490_v56 }
 0x12f   : > { %v2836_v24 = vpop.eup %2835  ;;  %v1692_v25 = vadd.f32 1.0, %v2834_v19  ;;  %v3524_v28 = vpop.f32.mrb[23].mxu0 }
 0x130   : > { %v2838_v29 = vpop.eup %2837  ;;  %2857 = vrcp.f32 %v1758_v20  ;;  %v1756_v30 = vadd.f32 1.0, %v2836_v24  ;;  %v3526_v31 = vpop.f32.mrb[23].mxu1  ;;  %v1121_v20 = vadd.f32 %v3485_v52, %v3428_v8  ;;  %v2414_v52 = vmul.f32 -1.442695, %v1100_v12 }
 0x131   : > { %v2840_v34 = vpop.eup %2839  ;;  %2859 = vrcp.f32 %v1692_v25  ;;  %v1697_v35 = vadd.f32 1.0, %v2838_v29  ;;  %v3528_v43 = vpop.f32.mrb[24].mxu0  ;;  %v2350_v29 = vmul.f32 -1.442695, %v844_v27  ;;  %v2355_v56 = vmul.f32 -1.442695, %v865_v16 }
 0x132   : > { %v2842_v36 = vpop.eup %2841  ;;  %2861 = vrcp.f32 %v1756_v30  ;;  %v1761_v37 = vadd.f32 1.0, %v2840_v34  ;;  %v3532_v47 = vpop.f32.mrb[24].mxu1 }
 0x133   : > { %v2844_v39 = vpop.eup %2843  ;;  %2863 = vrcp.f32 %v1697_v35  ;;  %v1695_v40 = vadd.f32 1.0, %v2842_v36  ;;  %v3534_v48 = vpop.f32.mrb[25].mxu0  ;;  %v1113_v36 = vadd.f32 %v3428_v8, %v3492_v57  ;;  %v2419_v57 = vmul.f32 -1.442695, %v1121_v20 }
 0x134   : > { %v2846_v41 = vpop.eup %2845  ;;  %2865 = vrcp.f32 %v1761_v37  ;;  %v1759_v42 = vadd.f32 1.0, %v2844_v39  ;;  %v3538_v54 = vpop.f32.mrb[25].mxu1 }
 0x135   : > { %v2848_v44 = vpop.eup %2847  ;;  %2867 = vrcp.f32 %v1695_v40  ;;  %v1698_v45 = vadd.f32 1.0, %v2846_v41  ;;  %v3540_v55 = vpop.f32.mrb[26].mxu0  ;;  %v868_v41 = vadd.f32 %v3496_v61, %v3428_v8  ;;  %v860_v61 = vadd.f32 %v3428_v8, %v3502_v2 }
 0x136   : > { %v2850_v49 = vpop.eup %2849  ;;  %2869 = vrcp.f32 %v1759_v42  ;;  %v1762_v50 = vadd.f32 1.0, %v2848_v44  ;;  %v3544_v60 = vpop.f32.mrb[26].mxu1 }
 0x137   : > { %v2852_v58 = vpop.eup %2851  ;;  %2871 = vrcp.f32 %v1698_v45  ;;  %v1696_v59 = vadd.f32 1.0, %v2850_v49  ;;  %v3546_v63 = vpop.f32.mrb[27].mxu0  ;;  %v2356_v22 = vmul.f32 -1.442695, %v868_v41 }
 0x138   : > { %v2854_v0 = vpop.eup %2853  ;;  %2873 = vrcp.f32 %v1762_v50  ;;  %v1760_v1 = vadd.f32 1.0, %v2852_v58  ;;  %v3550_v4 = vpop.f32.mrb[27].mxu1  ;;  %v2353_v50 = vmul.f32 -1.442695, %v857_v51  ;;  %v2417_v58 = vmul.f32 -1.442695, %v1113_v36 }
 0x139   : > { %v2856_v5 = vpop.eup %2855  ;;  %2875 = vrcp.f32 %v1696_v59  ;;  %v1701_v6 = vadd.f32 1.0, %v2854_v0  ;;  %v3562_v24 = vpop.f32.mrb[28].mxu0 }
 0x13a   : > { %v2858_v9 = vpop.eup %2857  ;;  %2877 = vrcp.f32 %v1760_v1  ;;  %v1765_v10 = vadd.f32 1.0, %v2856_v5  ;;  %v3564_v25 = vpop.f32.mrb[28].mxu1  ;;  %v2354_v5 = vmul.f32 -1.442695, %v860_v61 }
 0x13b   : > { %v2860_v13 = vpop.eup %2859  ;;  %2142 = vst [vmem:[%s3458_s14 + $0x238] sm:$0xff] %v2858_v9  ;;  %2879 = vrcp.f32 %v1701_v6  ;;  %v3569_v30 = vpop.f32.mrb[29].mxu0 }
 0x13c   : > { %v2862_v19 = vpop.eup %2861  ;;  %2076 = vst [vmem:[%s3458_s14 + $0x28] sm:$0xff] %v2860_v13  ;;  %2881 = vrcp.f32 %v1765_v10  ;;  %v3571_v34 = vpop.f32.mrb[29].mxu1 }
 0x13d   : > { %v2864_v38 = vpop.eup %2863  ;;  %2140 = vst [vmem:[%s3458_s14 + $0x228] sm:$0xff] %v2862_v19  ;;  %2883 = vpow2.f32 %v2349_v7  ;;  %v3576_v37 = vpop.f32.mrb[30].mxu0 }
 0x13e   : > { %v2866_v35 = vpop.eup %2865  ;;  %2081 = vst [vmem:[%s3458_s14 + $0x50] sm:$0xff] %v2864_v38  ;;  %2885 = vpow2.f32 %v2413_v11  ;;  %v3578_v39 = vpop.f32.mrb[30].mxu1 }
 0x13f   : > { %v2868_v40 = vpop.eup %2867  ;;  %2145 = vst [vmem:[%s3458_s14 + $0x250] sm:$0xff] %v2866_v35  ;;  %2887 = vpow2.f32 %v2352_v32  ;;  %v3583_v42 = vpop.f32.mrb[31].mxu0 }
 0x140   : > { %v3585_v44 = vpop.f32.mrb[31].mxu1  ;;  %v2870_v45 = vpop.eup %2869  ;;  %2079 = vst [vmem:[%s3458_s14 + $0x40] sm:$0xff] %v2868_v40  ;;  %2889 = vpow2.f32 %v2416_v33 }
 0x141   : > { %v2872_v49 = vpop.eup %2871  ;;  %2143 = vst [vmem:[%s3458_s14 + $0x240] sm:$0xff] %v2870_v45  ;;  %2891 = vpow2.f32 %v2350_v29  ;;  %v3596_v1 = vpop.f32.mrb[32].mxu0 }
 0x142   : > { %v2874_v53 = vpop.eup %2873  ;;  %2082 = vst [vmem:[%s3458_s14 + $0x58] sm:$0xff] %v2872_v49  ;;  %2893 = vpow2.f32 %v2414_v52  ;;  %v3598_v26 = vpop.f32.mrb[32].mxu1 }
 0x143   : > { %v2876_v59 = vpop.eup %2875  ;;  %2146 = vst [vmem:[%s3458_s14 + $0x258] sm:$0xff] %v2874_v53  ;;  %2895 = vpow2.f32 %v2355_v56  ;;  %v3601_v6 = vpop.f32.mrb[33].mxu0 }
 0x144   : > { %v2878_v0 = vpop.eup %2877  ;;  %2080 = vst [vmem:[%s3458_s14 + $0x48] sm:$0xff] %v2876_v59  ;;  %2897 = vpow2.f32 %v2419_v57  ;;  %v3603_v7 = vpop.f32.mrb[33].mxu1 }
 0x145   : > { %v2880_v2 = vpop.eup %2879  ;;  %2144 = vst [vmem:[%s3458_s14 + $0x248] sm:$0xff] %v2878_v0  ;;  %2899 = vpow2.f32 %v2353_v50  ;;  %v3606_v9 = vpop.f32.mrb[34].mxu0 }
 0x146   : > { %v2882_v27 = vpop.eup %2881  ;;  %2085 = vst [vmem:[%s3458_s14 + $0x70] sm:$0xff] %v2880_v2  ;;  %2901 = vpow2.f32 %v2417_v58  ;;  %v3608_v10 = vpop.f32.mrb[34].mxu1  ;;  %v1116_v58 = vadd.f32 %v3428_v8, %v3504_v3  ;;  %v881_v2 = vadd.f32 %v3511_v14, %v3428_v8  ;;  %v1129_v14 = vadd.f32 %v3428_v8, %v3518_v18 }
 0x147   : > { %v2884_v11 = vpop.eup %2883  ;;  %2149 = vst [vmem:[%s3458_s14 + $0x270] sm:$0xff] %v2882_v27  ;;  %2903 = vpow2.f32 %v2356_v22  ;;  %v3611_v12 = vpop.f32.mrb[35].mxu0 }
 0x148   : > { %v3613_v13 = vpop.f32.mrb[35].mxu1  ;;  %v2886_v32 = vpop.eup %2885  ;;  %v1699_v16 = vadd.f32 1.0, %v2884_v11  ;;  %2905 = vpow2.f32 %v2420_v62 }
 0x149   : > { %v2888_v19 = vpop.eup %2887  ;;  %v1763_v33 = vadd.f32 1.0, %v2886_v32  ;;  %2907 = vpow2.f32 %v2354_v5  ;;  %v3615_v36 = vpop.f32.mrb[36].mxu0  ;;  %v1137_v32 = vadd.f32 %v3513_v15, %v3428_v8  ;;  %v884_v15 = vadd.f32 %v3520_v21, %v3428_v8 }
 0x14a   : > { %v2890_v20 = vpop.eup %2889  ;;  %2909 = vrcp.f32 %v1699_v16  ;;  %v1702_v38 = vadd.f32 1.0, %v2888_v19  ;;  %v3617_v41 = vpop.f32.mrb[36].mxu1  ;;  %v873_v19 = vadd.f32 %v3428_v8, %v3516_v17  ;;  %v876_v21 = vadd.f32 %v3428_v8, %v3524_v28 }
 0x14b   : > { %v2892_v29 = vpop.eup %2891  ;;  %2911 = vrcp.f32 %v1763_v33  ;;  %v1766_v51 = vadd.f32 1.0, %v2890_v20  ;;  %v3619_v45 = vpop.f32.mrb[37].mxu0  ;;  %v2423_v17 = vmul.f32 -1.442695, %v1137_v32  ;;  %v2360_v28 = vmul.f32 -1.442695, %v884_v15 }
 0x14c   : > { %v2894_v35 = vpop.eup %2893  ;;  %2913 = vrcp.f32 %v1702_v38  ;;  %v1700_v52 = vadd.f32 1.0, %v2892_v29  ;;  %v3621_v49 = vpop.f32.mrb[37].mxu1  ;;  %v2418_v38 = vmul.f32 -1.442695, %v1116_v58  ;;  %v897_v32 = vadd.f32 %v3528_v43, %v3428_v8 }
 0x14d   : > { %v2896_v40 = vpop.eup %2895  ;;  %2915 = vrcp.f32 %v1766_v51  ;;  %v1764_v56 = vadd.f32 1.0, %v2894_v35  ;;  %v3623_v50 = vpop.f32.mrb[38].mxu0  ;;  %v2359_v35 = vmul.f32 -1.442695, %v881_v2 }
 0x14e   : > { %v2898_v57 = vpop.eup %2897  ;;  %2917 = vrcp.f32 %v1700_v52  ;;  %v1705_v46 = vadd.f32 1.0, %v2896_v40  ;;  %v3627_v59 = vpop.f32.mrb[38].mxu1 }
 0x14f   : > { %v2900_v61 = vpop.eup %2899  ;;  %2919 = vrcp.f32 %v1764_v56  ;;  %v1769_v53 = vadd.f32 1.0, %v2898_v57  ;;  %v3629_v22 = vpop.f32.mrb[39].mxu0  ;;  %v1140_v56 = vadd.f32 %v3522_v23, %v3428_v8  ;;  %v2421_v23 = vmul.f32 -1.442695, %v1129_v14 }
 0x150   : > { %v2902_v0 = vpop.eup %2901  ;;  %2921 = vrcp.f32 %v1705_v46  ;;  %v1703_v62 = vadd.f32 1.0, %v2900_v61  ;;  %v3633_v5 = vpop.f32.mrb[39].mxu1  ;;  %v2357_v61 = vmul.f32 -1.442695, %v873_v19 }
 0x151   : > { %v2904_v27 = vpop.eup %2903  ;;  %2923 = vrcp.f32 %v1769_v53  ;;  %v1767_v11 = vadd.f32 1.0, %v2902_v0  ;;  %v3643_v52 = vpop.f32.mrb[40].mxu0  ;;  %v2424_v19 = vmul.f32 -1.442695, %v1140_v56 }
 0x152   : > { %v2906_v16 = vpop.eup %2905  ;;  %2925 = vrcp.f32 %v1703_v62  ;;  %v1706_v3 = vadd.f32 1.0, %v2904_v27  ;;  %v3648_v57 = vpop.f32.mrb[40].mxu1  ;;  %v1132_v62 = vadd.f32 %v3428_v8, %v3526_v31  ;;  %v1153_v31 = vadd.f32 %v3532_v47, %v3428_v8 }
 0x153   : > { %v2908_v33 = vpop.eup %2907  ;;  %2927 = vrcp.f32 %v1767_v11  ;;  %v1770_v20 = vadd.f32 1.0, %v2906_v16  ;;  %v3650_v18 = vpop.f32.mrb[41].mxu0  ;;  %v2363_v47 = vmul.f32 -1.442695, %v897_v32 }
 0x154   : > { %v2910_v29 = vpop.eup %2909  ;;  %2929 = vrcp.f32 %v1706_v3  ;;  %v1704_v51 = vadd.f32 1.0, %v2908_v33  ;;  %v3655_v53 = vpop.f32.mrb[41].mxu1  ;;  %v2422_v43 = vmul.f32 -1.442695, %v1132_v62 }
 0x155   : > { %v2912_v40 = vpop.eup %2911  ;;  %2083 = vst [vmem:[%s3458_s14 + $0x60] sm:$0xff] %v2910_v29  ;;  %2931 = vrcp.f32 %v1770_v20  ;;  %v3657_v58 = vpop.f32.mrb[42].mxu0  ;;  %v2358_v20 = vmul.f32 -1.442695, %v876_v21  ;;  %v1145_v29 = vadd.f32 %v3428_v8, %v3538_v54 }
 0x156   : > { %v2914_v46 = vpop.eup %2913  ;;  %2147 = vst [vmem:[%s3458_s14 + $0x260] sm:$0xff] %v2912_v40  ;;  %2933 = vrcp.f32 %v1704_v51  ;;  %v3662_v2 = vpop.f32.mrb[42].mxu1 }
 0x157   : > { %v2916_v0 = vpop.eup %2915  ;;  %2086 = vst [vmem:[%s3458_s14 + $0x78] sm:$0xff] %v2914_v46  ;;  %2935 = vpow2.f32 %v2418_v38  ;;  %v3664_v27 = vpop.f32.mrb[43].mxu0  ;;  %v889_v38 = vadd.f32 %v3428_v8, %v3534_v48  ;;  %v2427_v48 = vmul.f32 -1.442695, %v1153_v31 }
 0x158   : > { %v2918_v11 = vpop.eup %2917  ;;  %2150 = vst [vmem:[%s3458_s14 + $0x278] sm:$0xff] %v2916_v0  ;;  %2937 = vpow2.f32 %v2359_v35  ;;  %v3669_v16 = vpop.f32.mrb[43].mxu1 }
 0x159   : > { %v2920_v3 = vpop.eup %2919  ;;  %2084 = vst [vmem:[%s3458_s14 + $0x68] sm:$0xff] %v2918_v11  ;;  %2939 = vpow2.f32 %v2423_v17  ;;  %v3681_v35 = vpop.f32.mrb[44].mxu0  ;;  %v2361_v54 = vmul.f32 -1.442695, %v889_v38 }
 0x15a   : > { %v2922_v33 = vpop.eup %2921  ;;  %2148 = vst [vmem:[%s3458_s14 + $0x268] sm:$0xff] %v2920_v3  ;;  %2941 = vpow2.f32 %v2357_v61  ;;  %v3683_v15 = vpop.f32.mrb[44].mxu1 }
 0x15b   : > { %v2924_v14 = vpop.eup %2923  ;;  %2089 = vst [vmem:[%s3458_s14 + $0x90] sm:$0xff] %v2922_v33  ;;  %2943 = vpow2.f32 %v2421_v23  ;;  %v3686_v17 = vpop.f32.mrb[45].mxu0  ;;  %v2425_v23 = vmul.f32 -1.442695, %v1145_v29 }
 0x15c   : > { %v2926_v51 = vpop.eup %2925  ;;  %2153 = vst [vmem:[%s3458_s14 + $0x290] sm:$0xff] %v2924_v14  ;;  %2945 = vpow2.f32 %v2360_v28  ;;  %v3688_v56 = vpop.f32.mrb[45].mxu1 }
 0x15d   : > { %v2928_v40 = vpop.eup %2927  ;;  %2087 = vst [vmem:[%s3458_s14 + $0x80] sm:$0xff] %v2926_v51  ;;  %2947 = vpow2.f32 %v2424_v19  ;;  %v3691_v61 = vpop.f32.mrb[46].mxu0 }
 0x15e   : > { %v2930_v46 = vpop.eup %2929  ;;  %2151 = vst [vmem:[%s3458_s14 + $0x280] sm:$0xff] %v2928_v40  ;;  %2949 = vpow2.f32 %v2358_v20  ;;  %v3693_v21 = vpop.f32.mrb[46].mxu1 }
 0x15f   : > { %v2932_v0 = vpop.eup %2931  ;;  %2090 = vst [vmem:[%s3458_s14 + $0x98] sm:$0xff] %v2930_v46  ;;  %2951 = vpow2.f32 %v2422_v43  ;;  %v3696_v62 = vpop.f32.mrb[47].mxu0 }
 0x160   : > { %v3698_v11 = vpop.f32.mrb[47].mxu1  ;;  %v2934_v28 = vpop.eup %2933  ;;  %2154 = vst [vmem:[%s3458_s14 + $0x298] sm:$0xff] %v2932_v0  ;;  %2953 = vpow2.f32 %v2363_v47 }
 0x161   : > { %v2936_v32 = vpop.eup %2935  ;;  %2088 = vst [vmem:[%s3458_s14 + $0x88] sm:$0xff] %v2934_v28  ;;  %2955 = vpow2.f32 %v2427_v48  ;;  %v3702_v14 = vpop.f32.mrb[48].mxu0 }
 0x162   : > { %v2938_v3 = vpop.eup %2937  ;;  %v1768_v19 = vadd.f32 1.0, %v2936_v32  ;;  %2957 = vpow2.f32 %v2361_v54  ;;  %v3704_v43 = vpop.f32.mrb[48].mxu1 }
 0x163   : > { %v2940_v31 = vpop.eup %2939  ;;  %v1709_v33 = vadd.f32 1.0, %v2938_v3  ;;  %2959 = vpow2.f32 %v2425_v23  ;;  %v3706_v47 = vpop.f32.mrb[49].mxu0 }
 0x164   : > { %v2942_v20 = vpop.eup %2941  ;;  %2961 = vrcp.f32 %v1768_v19  ;;  %v1773_v38 = vadd.f32 1.0, %v2940_v31  ;;  %v3708_v40 = vpop.f32.mrb[49].mxu1 }
 0x165   : > { %v2944_v29 = vpop.eup %2943  ;;  %2963 = vrcp.f32 %v1709_v33  ;;  %v1707_v51 = vadd.f32 1.0, %v2942_v20  ;;  %v3710_v54 = vpop.f32.mrb[50].mxu0 }
 0x166   : > { %v2946_v48 = vpop.eup %2945  ;;  %2965 = vrcp.f32 %v1773_v38  ;;  %v1771_v46 = vadd.f32 1.0, %v2944_v29  ;;  %4011 = vst [vmem:[#allocation2_spill] sm:$0xff] %v3710_v54  ;;  %v3712_v0 = vpop.f32.mrb[50].mxu1  ;;  %v900_v38 = vadd.f32 %v3540_v55, %v3428_v8 }
 0x167   : > { %v2948_v23 = vpop.eup %2947  ;;  %2967 = vrcp.f32 %v1707_v51  ;;  %v1710_v28 = vadd.f32 1.0, %v2946_v48  ;;  %v3714_v32 = vpop.f32.mrb[51].mxu0  ;;  %v1156_v51 = vadd.f32 %v3544_v60, %v3428_v8  ;;  %v913_v60 = vadd.f32 %v3562_v24, %v3428_v8 }
 0x168   : > { %4012 = vst [vmem:[#allocation3_spill] sm:$0xff] %v3714_v32  ;;  %v2950_v3 = vpop.eup %2949  ;;  %2969 = vrcp.f32 %v1771_v46  ;;  %v1774_v19 = vadd.f32 1.0, %v2948_v23  ;;  %v3716_v31 = vpop.f32.mrb[51].mxu1  ;;  %v892_v46 = vadd.f32 %v3428_v8, %v3546_v63 }
 0x169   : > { %4013 = vst [vmem:[#allocation4_spill] sm:$0xff] %v3716_v31  ;;  %v2952_v33 = vpop.eup %2951  ;;  %2971 = vrcp.f32 %v1710_v28  ;;  %v1708_v20 = vadd.f32 1.0, %v2950_v3  ;;  %v1148_v28 = vadd.f32 %v3428_v8, %v3550_v4  ;;  %v3726_v3 = vpop.f32.mrb[52].mxu0  ;;  %v1169_v4 = vadd.f32 %v3564_v25, %v3428_v8 }
 0x16a   : > { %v2954_v29 = vpop.eup %2953  ;;  %2973 = vrcp.f32 %v1774_v19  ;;  %v1772_v54 = vadd.f32 1.0, %v2952_v33  ;;  %4014 = vst [vmem:[#allocation5_spill] sm:$0xff] %v3726_v3  ;;  %v2364_v33 = vmul.f32 -1.442695, %v900_v38  ;;  %v2362_v24 = vmul.f32 -1.442695, %v892_v46 }
 0x16b   : > { %v2956_v48 = vpop.eup %2955  ;;  %2975 = vrcp.f32 %v1708_v20  ;;  %v1713_v32 = vadd.f32 1.0, %v2954_v29  ;;  %v3730_v20 = vpop.f32.mrb[52].mxu1 }
 0x16c   : > { %v2958_v23 = vpop.eup %2957  ;;  %2977 = vrcp.f32 %v1772_v54  ;;  %v1777_v31 = vadd.f32 1.0, %v2956_v48  ;;  %v3732_v29 = vpop.f32.mrb[53].mxu0  ;;  %v2428_v48 = vmul.f32 -1.442695, %v1156_v51 }
 0x16d   : > { %v2960_v55 = vpop.eup %2959  ;;  %2979 = vrcp.f32 %v1713_v32  ;;  %v1711_v19 = vadd.f32 1.0, %v2958_v23  ;;  %v3736_v3 = vpop.f32.mrb[53].mxu1  ;;  %v3744_v23 = vld [vmem:[%s4009_s2] ss:$0 sm:$0xff] }
 0x16e   : > { %v2962_v63 = vpop.eup %2961  ;;  %2981 = vrcp.f32 %v1777_v31  ;;  %v1775_v54 = vadd.f32 1.0, %v2960_v55  ;;  %v3738_v32 = vpop.f32.mrb[54].mxu0  ;;  %v905_v31 = vadd.f32 %v3744_v23, %v3569_v30  ;;  %v2426_v55 = vmul.f32 -1.442695, %v1148_v28 }
 0x16f   : > { %4015 = vst [vmem:[#allocation6_spill] sm:$0xff] %v3738_v32  ;;  %v2964_v38 = vpop.eup %2963  ;;  %2152 = vst [vmem:[%s3458_s14 + $0x288] sm:$0xff] %v2962_v63  ;;  %2983 = vrcp.f32 %v1711_v19  ;;  %v3748_v51 = vpop.f32.mrb[54].mxu1  ;;  %v1161_v46 = vadd.f32 %v3744_v23, %v3571_v34  ;;  %v2367_v32 = vmul.f32 -1.442695, %v913_v60  ;;  %v916_v30 = vadd.f32 %v3744_v23, %v3576_v37 }
 0x170   : > { %4016 = vst [vmem:[#allocation7_spill] sm:$0xff] %v3748_v51  ;;  %v3750_v8 = vpop.f32.mrb[55].mxu0  ;;  %v2966_v25 = vpop.eup %2965  ;;  %2093 = vst [vmem:[%s3458_s14 + $0xb0] sm:$0xff] %v2964_v38  ;;  %2985 = vrcp.f32 %v1775_v54  ;;  %v2431_v38 = vmul.f32 -1.442695, %v1169_v4  ;;  %v1172_v28 = vadd.f32 %v3744_v23, %v3578_v39  ;;  %v1164_v60 = vadd.f32 %v3744_v23, %v3585_v44 }
 0x171   : > { %v3755_v19 = vpop.f32.mrb[55].mxu1  ;;  %v2968_v63 = vpop.eup %2967  ;;  %2157 = vst [vmem:[%s3458_s14 + $0x2b0] sm:$0xff] %v2966_v25  ;;  %2987 = vpow2.f32 %v2364_v33  ;;  %v2365_v34 = vmul.f32 -1.442695, %v905_v31  ;;  %v908_v25 = vadd.f32 %v3744_v23, %v3583_v42  ;;  %v2429_v37 = vmul.f32 -1.442695, %v1161_v46 }
 0x172   : > { %v2970_v51 = vpop.eup %2969  ;;  %2091 = vst [vmem:[%s3458_s14 + $0xa0] sm:$0xff] %v2968_v63  ;;  %2989 = vpow2.f32 %v2428_v48  ;;  %v3769_v48 = vpop.f32.mrb[56].mxu0  ;;  %v929_v42 = vadd.f32 %v3744_v23, %v3596_v1  ;;  %v2432_v44 = vmul.f32 -1.442695, %v1172_v28 }
 0x173   : > { %v2972_v54 = vpop.eup %2971  ;;  %2155 = vst [vmem:[%s3458_s14 + $0x2a0] sm:$0xff] %v2970_v51  ;;  %2991 = vpow2.f32 %v2362_v24  ;;  %v3771_v4 = vpop.f32.mrb[56].mxu1  ;;  %v2368_v24 = vmul.f32 -1.442695, %v916_v30  ;;  %v2366_v1 = vmul.f32 -1.442695, %v908_v25 }
 0x174   : > { %v2974_v33 = vpop.eup %2973  ;;  %2094 = vst [vmem:[%s3458_s14 + $0xb8] sm:$0xff] %v2972_v54  ;;  %2993 = vpow2.f32 %v2426_v55  ;;  %v3776_v31 = vpop.f32.mrb[57].mxu0  ;;  %v2371_v28 = vmul.f32 -1.442695, %v929_v42 }
 0x175   : > { %v2976_v39 = vpop.eup %2975  ;;  %2158 = vst [vmem:[%s3458_s14 + $0x2b8] sm:$0xff] %v2974_v33  ;;  %2995 = vpow2.f32 %v2367_v32  ;;  %v3778_v51 = vpop.f32.mrb[57].mxu1 }
 0x176   : > { %v2978_v55 = vpop.eup %2977  ;;  %2092 = vst [vmem:[%s3458_s14 + $0xa8] sm:$0xff] %v2976_v39  ;;  %2997 = vpow2.f32 %v2431_v38  ;;  %v3781_v46 = vpop.f32.mrb[58].mxu0  ;;  %v2430_v39 = vmul.f32 -1.442695, %v1164_v60 }
 0x177   : > { %4017 = vst [vmem:[#allocation8_spill] sm:$0xff] %v3781_v46  ;;  %v3783_v63 = vpop.f32.mrb[58].mxu1  ;;  %v2980_v32 = vpop.eup %2979  ;;  %2156 = vst [vmem:[%s3458_s14 + $0x2a8] sm:$0xff] %v2978_v55  ;;  %2999 = vpow2.f32 %v2365_v34 }
 0x178   : > { %4018 = vst [vmem:[#allocation9_spill] sm:$0xff] %v3783_v63  ;;  %v3786_v30 = vpop.f32.mrb[59].mxu0  ;;  %v3788_v54 = vpop.f32.mrb[59].mxu1  ;;  %2097 = vst [vmem:[%s3458_s14 + $0xd0] sm:$0xff] %v2980_v32  ;;  %3001 = vpow2.f32 %v2429_v37 }
 0x179   : > { %4019 = vst [vmem:[#allocation10_spill] sm:$0xff] %v3788_v54  ;;  %v2982_v33 = vpop.eup %2981  ;;  %3003 = vpow2.f32 %v2368_v24  ;;  %v3794_v55 = vpop.f32.mrb[60].mxu0 }
 0x17a   : > { %v2984_v38 = vpop.eup %2983  ;;  %2161 = vst [vmem:[%s3458_s14 + $0x2d0] sm:$0xff] %v2982_v33  ;;  %3005 = vpow2.f32 %v2432_v44  ;;  %v3796_v54 = vpop.f32.mrb[60].mxu1 }
 0x17b   : > { %v2986_v46 = vpop.eup %2985  ;;  %2095 = vst [vmem:[%s3458_s14 + $0xc0] sm:$0xff] %v2984_v38  ;;  %3007 = vpow2.f32 %v2366_v1  ;;  %4020 = vst [vmem:[#allocation11_spill] sm:$0xff] %v3796_v54  ;;  %v3798_v60 = vpop.f32.mrb[61].mxu0 }
 0x17c   : > { %v2988_v63 = vpop.eup %2987  ;;  %2159 = vst [vmem:[%s3458_s14 + $0x2c0] sm:$0xff] %v2986_v46  ;;  %3009 = vpow2.f32 %v2430_v39  ;;  %4021 = vst [vmem:[#allocation12_spill] sm:$0xff] %v3798_v60  ;;  %v3800_v24 = vpop.f32.mrb[61].mxu1 }
 0x17d   : > { %v2990_v34 = vpop.eup %2989  ;;  %v1714_v25 = vadd.f32 1.0, %v2988_v63  ;;  %3011 = vpow2.f32 %v2371_v28  ;;  %4022 = vst [vmem:[#allocation13_spill] sm:$0xff] %v3800_v24  ;;  %v3802_v33 = vpop.f32.mrb[62].mxu0 }
 0x17e   : > { %v2992_v32 = vpop.eup %2991  ;;  %v1778_v37 = vadd.f32 1.0, %v2990_v34  ;;  %4023 = vst [vmem:[#allocation14_spill] sm:$0xff] %v3802_v33  ;;  %v3804_v46 = vpop.f32.mrb[62].mxu1 }
 0x17f   : > { %v2994_v42 = vpop.eup %2993  ;;  %3013 = vrcp.f32 %v1714_v25  ;;  %v1712_v44 = vadd.f32 1.0, %v2992_v32  ;;  %v3806_v39 = vpop.f32.mrb[63].mxu0 }
 0x180   : > { %v2996_v63 = vpop.eup %2995  ;;  %3015 = vrcp.f32 %v1778_v37  ;;  %v1776_v1 = vadd.f32 1.0, %v2994_v42  ;;  %4024 = vst [vmem:[#allocation15_spill] sm:$0xff] %v3806_v39  ;;  %v3808_v28 = vpop.f32.mrb[63].mxu1  ;;  %v1185_v37 = vadd.f32 %v3744_v23, %v3598_v26 }
 0x181   : > { %v2998_v38 = vpop.eup %2997  ;;  %3017 = vrcp.f32 %v1712_v44  ;;  %v1717_v34 = vadd.f32 1.0, %v2996_v63  ;;  %4025 = vst [vmem:[#allocation16_spill] sm:$0xff] %v3808_v28  ;;  %v921_v44 = vadd.f32 %v3744_v23, %v3601_v6  ;;  %v1188_v6 = vadd.f32 %v3744_v23, %v3608_v10 }
 0x182   : > { %v3000_v60 = vpop.eup %2999  ;;  %3019 = vrcp.f32 %v1776_v1  ;;  %v1781_v24 = vadd.f32 1.0, %v2998_v38  ;;  %v1177_v1 = vadd.f32 %v3744_v23, %v3603_v7 }
 0x183   : > { %v3002_v54 = vpop.eup %3001  ;;  %3021 = vrcp.f32 %v1717_v34  ;;  %v1715_v25 = vadd.f32 1.0, %v3000_v60  ;;  %v2435_v34 = vmul.f32 -1.442695, %v1185_v37  ;;  %v2369_v7 = vmul.f32 -1.442695, %v921_v44 }
 0x184   : > { %v3004_v32 = vpop.eup %3003  ;;  %3023 = vrcp.f32 %v1781_v24  ;;  %v1779_v33 = vadd.f32 1.0, %v3002_v54  ;;  %v932_v54 = vadd.f32 %v3744_v23, %v3606_v9  ;;  %v2433_v9 = vmul.f32 -1.442695, %v1177_v1 }
 0x185   : > { %v3006_v42 = vpop.eup %3005  ;;  %3025 = vrcp.f32 %v1715_v25  ;;  %v1718_v39 = vadd.f32 1.0, %v3004_v32 }
 0x186   : > { %v3008_v63 = vpop.eup %3007  ;;  %3027 = vrcp.f32 %v1779_v33  ;;  %v1782_v28 = vadd.f32 1.0, %v3006_v42  ;;  %v2372_v10 = vmul.f32 -1.442695, %v932_v54  ;;  %v945_v42 = vadd.f32 %v3744_v23, %v3615_v36 }
 0x187   : > { %v3010_v60 = vpop.eup %3009  ;;  %3029 = vrcp.f32 %v1718_v39  ;;  %v1716_v24 = vadd.f32 1.0, %v3008_v63  ;;  %v924_v39 = vadd.f32 %v3744_v23, %v3611_v12  ;;  %v2436_v12 = vmul.f32 -1.442695, %v1188_v6 }
 0x188   : > { %v3012_v26 = vpop.eup %3011  ;;  %3031 = vrcp.f32 %v1782_v28  ;;  %v1780_v38 = vadd.f32 1.0, %v3010_v60  ;;  %v1180_v28 = vadd.f32 %v3744_v23, %v3613_v13  ;;  %v1201_v63 = vadd.f32 %v3744_v23, %v3617_v41 }
 0x189   : > { %v3014_v33 = vpop.eup %3013  ;;  %3033 = vrcp.f32 %v1716_v24  ;;  %v1721_v25 = vadd.f32 1.0, %v3012_v26  ;;  %v2370_v13 = vmul.f32 -1.442695, %v924_v39  ;;  %v937_v60 = vadd.f32 %v3744_v23, %v3619_v45 }
 0x18a   : > { %v3016_v32 = vpop.eup %3015  ;;  %2098 = vst [vmem:[%s3458_s14 + $0xd8] sm:$0xff] %v3014_v33  ;;  %3035 = vrcp.f32 %v1780_v38  ;;  %v2434_v36 = vmul.f32 -1.442695, %v1180_v28  ;;  %v1193_v54 = vadd.f32 %v3744_v23, %v3621_v49  ;;  %v2375_v41 = vmul.f32 -1.442695, %v945_v42 }
 0x18b   : > { %v3018_v37 = vpop.eup %3017  ;;  %2162 = vst [vmem:[%s3458_s14 + $0x2d8] sm:$0xff] %v3016_v32  ;;  %3037 = vrcp.f32 %v1721_v25  ;;  %v948_v38 = vadd.f32 %v3744_v23, %v3623_v50  ;;  %v2439_v45 = vmul.f32 -1.442695, %v1201_v63  ;;  %v1204_v6 = vadd.f32 %v3744_v23, %v3627_v59 }
 0x18c   : > { %v3020_v44 = vpop.eup %3019  ;;  %2096 = vst [vmem:[%s3458_s14 + $0xc8] sm:$0xff] %v3018_v37  ;;  %3039 = vpow2.f32 %v2435_v34  ;;  %v2373_v49 = vmul.f32 -1.442695, %v937_v60 }
 0x18d   : > { %v3022_v1 = vpop.eup %3021  ;;  %2160 = vst [vmem:[%s3458_s14 + $0x2c8] sm:$0xff] %v3020_v44  ;;  %3041 = vpow2.f32 %v2369_v7  ;;  %v2437_v7 = vmul.f32 -1.442695, %v1193_v54  ;;  %v2376_v50 = vmul.f32 -1.442695, %v948_v38 }
 0x18e   : > { %v3024_v24 = vpop.eup %3023  ;;  %2101 = vst [vmem:[%s3458_s14 + $0xf0] sm:$0xff] %v3022_v1  ;;  %3043 = vpow2.f32 %v2433_v9  ;;  %v2440_v9 = vmul.f32 -1.442695, %v1204_v6 }
 0x18f   : > { %v3026_v26 = vpop.eup %3025  ;;  %2165 = vst [vmem:[%s3458_s14 + $0x2f0] sm:$0xff] %v3024_v24  ;;  %3045 = vpow2.f32 %v2372_v10 }
 0x190   : > { %v3028_v34 = vpop.eup %3027  ;;  %2099 = vst [vmem:[%s3458_s14 + $0xe0] sm:$0xff] %v3026_v26  ;;  %3047 = vpow2.f32 %v2436_v12 }
 0x191   : > { %v3030_v33 = vpop.eup %3029  ;;  %2163 = vst [vmem:[%s3458_s14 + $0x2e0] sm:$0xff] %v3028_v34  ;;  %3049 = vpow2.f32 %v2370_v13 }
 0x192   : > { %v3032_v25 = vpop.eup %3031  ;;  %2102 = vst [vmem:[%s3458_s14 + $0xf8] sm:$0xff] %v3030_v33  ;;  %3051 = vpow2.f32 %v2434_v36 }
 0x193   : > { %v3034_v39 = vpop.eup %3033  ;;  %2166 = vst [vmem:[%s3458_s14 + $0x2f8] sm:$0xff] %v3032_v25  ;;  %3053 = vpow2.f32 %v2375_v41 }
 0x194   : > { %v3036_v32 = vpop.eup %3035  ;;  %2100 = vst [vmem:[%s3458_s14 + $0xe8] sm:$0xff] %v3034_v39  ;;  %3055 = vpow2.f32 %v2439_v45  ;;  %v940_v45 = vadd.f32 %v3744_v23, %v3629_v22  ;;  %v961_v39 = vadd.f32 %v3744_v23, %v3643_v52 }
 0x195   : > { %v3038_v28 = vpop.eup %3037  ;;  %2164 = vst [vmem:[%s3458_s14 + $0x2e8] sm:$0xff] %v3036_v32  ;;  %3057 = vpow2.f32 %v2373_v49  ;;  %v1196_v49 = vadd.f32 %v3744_v23, %v3633_v5  ;;  %v953_v5 = vadd.f32 %v3744_v23, %v3650_v18 }
 0x196   : > { %v3040_v59 = vpop.eup %3039  ;;  %2105 = vst [vmem:[%s3458_s14 + $0x110] sm:$0xff] %v3038_v28  ;;  %3059 = vpow2.f32 %v2437_v7 }
 0x197   : > { %v3042_v37 = vpop.eup %3041  ;;  %v1785_v10 = vadd.f32 1.0, %v3040_v59  ;;  %3061 = vpow2.f32 %v2376_v50  ;;  %v2374_v59 = vmul.f32 -1.442695, %v940_v45  ;;  %v2438_v52 = vmul.f32 -1.442695, %v1196_v49 }
 0x198   : > { %v3044_v42 = vpop.eup %3043  ;;  %v1719_v44 = vadd.f32 1.0, %v3042_v37  ;;  %3063 = vpow2.f32 %v2440_v9  ;;  %v1217_v9 = vadd.f32 %v3744_v23, %v3648_v57  ;;  %v2379_v57 = vmul.f32 -1.442695, %v961_v39 }
 0x199   : > { %v3046_v12 = vpop.eup %3045  ;;  %3065 = vrcp.f32 %v1785_v10  ;;  %v1783_v63 = vadd.f32 1.0, %v3044_v42  ;;  %v1209_v42 = vadd.f32 %v3744_v23, %v3655_v53  ;;  %v2377_v53 = vmul.f32 -1.442695, %v953_v5 }
 0x19a   : > { %v3048_v1 = vpop.eup %3047  ;;  %3067 = vrcp.f32 %v1719_v44  ;;  %v1722_v13 = vadd.f32 1.0, %v3046_v12  ;;  %v964_v12 = vadd.f32 %v3744_v23, %v3657_v58  ;;  %v2443_v18 = vmul.f32 -1.442695, %v1217_v9 }
 0x19b   : > { %v3050_v60 = vpop.eup %3049  ;;  %3069 = vrcp.f32 %v1783_v63  ;;  %v1786_v24 = vadd.f32 1.0, %v3048_v1  ;;  %v1220_v1 = vadd.f32 %v3744_v23, %v3662_v2  ;;  %v2441_v58 = vmul.f32 -1.442695, %v1209_v42 }
 0x19c   : > { %v3052_v36 = vpop.eup %3051  ;;  %3071 = vrcp.f32 %v1722_v13  ;;  %v1720_v54 = vadd.f32 1.0, %v3050_v60  ;;  %v956_v60 = vadd.f32 %v3744_v23, %v3664_v27  ;;  %v2380_v2 = vmul.f32 -1.442695, %v964_v12 }
 0x19d   : > { %v3054_v26 = vpop.eup %3053  ;;  %3073 = vrcp.f32 %v1786_v24  ;;  %v1784_v41 = vadd.f32 1.0, %v3052_v36  ;;  %v1212_v36 = vadd.f32 %v3744_v23, %v3669_v16  ;;  %v2444_v27 = vmul.f32 -1.442695, %v1220_v1 }
 0x19e   : > { %v3056_v38 = vpop.eup %3055  ;;  %3075 = vrcp.f32 %v1720_v54  ;;  %v1725_v34 = vadd.f32 1.0, %v3054_v26  ;;  %v977_v26 = vadd.f32 %v3744_v23, %v3681_v35  ;;  %v2378_v16 = vmul.f32 -1.442695, %v956_v60 }
 0x19f   : > { %v3058_v6 = vpop.eup %3057  ;;  %3077 = vrcp.f32 %v1784_v41  ;;  %v1789_v33 = vadd.f32 1.0, %v3056_v38  ;;  %v1233_v38 = vadd.f32 %v3744_v23, %v3683_v15  ;;  %v969_v45 = vadd.f32 %v3744_v23, %v3686_v17 }
 0x1a0   : > { %v3060_v25 = vpop.eup %3059  ;;  %3079 = vrcp.f32 %v1725_v34  ;;  %v1723_v7 = vadd.f32 1.0, %v3058_v6  ;;  %v2442_v35 = vmul.f32 -1.442695, %v1212_v36  ;;  %v2383_v49 = vmul.f32 -1.442695, %v977_v26 }
 0x1a1   : > { %v3062_v50 = vpop.eup %3061  ;;  %3081 = vrcp.f32 %v1789_v33  ;;  %v1787_v32 = vadd.f32 1.0, %v3060_v25  ;;  %v2447_v15 = vmul.f32 -1.442695, %v1233_v38  ;;  %v2381_v39 = vmul.f32 -1.442695, %v969_v45 }
 0x1a2   : > { %v3064_v22 = vpop.eup %3063  ;;  %3083 = vrcp.f32 %v1723_v7  ;;  %v1726_v28 = vadd.f32 1.0, %v3062_v50  ;;  %v993_v45 = vadd.f32 %v3744_v23, %v3702_v14 }
 0x1a3   : > { %v3066_v37 = vpop.eup %3065  ;;  %3085 = vrcp.f32 %v1787_v32  ;;  %v1790_v10 = vadd.f32 1.0, %v3064_v22 }
 0x1a4   : > { %v3068_v44 = vpop.eup %3067  ;;  %2169 = vst [vmem:[%s3458_s14 + $0x310] sm:$0xff] %v3066_v37  ;;  %3087 = vrcp.f32 %v1726_v28 }
 0x1a5   : > { %v3070_v63 = vpop.eup %3069  ;;  %2103 = vst [vmem:[%s3458_s14 + $0x100] sm:$0xff] %v3068_v44  ;;  %3089 = vrcp.f32 %v1790_v10 }
 0x1a6   : > { %v3072_v13 = vpop.eup %3071  ;;  %2167 = vst [vmem:[%s3458_s14 + $0x300] sm:$0xff] %v3070_v63  ;;  %3091 = vpow2.f32 %v2374_v59 }
 0x1a7   : > { %v3074_v24 = vpop.eup %3073  ;;  %2106 = vst [vmem:[%s3458_s14 + $0x118] sm:$0xff] %v3072_v13  ;;  %3093 = vpow2.f32 %v2438_v52  ;;  %v1225_v13 = vadd.f32 %v3744_v23, %v3688_v56 }
 0x1a8   : > { %v3076_v54 = vpop.eup %3075  ;;  %2170 = vst [vmem:[%s3458_s14 + $0x318] sm:$0xff] %v3074_v24  ;;  %3095 = vpow2.f32 %v2379_v57  ;;  %v980_v24 = vadd.f32 %v3744_v23, %v3691_v61  ;;  %v1228_v61 = vadd.f32 %v3744_v23, %v3698_v11 }
 0x1a9   : > { %v3078_v41 = vpop.eup %3077  ;;  %2104 = vst [vmem:[%s3458_s14 + $0x108] sm:$0xff] %v3076_v54  ;;  %3097 = vpow2.f32 %v2443_v18  ;;  %v1236_v54 = vadd.f32 %v3744_v23, %v3693_v21  ;;  %v2445_v38 = vmul.f32 -1.442695, %v1225_v13 }
 0x1aa   : > { %v3080_v34 = vpop.eup %3079  ;;  %2168 = vst [vmem:[%s3458_s14 + $0x308] sm:$0xff] %v3078_v41  ;;  %3099 = vpow2.f32 %v2377_v53  ;;  %v972_v41 = vadd.f32 %v3744_v23, %v3696_v62  ;;  %v2384_v21 = vmul.f32 -1.442695, %v980_v24  ;;  %v2446_v14 = vmul.f32 -1.442695, %v1228_v61 }
 0x1ab   : > { %v3082_v6 = vpop.eup %3081  ;;  %2109 = vst [vmem:[%s3458_s14 + $0x130] sm:$0xff] %v3080_v34  ;;  %3101 = vpow2.f32 %v2441_v58  ;;  %v2448_v62 = vmul.f32 -1.442695, %v1236_v54 }
 0x1ac   : > { %v3084_v33 = vpop.eup %3083  ;;  %2173 = vst [vmem:[%s3458_s14 + $0x330] sm:$0xff] %v3082_v6  ;;  %3103 = vpow2.f32 %v2380_v2  ;;  %v2382_v11 = vmul.f32 -1.442695, %v972_v41 }
 0x1ad   : > { %v3086_v25 = vpop.eup %3085  ;;  %2107 = vst [vmem:[%s3458_s14 + $0x120] sm:$0xff] %v3084_v33  ;;  %3105 = vpow2.f32 %v2444_v27 }
 0x1ae   : > { %v3088_v7 = vpop.eup %3087  ;;  %2171 = vst [vmem:[%s3458_s14 + $0x320] sm:$0xff] %v3086_v25  ;;  %3107 = vpow2.f32 %v2378_v16 }
 0x1af   : > { %v3090_v50 = vpop.eup %3089  ;;  %2110 = vst [vmem:[%s3458_s14 + $0x138] sm:$0xff] %v3088_v7  ;;  %3109 = vpow2.f32 %v2442_v35  ;;  %v1249_v35 = vadd.f32 %v3744_v23, %v3704_v43  ;;  %v2387_v43 = vmul.f32 -1.442695, %v993_v45  ;;  %v4029_v45 = vld [vmem:[#allocation5_spill] sm:$0xff] }
 0x1b0   : > { %v3092_v17 = vpop.eup %3091  ;;  %2174 = vst [vmem:[%s3458_s14 + $0x338] sm:$0xff] %v3090_v50  ;;  %3111 = vpow2.f32 %v2383_v49  ;;  %v985_v49 = vadd.f32 %v3744_v23, %v3706_v47 }
 0x1b1   : > { %v3094_v32 = vpop.eup %3093  ;;  %v1724_v9 = vadd.f32 1.0, %v3092_v17  ;;  %3113 = vpow2.f32 %v2447_v15  ;;  %v1241_v15 = vadd.f32 %v3744_v23, %v3708_v40  ;;  %v2451_v47 = vmul.f32 -1.442695, %v1249_v35 }
 0x1b2   : > { %v3096_v22 = vpop.eup %3095  ;;  %v1788_v28 = vadd.f32 1.0, %v3094_v32  ;;  %3115 = vpow2.f32 %v2381_v39  ;;  %v4026_v39 = vld [vmem:[#allocation2_spill] sm:$0xff]  ;;  %v1252_v32 = vadd.f32 %v3744_v23, %v3712_v0  ;;  %v2385_v40 = vmul.f32 -1.442695, %v985_v49 }
 0x1b3   : > { %v3098_v59 = vpop.eup %3097  ;;  %3117 = vrcp.f32 %v1724_v9  ;;  %v1729_v5 = vadd.f32 1.0, %v3096_v22  ;;  %v996_v50 = vadd.f32 %v3744_v23, %v4026_v39  ;;  %v4027_v22 = vld [vmem:[#allocation3_spill] sm:$0xff] }
 0x1b4   : > { %v3100_v37 = vpop.eup %3099  ;;  %3119 = vrcp.f32 %v1788_v28  ;;  %v1793_v10 = vadd.f32 1.0, %v3098_v59  ;;  %v988_v28 = vadd.f32 %v3744_v23, %v4027_v22 }
 0x1b5   : > { %v3102_v52 = vpop.eup %3101  ;;  %3121 = vrcp.f32 %v1729_v5  ;;  %v1727_v42 = vadd.f32 1.0, %v3100_v37  ;;  %v2449_v5 = vmul.f32 -1.442695, %v1241_v15  ;;  %v4028_v37 = vld [vmem:[#allocation4_spill] sm:$0xff]  ;;  %v2388_v0 = vmul.f32 -1.442695, %v996_v50 }
 0x1b6   : > { %v3104_v44 = vpop.eup %3103  ;;  %3123 = vrcp.f32 %v1793_v10  ;;  %v1791_v57 = vadd.f32 1.0, %v3102_v52  ;;  %v1244_v10 = vadd.f32 %v3744_v23, %v4028_v37  ;;  %v1260_v37 = vadd.f32 %v3744_v23, %v3755_v19 }
 0x1b7   : > { %v3106_v12 = vpop.eup %3105  ;;  %3125 = vrcp.f32 %v1727_v42  ;;  %v1730_v63 = vadd.f32 1.0, %v3104_v44  ;;  %v2452_v44 = vmul.f32 -1.442695, %v1252_v32 }
 0x1b8   : > { %v3108_v18 = vpop.eup %3107  ;;  %3127 = vrcp.f32 %v1791_v57  ;;  %v1794_v1 = vadd.f32 1.0, %v3106_v12  ;;  %v2386_v12 = vmul.f32 -1.442695, %v988_v28  ;;  %v1004_v28 = vadd.f32 %v3744_v23, %v3750_v8 }
 0x1b9   : > { %v3110_v53 = vpop.eup %3109  ;;  %3129 = vrcp.f32 %v1730_v63  ;;  %v1728_v60 = vadd.f32 1.0, %v3108_v18  ;;  %v2450_v18 = vmul.f32 -1.442695, %v1244_v10 }
 0x1ba   : > { %v3112_v58 = vpop.eup %3111  ;;  %3131 = vrcp.f32 %v1794_v1  ;;  %v1792_v36 = vadd.f32 1.0, %v3110_v53  ;;  %v2390_v19 = vmul.f32 -1.442695, %v1004_v28 }
 0x1bb   : > { %v3114_v2 = vpop.eup %3113  ;;  %3133 = vrcp.f32 %v1728_v60  ;;  %v1733_v26 = vadd.f32 1.0, %v3112_v58 }
 0x1bc   : > { %v3116_v56 = vpop.eup %3115  ;;  %3135 = vrcp.f32 %v1792_v36  ;;  %v1797_v27 = vadd.f32 1.0, %v3114_v2 }
 0x1bd   : > { %v3118_v34 = vpop.eup %3117  ;;  %3137 = vrcp.f32 %v1733_v26  ;;  %v1731_v16 = vadd.f32 1.0, %v3116_v56 }
 0x1be   : > { %v3120_v6 = vpop.eup %3119  ;;  %2108 = vst [vmem:[%s3458_s14 + $0x128] sm:$0xff] %v3118_v34  ;;  %3139 = vrcp.f32 %v1797_v27 }
 0x1bf   : > { %v3122_v33 = vpop.eup %3121  ;;  %2172 = vst [vmem:[%s3458_s14 + $0x328] sm:$0xff] %v3120_v6  ;;  %3141 = vrcp.f32 %v1731_v16  ;;  %v1009_v6 = vadd.f32 %v3744_v23, %v4029_v45 }
 0x1c0   : > { %v3124_v25 = vpop.eup %3123  ;;  %2113 = vst [vmem:[%s3458_s14 + $0x150] sm:$0xff] %v3122_v33  ;;  %3143 = vpow2.f32 %v2445_v38  ;;  %v1265_v33 = vadd.f32 %v3744_v23, %v3730_v20 }
 0x1c1   : > { %v3126_v7 = vpop.eup %3125  ;;  %2177 = vst [vmem:[%s3458_s14 + $0x350] sm:$0xff] %v3124_v25  ;;  %3145 = vpow2.f32 %v2384_v21  ;;  %v1001_v25 = vadd.f32 %v3744_v23, %v3732_v29  ;;  %v2391_v50 = vmul.f32 -1.442695, %v1009_v6 }
 0x1c2   : > { %v3128_v17 = vpop.eup %3127  ;;  %2111 = vst [vmem:[%s3458_s14 + $0x140] sm:$0xff] %v3126_v7  ;;  %3147 = vpow2.f32 %v2448_v62  ;;  %v1257_v7 = vadd.f32 %v3744_v23, %v3736_v3  ;;  %v2455_v29 = vmul.f32 -1.442695, %v1265_v33 }
 0x1c3   : > { %v3130_v9 = vpop.eup %3129  ;;  %2175 = vst [vmem:[%s3458_s14 + $0x340] sm:$0xff] %v3128_v17  ;;  %3149 = vpow2.f32 %v2382_v11  ;;  %v4030_v17 = vld [vmem:[#allocation6_spill] sm:$0xff]  ;;  %v2389_v3 = vmul.f32 -1.442695, %v1001_v25 }
 0x1c4   : > { %v3132_v59 = vpop.eup %3131  ;;  %2114 = vst [vmem:[%s3458_s14 + $0x158] sm:$0xff] %v3130_v9  ;;  %3151 = vpow2.f32 %v2446_v14  ;;  %v1012_v20 = vadd.f32 %v3744_v23, %v4030_v17  ;;  %v4031_v9 = vld [vmem:[#allocation7_spill] sm:$0xff] }
 0x1c5   : > { %v3134_v52 = vpop.eup %3133  ;;  %2178 = vst [vmem:[%s3458_s14 + $0x358] sm:$0xff] %v3132_v59  ;;  %3153 = vpow2.f32 %v2387_v43 }
 0x1c6   : > { %v3136_v42 = vpop.eup %3135  ;;  %2112 = vst [vmem:[%s3458_s14 + $0x148] sm:$0xff] %v3134_v52  ;;  %3155 = vpow2.f32 %v2451_v47  ;;  %v2392_v52 = vmul.f32 -1.442695, %v1012_v20 }
 0x1c7   : > { %v3138_v57 = vpop.eup %3137  ;;  %2176 = vst [vmem:[%s3458_s14 + $0x348] sm:$0xff] %v3136_v42  ;;  %3157 = vpow2.f32 %v2385_v40  ;;  %v1268_v40 = vadd.f32 %v3744_v23, %v4031_v9 }
 0x1c8   : > { %v3140_v63 = vpop.eup %3139  ;;  %2117 = vst [vmem:[%s3458_s14 + $0x170] sm:$0xff] %v3138_v57  ;;  %3159 = vpow2.f32 %v2449_v5  ;;  %v2453_v5 = vmul.f32 -1.442695, %v1257_v7 }
 0x1c9   : > { %v3142_v1 = vpop.eup %3141  ;;  %2181 = vst [vmem:[%s3458_s14 + $0x370] sm:$0xff] %v3140_v63  ;;  %3161 = vpow2.f32 %v2388_v0  ;;  %v1025_v0 = vadd.f32 %v3744_v23, %v3769_v48  ;;  %v2456_v8 = vmul.f32 -1.442695, %v1268_v40  ;;  %v2454_v48 = vmul.f32 -1.442695, %v1260_v37 }
 0x1ca   : > { %v3144_v13 = vpop.eup %3143  ;;  %2115 = vst [vmem:[%s3458_s14 + $0x160] sm:$0xff] %v3142_v1  ;;  %3163 = vpow2.f32 %v2452_v44  ;;  %v1281_v44 = vadd.f32 %v3744_v23, %v3771_v4 }
 0x1cb   : > { %v3146_v53 = vpop.eup %3145  ;;  %v1795_v60 = vadd.f32 1.0, %v3144_v13  ;;  %3165 = vpow2.f32 %v2386_v12  ;;  %v1017_v12 = vadd.f32 %v3744_v23, %v3776_v31  ;;  %v2395_v4 = vmul.f32 -1.442695, %v1025_v0  ;;  %v4032_v13 = vld [vmem:[#allocation8_spill] sm:$0xff] }
 0x1cc   : > { %v3148_v24 = vpop.eup %3147  ;;  %v1734_v58 = vadd.f32 1.0, %v3146_v53  ;;  %3167 = vpow2.f32 %v2450_v18  ;;  %v1273_v18 = vadd.f32 %v3744_v23, %v3778_v51  ;;  %v1028_v53 = vadd.f32 %v3744_v23, %v4032_v13 }
 0x1cd   : > { %v3150_v36 = vpop.eup %3149  ;;  %3169 = vrcp.f32 %v1795_v60  ;;  %v1798_v54 = vadd.f32 1.0, %v3148_v24  ;;  %v2459_v31 = vmul.f32 -1.442695, %v1281_v44 }
 0x1ce   : > { %v3152_v2 = vpop.eup %3151  ;;  %3171 = vrcp.f32 %v1734_v58  ;;  %v1732_v26 = vadd.f32 1.0, %v3150_v36  ;;  %v2393_v58 = vmul.f32 -1.442695, %v1017_v12  ;;  %v2457_v51 = vmul.f32 -1.442695, %v1273_v18  ;;  %v4038_v12 = vld [vmem:[#allocation14_spill] sm:$0xff] }
 0x1cf   : > { %v3154_v41 = vpop.eup %3153  ;;  %3173 = vrcp.f32 %v1798_v54  ;;  %v1796_v56 = vadd.f32 1.0, %v3152_v2  ;;  %v2396_v2 = vmul.f32 -1.442695, %v1028_v53  ;;  %v4039_v53 = vld [vmem:[#allocation15_spill] sm:$0xff] }
 0x1d0   : > { %v3156_v27 = vpop.eup %3155  ;;  %3175 = vrcp.f32 %v1732_v26  ;;  %v1737_v38 = vadd.f32 1.0, %v3154_v41 }
 0x1d1   : > { %v3158_v61 = vpop.eup %3157  ;;  %3177 = vrcp.f32 %v1796_v56  ;;  %v1801_v34 = vadd.f32 1.0, %v3156_v27 }
 0x1d2   : > { %v3160_v16 = vpop.eup %3159  ;;  %3179 = vrcp.f32 %v1737_v38  ;;  %v1735_v21 = vadd.f32 1.0, %v3158_v61 }
 0x1d3   : > { %v3162_v62 = vpop.eup %3161  ;;  %3181 = vrcp.f32 %v1801_v34  ;;  %v1799_v35 = vadd.f32 1.0, %v3160_v16 }
 0x1d4   : > { %v3164_v11 = vpop.eup %3163  ;;  %3183 = vrcp.f32 %v1735_v21  ;;  %v1738_v49 = vadd.f32 1.0, %v3162_v62 }
 0x1d5   : > { %v3166_v14 = vpop.eup %3165  ;;  %3185 = vrcp.f32 %v1799_v35  ;;  %v1802_v15 = vadd.f32 1.0, %v3164_v11 }
 0x1d6   : > { %v3168_v43 = vpop.eup %3167  ;;  %3187 = vrcp.f32 %v1738_v49  ;;  %v1736_v39 = vadd.f32 1.0, %v3166_v14  ;;  %v3292_v14 = vld [vmem:[%s4009_s2] ss:$0 sm:$0xff] }
 0x1d7   : > { %v3170_v47 = vpop.eup %3169  ;;  %3189 = vrcp.f32 %v1802_v15  ;;  %v1800_v32 = vadd.f32 1.0, %v3168_v43  ;;  %v4033_v15 = vld [vmem:[#allocation9_spill] sm:$0xff]  ;;  %v1041_v40 = vadd.f32 %v3292_v14, %v3794_v55 }
 0x1d8   : > { %v3172_v22 = vpop.eup %3171  ;;  %2179 = vst [vmem:[%s3458_s14 + $0x360] sm:$0xff] %v3170_v47  ;;  %3191 = vrcp.f32 %v1736_v39  ;;  %v1284_v7 = vadd.f32 %v3292_v14, %v4033_v15  ;;  %v4034_v47 = vld [vmem:[#allocation10_spill] sm:$0xff]  ;;  %v4037_v55 = vld [vmem:[#allocation13_spill] sm:$0xff] }
 0x1d9   : > { %v3174_v59 = vpop.eup %3173  ;;  %2118 = vst [vmem:[%s3458_s14 + $0x178] sm:$0xff] %v3172_v22  ;;  %3193 = vrcp.f32 %v1800_v32  ;;  %v1276_v32 = vadd.f32 %v3292_v14, %v4034_v47  ;;  %v1289_v44 = vadd.f32 %v3292_v14, %v4037_v55 }
 0x1da   : > { %v3176_v10 = vpop.eup %3175  ;;  %2182 = vst [vmem:[%s3458_s14 + $0x378] sm:$0xff] %v3174_v59  ;;  %3195 = vpow2.f32 %v2391_v50  ;;  %v1020_v50 = vadd.f32 %v3292_v14, %v3786_v30  ;;  %v2460_v28 = vmul.f32 -1.442695, %v1284_v7  ;;  %v4035_v59 = vld [vmem:[#allocation11_spill] sm:$0xff] }
 0x1db   : > { %v3178_v42 = vpop.eup %3177  ;;  %2116 = vst [vmem:[%s3458_s14 + $0x168] sm:$0xff] %v3176_v10  ;;  %3197 = vpow2.f32 %v2455_v29 }
 0x1dc   : > { %v3180_v57 = vpop.eup %3179  ;;  %2180 = vst [vmem:[%s3458_s14 + $0x368] sm:$0xff] %v3178_v42  ;;  %3199 = vpow2.f32 %v2389_v3  ;;  %v2394_v10 = vmul.f32 -1.442695, %v1020_v50 }
 0x1dd   : > { %v3182_v63 = vpop.eup %3181  ;;  %2121 = vst [vmem:[%s3458_s14 + $0x190] sm:$0xff] %v3180_v57  ;;  %3201 = vpow2.f32 %v2453_v5  ;;  %v1297_v5 = vadd.f32 %v3292_v14, %v4035_v59 }
 0x1de   : > { %v3184_v1 = vpop.eup %3183  ;;  %2185 = vst [vmem:[%s3458_s14 + $0x390] sm:$0xff] %v3182_v63  ;;  %3203 = vpow2.f32 %v2392_v52  ;;  %v4036_v52 = vld [vmem:[#allocation12_spill] sm:$0xff]  ;;  %v1044_v63 = vadd.f32 %v3292_v14, %v4038_v12 }
 0x1df   : > { %v3186_v60 = vpop.eup %3185  ;;  %2119 = vst [vmem:[%s3458_s14 + $0x180] sm:$0xff] %v3184_v1  ;;  %3205 = vpow2.f32 %v2456_v8  ;;  %v1033_v0 = vadd.f32 %v3292_v14, %v4036_v52  ;;  %v2458_v8 = vmul.f32 -1.442695, %v1276_v32  ;;  %v2463_v18 = vmul.f32 -1.442695, %v1297_v5 }
 0x1e0   : > { %v3188_v24 = vpop.eup %3187  ;;  %2183 = vst [vmem:[%s3458_s14 + $0x380] sm:$0xff] %v3186_v60  ;;  %3207 = vpow2.f32 %v2390_v19  ;;  %v2399_v19 = vmul.f32 -1.442695, %v1041_v40  ;;  %v1300_v1 = vadd.f32 %v3292_v14, %v3804_v46  ;;  %v1036_v60 = vadd.f32 %v3292_v14, %v4039_v53 }
 0x1e1   : > { %v3190_v36 = vpop.eup %3189  ;;  %2122 = vst [vmem:[%s3458_s14 + $0x198] sm:$0xff] %v3188_v24  ;;  %3209 = vpow2.f32 %v2454_v48  ;;  %v2397_v13 = vmul.f32 -1.442695, %v1033_v0  ;;  %v2461_v24 = vmul.f32 -1.442695, %v1289_v44 }
 0x1e2   : > { %v3192_v54 = vpop.eup %3191  ;;  %2186 = vst [vmem:[%s3458_s14 + $0x398] sm:$0xff] %v3190_v36  ;;  %3211 = vpow2.f32 %v2395_v4  ;;  %v2400_v46 = vmul.f32 -1.442695, %v1044_v63 }
 0x1e3   : > { %v3194_v26 = vpop.eup %3193  ;;  %2120 = vst [vmem:[%s3458_s14 + $0x188] sm:$0xff] %v3192_v54  ;;  %3213 = vpow2.f32 %v2459_v31 }
 0x1e4   : > { %v3196_v23 = vpop.eup %3195  ;;  %2184 = vst [vmem:[%s3458_s14 + $0x388] sm:$0xff] %v3194_v26  ;;  %3215 = vpow2.f32 %v2393_v58  ;;  %v4040_v58 = vld [vmem:[#allocation16_spill] sm:$0xff] }
 0x1e5   : > { %v3198_v41 = vpop.eup %3197  ;;  %v1741_v56 = vadd.f32 1.0, %v3196_v23  ;;  %3217 = vpow2.f32 %v2457_v51  ;;  %v1292_v36 = vadd.f32 %v3292_v14, %v4040_v58  ;;  %v2398_v23 = vmul.f32 -1.442695, %v1036_v60 }
 0x1e6   : > { %v3200_v27 = vpop.eup %3199  ;;  %v1805_v38 = vadd.f32 1.0, %v3198_v41  ;;  %3219 = vpow2.f32 %v2396_v2  ;;  %v2464_v2 = vmul.f32 -1.442695, %v1300_v1 }
 0x1e7   : > { %v3202_v61 = vpop.eup %3201  ;;  %3221 = vrcp.f32 %v1741_v56  ;;  %v1739_v34 = vadd.f32 1.0, %v3200_v27  ;;  %v2462_v56 = vmul.f32 -1.442695, %v1292_v36 }
 0x1e8   : > { %v3204_v16 = vpop.eup %3203  ;;  %3223 = vrcp.f32 %v1805_v38  ;;  %v1803_v21 = vadd.f32 1.0, %v3202_v61 }
 0x1e9   : > { %v3206_v45 = vpop.eup %3205  ;;  %3225 = vrcp.f32 %v1739_v34  ;;  %v1742_v6 = vadd.f32 1.0, %v3204_v16 }
 0x1ea   : > { %v3208_v62 = vpop.eup %3207  ;;  %3227 = vrcp.f32 %v1803_v21  ;;  %v1806_v35 = vadd.f32 1.0, %v3206_v45 }
 0x1eb   : > { %v3210_v33 = vpop.eup %3209  ;;  %3229 = vrcp.f32 %v1742_v6  ;;  %v1740_v11 = vadd.f32 1.0, %v3208_v62 }
 0x1ec   : > { %v3212_v49 = vpop.eup %3211  ;;  %3231 = vrcp.f32 %v1806_v35  ;;  %v1804_v25 = vadd.f32 1.0, %v3210_v33 }
 0x1ed   : > { %v3214_v43 = vpop.eup %3213  ;;  %3233 = vrcp.f32 %v1740_v11  ;;  %v1745_v39 = vadd.f32 1.0, %v3212_v49 }
 0x1ee   : > { %v3216_v17 = vpop.eup %3215  ;;  %3235 = vrcp.f32 %v1804_v25  ;;  %v1809_v20 = vadd.f32 1.0, %v3214_v43 }
 0x1ef   : > { %v3218_v29 = vpop.eup %3217  ;;  %3237 = vrcp.f32 %v1745_v39  ;;  %v1743_v9 = vadd.f32 1.0, %v3216_v17 }
 0x1f0   : > { %v3220_v22 = vpop.eup %3219  ;;  %3239 = vrcp.f32 %v1809_v20  ;;  %v1807_v3 = vadd.f32 1.0, %v3218_v29 }
 0x1f1   : > { %v3222_v37 = vpop.eup %3221  ;;  %3241 = vrcp.f32 %v1743_v9  ;;  %v1746_v30 = vadd.f32 1.0, %v3220_v22 }
 0x1f2   : > { %v3224_v42 = vpop.eup %3223  ;;  %2125 = vst [vmem:[%s3458_s14 + $0x1b0] sm:$0xff] %v3222_v37  ;;  %3243 = vrcp.f32 %v1807_v3 }
 0x1f3   : > { %v3226_v57 = vpop.eup %3225  ;;  %2189 = vst [vmem:[%s3458_s14 + $0x3b0] sm:$0xff] %v3224_v42  ;;  %3245 = vrcp.f32 %v1746_v30 }
 0x1f4   : > { %v3228_v48 = vpop.eup %3227  ;;  %2123 = vst [vmem:[%s3458_s14 + $0x1a0] sm:$0xff] %v3226_v57  ;;  %3247 = vpow2.f32 %v2460_v28 }
 0x1f5   : > { %v3230_v4 = vpop.eup %3229  ;;  %2187 = vst [vmem:[%s3458_s14 + $0x3a0] sm:$0xff] %v3228_v48  ;;  %3249 = vpow2.f32 %v2394_v10 }
 0x1f6   : > { %v3232_v31 = vpop.eup %3231  ;;  %2126 = vst [vmem:[%s3458_s14 + $0x1b8] sm:$0xff] %v3230_v4  ;;  %3251 = vpow2.f32 %v2458_v8 }
 0x1f7   : > { %v3234_v51 = vpop.eup %3233  ;;  %2190 = vst [vmem:[%s3458_s14 + $0x3b8] sm:$0xff] %v3232_v31  ;;  %3253 = vpow2.f32 %v2399_v19 }
 0x1f8   : > { %v3236_v54 = vpop.eup %3235  ;;  %2124 = vst [vmem:[%s3458_s14 + $0x1a8] sm:$0xff] %v3234_v51  ;;  %3255 = vpow2.f32 %v2463_v18 }
 0x1f9   : > { %v3238_v26 = vpop.eup %3237  ;;  %2188 = vst [vmem:[%s3458_s14 + $0x3a8] sm:$0xff] %v3236_v54  ;;  %3257 = vpow2.f32 %v2397_v13 }
 0x1fa   : > { %v3240_v41 = vpop.eup %3239  ;;  %2129 = vst [vmem:[%s3458_s14 + $0x1d0] sm:$0xff] %v3238_v26  ;;  %3259 = vpow2.f32 %v2461_v24 }
 0x1fb   : > { %v3242_v27 = vpop.eup %3241  ;;  %2193 = vst [vmem:[%s3458_s14 + $0x3d0] sm:$0xff] %v3240_v41  ;;  %3261 = vpow2.f32 %v2400_v46 }
 0x1fc   : > { %v3244_v38 = vpop.eup %3243  ;;  %2127 = vst [vmem:[%s3458_s14 + $0x1c0] sm:$0xff] %v3242_v27  ;;  %3263 = vpow2.f32 %v2464_v2 }
 0x1fd   : > { %v3246_v61 = vpop.eup %3245  ;;  %2191 = vst [vmem:[%s3458_s14 + $0x3c0] sm:$0xff] %v3244_v38  ;;  %3265 = vpow2.f32 %v2398_v23 }
 0x1fe   : > { %v3248_v34 = vpop.eup %3247  ;;  %2130 = vst [vmem:[%s3458_s14 + $0x1d8] sm:$0xff] %v3246_v61  ;;  %3267 = vpow2.f32 %v2462_v56 }
 0x1ff   : > { %v3250_v16 = vpop.eup %3249  ;;  %v1810_v21 = vadd.f32 1.0, %v3248_v34 }
 0x200   : > { %v3252_v45 = vpop.eup %3251  ;;  %v1744_v6 = vadd.f32 1.0, %v3250_v16 }
 0x201   : > { %v3254_v62 = vpop.eup %3253  ;;  %3269 = vrcp.f32 %v1810_v21  ;;  %v1808_v35 = vadd.f32 1.0, %v3252_v45 }
 0x202   : > { %v3256_v33 = vpop.eup %3255  ;;  %3271 = vrcp.f32 %v1744_v6  ;;  %v1749_v11 = vadd.f32 1.0, %v3254_v62 }
 0x203   : > { %v3258_v49 = vpop.eup %3257  ;;  %3273 = vrcp.f32 %v1808_v35  ;;  %v1813_v25 = vadd.f32 1.0, %v3256_v33 }
 0x204   : > { %v3260_v14 = vpop.eup %3259  ;;  %3275 = vrcp.f32 %v1749_v11  ;;  %v1747_v15 = vadd.f32 1.0, %v3258_v49 }
 0x205   : > { %v3262_v7 = vpop.eup %3261  ;;  %3277 = vrcp.f32 %v1813_v25  ;;  %v1811_v43 = vadd.f32 1.0, %v3260_v14 }
 0x206   : > { %v3264_v39 = vpop.eup %3263  ;;  %3279 = vrcp.f32 %v1747_v15  ;;  %v1750_v50 = vadd.f32 1.0, %v3262_v7 }
 0x207   : > { %v3266_v17 = vpop.eup %3265  ;;  %3281 = vrcp.f32 %v1811_v43  ;;  %v1814_v20 = vadd.f32 1.0, %v3264_v39 }
 0x208   : > { %v3268_v47 = vpop.eup %3267  ;;  %3283 = vrcp.f32 %v1750_v50  ;;  %v1748_v32 = vadd.f32 1.0, %v3266_v17 }
 0x209   : > { %3285 = vrcp.f32 %v1814_v20  ;;  %v1812_v29 = vadd.f32 1.0, %v3268_v47 }
 0x20a   : > { %3287 = vrcp.f32 %v1748_v32 }
 0x20b   : > { %v3270_v9 = vpop.eup %3269  ;;  %3289 = vrcp.f32 %v1812_v29 }
 0x20c   : > { %v3272_v40 = vpop.eup %3271  ;;  %2194 = vst [vmem:[%s3458_s14 + $0x3d8] sm:$0xff] %v3270_v9 }
 0x20d   : > { %v3274_v22 = vpop.eup %3273  ;;  %2128 = vst [vmem:[%s3458_s14 + $0x1c8] sm:$0xff] %v3272_v40 }
 0x20e   : > { %v3276_v3 = vpop.eup %3275  ;;  %2192 = vst [vmem:[%s3458_s14 + $0x3c8] sm:$0xff] %v3274_v22 }
 0x20f   : > { %v3278_v28 = vpop.eup %3277  ;;  %2133 = vst [vmem:[%s3458_s14 + $0x1f0] sm:$0xff] %v3276_v3 }
 0x210   : > { %v3280_v59 = vpop.eup %3279  ;;  %2197 = vst [vmem:[%s3458_s14 + $0x3f0] sm:$0xff] %v3278_v28 }
 0x211   : > { %v3282_v5 = vpop.eup %3281  ;;  %2131 = vst [vmem:[%s3458_s14 + $0x1e0] sm:$0xff] %v3280_v59 }
 0x212   : > { %v3284_v37 = vpop.eup %3283  ;;  %2195 = vst [vmem:[%s3458_s14 + $0x3e0] sm:$0xff] %v3282_v5 }
 0x213   : > { %v3286_v30 = vpop.eup %3285  ;;  %2134 = vst [vmem:[%s3458_s14 + $0x1f8] sm:$0xff] %v3284_v37 }
 0x214   : > { %v3288_v10 = vpop.eup %3287  ;;  %2198 = vst [vmem:[%s3458_s14 + $0x3f8] sm:$0xff] %v3286_v30 }
 0x215   : > { %v3290_v52 = vpop.eup %3289  ;;  %2132 = vst [vmem:[%s3458_s14 + $0x1e8] sm:$0xff] %v3288_v10 }
 0x216   : > { %2196 = vst [vmem:[%s3458_s14 + $0x3e8] sm:$0xff] %v3290_v52 }
 0x217 PF: > { %s13_s12 = sadd.s32 1, %s3299_s12  }
 0x218   : > { %p10_p4 = scmp.ge.s32.totalorder %s13_s12, 10  }
 0x21a   :  { %12 = sbr.rel (!%p10_p4) target bundleno = 1 (0x1), region = 62 }

</bundles_post_ra>
